<compile_context>
chip_gen: v6e
topology: v6e:2x2x1
jax: 0.10.0
libtpu: 0.0.40
codegen_flags: <defaults>
</compile_context>

<pallas_src>
import functools

import jax
import jax.numpy as jnp
from jax import lax
from jax.experimental import pallas as pl
from jax.experimental.pallas import tpu as pltpu


def _layernorm(x, g, b, eps=1e-5):
    # PyTorch nn.LayerNorm: biased variance over last dim, eps inside sqrt.
    mu = jnp.mean(x, axis=-1, keepdims=True)
    var = jnp.mean((x - mu) ** 2, axis=-1, keepdims=True)
    return (x - mu) * lax.rsqrt(var + eps) * g + b


def _decoder_kernel(x_ref, wqkv_ref, wproj_ref, wff1_ref, bff1_ref, wff2_ref,
                    lnv_ref, lnf_ref, wlm_ref, blm_ref, o_ref,
                    *, n_head, head_size):
    T = x_ref.shape[1]
    E = x_ref.shape[2]
    H, Hs = n_head, head_size
    n_layer = wqkv_ref.shape[0]
    cdt = wqkv_ref.dtype                              # MXU input dtype (bf16)

    # causal mask, built once and closed over by the layer loop
    row = lax.broadcasted_iota(jnp.int32, (T, T), 0)
    col = lax.broadcasted_iota(jnp.int32, (T, T), 1)
    causal = (row >= col)[None, :, :]                 # (1, T, T), bcast over heads
    neg_big = jnp.float32(-1e30)                      # finite mask (no exp(nan) risk)

    def layer_body(l, x):
        lnv = lnv_ref[l]                              # (6, E): ln1g ln1b bp ln2g ln2b b2
        ln1g, ln1b = lnv[0:1, :], lnv[1:2, :]
        bp = lnv[2:3, :]
        ln2g, ln2b = lnv[3:4, :], lnv[4:5, :]
        b2 = lnv[5:6, :]

        # ---- multi-head causal self-attention on ln1(x), fused QKV ----
        # (head_size**-0.5 already folded into the wq columns at pack time)
        xn = _layernorm(x, ln1g, ln1b)
        qkv = jnp.dot(xn.astype(cdt), wqkv_ref[l],
                      preferred_element_type=jnp.float32)                    # (T, 3E) f32
        q = jnp.swapaxes(qkv[:, 0 * E:1 * E].reshape(T, H, Hs), 0, 1).astype(cdt)
        k = jnp.swapaxes(qkv[:, 1 * E:2 * E].reshape(T, H, Hs), 0, 1).astype(cdt)
        v = jnp.swapaxes(qkv[:, 2 * E:3 * E].reshape(T, H, Hs), 0, 1).astype(cdt)
        s = jnp.einsum('hqd,hkd->hqk', q, k,
                       preferred_element_type=jnp.float32)                   # (H, T, T) f32
        s = jnp.where(causal, s, neg_big)
        s = s - jnp.max(s, axis=-1, keepdims=True)    # stable softmax
        p = jnp.exp(s)
        d = jnp.sum(p, axis=-1, keepdims=True)
        r = pl.reciprocal(d, approx=True)             # EUP slot
        r = r * (2.0 - d * r)                         # one Newton step -> f32-accurate
        p = p * r
        ctx = jnp.einsum('hqk,hkd->hqd', p.astype(cdt), v,
                         preferred_element_type=jnp.float32)                 # (H, T, Hs)
        cat = jnp.swapaxes(ctx, 0, 1).reshape(T, E)                          # (T, E) f32
        attn = jnp.dot(cat.astype(cdt), wproj_ref[l],
                       preferred_element_type=jnp.float32) + bp
        x = x + attn                                  # residual 1 (f32)

        # ---- feed-forward (ReLU) on ln2(x) ----
        xn2 = _layernorm(x, ln2g, ln2b)
        h1 = jnp.maximum(
            jnp.dot(xn2.astype(cdt), wff1_ref[l],
                    preferred_element_type=jnp.float32) + bff1_ref[l], 0.0)
        ff = jnp.dot(h1.astype(cdt), wff2_ref[l],
                     preferred_element_type=jnp.float32) + b2
        return x + ff                                 # residual 2 (f32)

    x = lax.fori_loop(0, n_layer, layer_body, x_ref[0], unroll=True)
    # NOTE: unroll=True is fine for small n_layer; for deep models move layers
    # onto a grid axis instead (see TODO above).

    # ---- final LayerNorm + lm_head (lane-dense, vocab padded to 128) ----
    lnf = lnf_ref[...]                                # (2, E): [gamma; beta]
    xn = _layernorm(x, lnf[0:1, :], lnf[1:2, :])
    o_ref[0] = (jnp.dot(xn.astype(cdt), wlm_ref[...],
                        preferred_element_type=jnp.float32) + blm_ref[...])


def pack_decoder_params(layer_params, lng, lnb, wlm, blm, *, head_size,
                        mxu_dtype=jnp.bfloat16):
    """Pack per-layer weights into a few stacked slabs.  Called ONCE at init
    time (hoisted out of the forward wrapper per perf review)."""
    scale = head_size ** -0.5                         # fold score scale into wq
    wqkv = jnp.stack([jnp.concatenate([p['wq'] * scale, p['wk'], p['wv']], axis=1)
                      for p in layer_params]).astype(mxu_dtype)        # (L, E, 3E)
    wproj = jnp.stack([p['wp'] for p in layer_params]).astype(mxu_dtype)   # (L, E, E)
    wff1 = jnp.stack([p['w1'] for p in layer_params]).astype(mxu_dtype)    # (L, E, F)
    bff1 = jnp.stack([p['b1'] for p in layer_params]).astype(jnp.float32)  # (L, 1, F)
    wff2 = jnp.stack([p['w2'] for p in layer_params]).astype(mxu_dtype)    # (L, F, E)
    lnv = jnp.stack([jnp.concatenate([p['ln1g'], p['ln1b'], p['bp'],
                                      p['ln2g'], p['ln2b'], p['b2']], axis=0)
                     for p in layer_params]).astype(jnp.float32)       # (L, 6, E)
    lnf = jnp.concatenate([lng, lnb], axis=0).astype(jnp.float32)      # (2, E)
    V = wlm.shape[1]
    VP = pl.cdiv(V, 128) * 128                        # lane-dense output width
    wlm_p = jnp.pad(wlm, ((0, 0), (0, VP - V))).astype(mxu_dtype)      # (E, VP)
    blm_p = jnp.pad(blm, ((0, 0), (0, VP - V))).astype(jnp.float32)    # (1, VP)
    return dict(params=[wqkv, wproj, wff1, bff1, wff2, lnv, lnf, wlm_p, blm_p],
                vocab=V, padded_vocab=VP)


def transformer_decoder_forward(x, packed, *, n_head, head_size):
    B, T, E = x.shape
    V, VP = packed['vocab'], packed['padded_vocab']
    params = packed['params']
    kern = functools.partial(_decoder_kernel, n_head=n_head, head_size=head_size)

    # explicit scoped-VMEM budget: weight slabs (x2 for safety), activation +
    # padded output blocks (double-buffered) + headroom; capped at v7x physical.
    param_bytes = sum(int(a.size) * a.dtype.itemsize for a in params)
    block_bytes = 4 * T * (E + VP)
    vmem_limit = int(min(2 * param_bytes + 8 * block_bytes + (16 << 20), 64 << 20))

    def call(single_buffer_weights):
        def const_spec(a):
            # full-array block, same tile every grid step (never re-DMA'd);
            # single-buffer it so weights occupy 1x (not 2x) VMEM.
            idx = lambda b, nd=a.ndim: (0,) * nd
            if single_buffer_weights:
                return pl.BlockSpec(a.shape, idx, pipeline_mode=pl.Buffered(1))
            return pl.BlockSpec(a.shape, idx)

        return pl.pallas_call(
            kern,
            out_shape=jax.ShapeDtypeStruct((B, T, VP), jnp.float32),
            grid=(B,),
            in_specs=[pl.BlockSpec((1, T, E), lambda b: (b, 0, 0))]
                     + [const_spec(a) for a in params],
            out_specs=pl.BlockSpec((1, T, VP), lambda b: (b, 0, 0)),
            compiler_params=pltpu.CompilerParams(
                dimension_semantics=("parallel",),
                vmem_limit_bytes=vmem_limit),
        )(x, *params)

    try:
        out = call(True)
    except Exception:
        # older/other jax builds without BlockSpec pipeline_mode support:
        # fall back to default double-buffered weight specs (correctness
        # identical, only VMEM residency differs).
        out = call(False)
    return out[:, :, :V]


# ------------------------- pure-JAX reference -------------------------------

def _ref_ln(x, g, b, eps=1e-5):
    mu = x.mean(-1, keepdims=True)
    var = ((x - mu) ** 2).mean(-1, keepdims=True)
    return (x - mu) / jnp.sqrt(var + eps) * g + b


def _ref_block(x, p, n_head, head_size):
    T = x.shape[1]
    xn = _ref_ln(x, p['ln1g'][0], p['ln1b'][0])
    q, k, v = xn @ p['wq'], xn @ p['wk'], xn @ p['wv']
    mask = jnp.tril(jnp.ones((T, T), bool))
    outs = []
    for h in range(n_head):
        sl = slice(h * head_size, (h + 1) * head_size)
        s = q[..., sl] @ jnp.swapaxes(k[..., sl], -1, -2) * head_size ** -0.5
        s = jnp.where(mask, s, -jnp.inf)
        w = jax.nn.softmax(s, axis=-1)
        outs.append(w @ v[..., sl])
    cat = jnp.concatenate(outs, -1)
    x = x + cat @ p['wp'] + p['bp'][0]
    xn2 = _ref_ln(x, p['ln2g'][0], p['ln2b'][0])
    x = x + jnp.maximum(xn2 @ p['w1'] + p['b1'][0], 0.0) @ p['w2'] + p['b2'][0]
    return x


# ----------------------------------------------------------------------------

if __name__ == "__main__":
    # small hyper-params consistent with TransformerDecoder.__init__
    VOCAB, N_EMBD, BLOCK_SIZE, N_HEAD, FF_HIDDEN, N_LAYERS = 64, 32, 8, 4, 64, 2
    HEAD_SIZE = N_EMBD // N_HEAD
    B, T = 2, 8

    key = jax.random.PRNGKey(0)
    key, k_tok, k_pos, k_lm, k_y = jax.random.split(key, 5)

    # deterministic synthetic parameters (matches _init_weights: N(0, 0.02),
    # zero biases; LayerNorm stays at default ones/zeros).
    tok_emb = 0.02 * jax.random.normal(k_tok, (VOCAB, N_EMBD), jnp.float32)
    pos_emb = 0.02 * jax.random.normal(k_pos, (BLOCK_SIZE, N_EMBD), jnp.float32)
    wlm = 0.02 * jax.random.normal(k_lm, (N_EMBD, VOCAB), jnp.float32)  # lm_head.weight.T
    blm = jnp.zeros((1, VOCAB), jnp.float32)
    lng = jnp.ones((1, N_EMBD), jnp.float32)
    lnb = jnp.zeros((1, N_EMBD), jnp.float32)

    layers = []
    for _ in range(N_LAYERS):
        key, *ks = jax.random.split(key, 7)
        layers.append(dict(
            ln1g=jnp.ones((1, N_EMBD), jnp.float32),
            ln1b=jnp.zeros((1, N_EMBD), jnp.float32),
            # per-head K/Q/V linears stacked column-wise (already transposed):
            wq=0.02 * jax.random.normal(ks[0], (N_EMBD, N_EMBD), jnp.float32),
            wk=0.02 * jax.random.normal(ks[1], (N_EMBD, N_EMBD), jnp.float32),
            wv=0.02 * jax.random.normal(ks[2], (N_EMBD, N_EMBD), jnp.float32),
            wp=0.02 * jax.random.normal(ks[3], (N_EMBD, N_EMBD), jnp.float32),
            bp=jnp.zeros((1, N_EMBD), jnp.float32),
            ln2g=jnp.ones((1, N_EMBD), jnp.float32),
            ln2b=jnp.zeros((1, N_EMBD), jnp.float32),
            w1=0.02 * jax.random.normal(ks[4], (N_EMBD, FF_HIDDEN), jnp.float32),
            b1=jnp.zeros((1, FF_HIDDEN), jnp.float32),
            w2=0.02 * jax.random.normal(ks[5], (FF_HIDDEN, N_EMBD), jnp.float32),
            b2=jnp.zeros((1, N_EMBD), jnp.float32),
        ))

    # pack weights ONCE at init time (not per forward call)
    packed = pack_decoder_params(layers, lng, lnb, wlm, blm, head_size=HEAD_SIZE)

    # token ids (B, T) int32
    y = jax.random.randint(k_y, (B, T), 0, VOCAB, dtype=jnp.int32)

    # --- forward pass (glue: embedding gather; hot path: one fused Pallas call) ---
    x = tok_emb[y] + pos_emb[:T][None, :, :]            # (B, T, E)
    logits = transformer_decoder_forward(
        x, packed, n_head=N_HEAD, head_size=HEAD_SIZE)
    logits = jax.block_until_ready(logits)

    # --- pure-JAX f32 reference check ---
    xr = tok_emb[y] + pos_emb[:T][None, :, :]
    for p in layers:
        xr = _ref_block(xr, p, N_HEAD, HEAD_SIZE)
    ref_logits = _ref_ln(xr, lng[0], lnb[0]) @ wlm + blm[0]

    assert logits.shape == (B, T, VOCAB)
    # tolerance accounts for bf16 MXU inputs (accumulation, LN/softmax and the
    # residual stream stay f32; softmax reciprocal is Newton-refined)
    assert jnp.allclose(logits, ref_logits, atol=1e-2, rtol=1e-2), (
        float(jnp.max(jnp.abs(logits - ref_logits))))
    print("KERNEL_OK")
</pallas_src>

<mosaic_0001>
module attributes {stable_mosaic.version = 11 : i64} {
  func.func @_decoder_kernel(%arg0: i32, %arg1: memref<1x8x32xf32, #tpu.memory_space<vmem>>, %arg2: memref<2x32x96xbf16, #tpu.memory_space<vmem>>, %arg3: memref<2x32x32xbf16, #tpu.memory_space<vmem>>, %arg4: memref<2x32x64xbf16, #tpu.memory_space<vmem>>, %arg5: memref<2x1x64xf32, #tpu.memory_space<vmem>>, %arg6: memref<2x64x32xbf16, #tpu.memory_space<vmem>>, %arg7: memref<2x6x32xf32, #tpu.memory_space<vmem>>, %arg8: memref<2x32xf32, #tpu.memory_space<vmem>>, %arg9: memref<32x128xbf16, #tpu.memory_space<vmem>>, %arg10: memref<1x128xf32, #tpu.memory_space<vmem>>, %arg11: memref<1x8x128xf32, #tpu.memory_space<vmem>>) attributes {dimension_semantics = [#tpu.dimension_semantics<parallel>], iteration_bounds = array<i64: 2>, scalar_prefetch = 0 : i64, scratch_operands = 0 : i64, tpu.core_type = #tpu.core_type<tc>, window_params = [{transform_indices = @transform_0, window_bounds = array<i64: 1, 8, 32>}, {pipeline_mode = #tpu.pipeline_mode<synchronous>, transform_indices = @transform_1, window_bounds = array<i64: 2, 32, 96>}, {pipeline_mode = #tpu.pipeline_mode<synchronous>, transform_indices = @transform_2, window_bounds = array<i64: 2, 32, 32>}, {pipeline_mode = #tpu.pipeline_mode<synchronous>, transform_indices = @transform_3, window_bounds = array<i64: 2, 32, 64>}, {pipeline_mode = #tpu.pipeline_mode<synchronous>, transform_indices = @transform_4, window_bounds = array<i64: 2, 1, 64>}, {pipeline_mode = #tpu.pipeline_mode<synchronous>, transform_indices = @transform_5, window_bounds = array<i64: 2, 64, 32>}, {pipeline_mode = #tpu.pipeline_mode<synchronous>, transform_indices = @transform_6, window_bounds = array<i64: 2, 6, 32>}, {pipeline_mode = #tpu.pipeline_mode<synchronous>, transform_indices = @transform_7, window_bounds = array<i64: 2, 32>}, {pipeline_mode = #tpu.pipeline_mode<synchronous>, transform_indices = @transform_8, window_bounds = array<i64: 32, 128>}, {pipeline_mode = #tpu.pipeline_mode<synchronous>, transform_indices = @transform_9, window_bounds = array<i64: 1, 128>}, {transform_indices = @transform_10, window_bounds = array<i64: 1, 8, 128>}]} {
    %0 = tpu.iota {dimensions = array<i32: 0>} : vector<8x8xi32>
    %1 = tpu.iota {dimensions = array<i32: 1>} : vector<8x8xi32>
    %2 = arith.cmpi sge, %0, %1 : vector<8x8xi32>
    %3 = vector.shape_cast %2 : vector<8x8xi1> to vector<1x8x8xi1>
    %c0 = arith.constant 0 : index
    %c0_0 = arith.constant 0 : index
    %c0_1 = arith.constant 0 : index
    %4 = vector.load %arg1[%c0, %c0_0, %c0_1] : memref<1x8x32xf32, #tpu.memory_space<vmem>>, vector<1x8x32xf32>
    %5 = vector.shape_cast %4 : vector<1x8x32xf32> to vector<8x32xf32>
    %cst = arith.constant -1.000000e+30 : f32
    %c0_i32 = arith.constant 0 : i32
    %6 = arith.index_cast %c0_i32 : i32 to index
    %c0_2 = arith.constant 0 : index
    %c0_3 = arith.constant 0 : index
    %7 = vector.load %arg7[%6, %c0_2, %c0_3] : memref<2x6x32xf32, #tpu.memory_space<vmem>>, vector<1x6x32xf32>
    %8 = vector.shape_cast %7 : vector<1x6x32xf32> to vector<6x32xf32>
    %9 = vector.extract_strided_slice %8 {offsets = [0, 0], sizes = [1, 32], strides = [1, 1]} : vector<6x32xf32> to vector<1x32xf32>
    %10 = vector.extract_strided_slice %8 {offsets = [1, 0], sizes = [1, 32], strides = [1, 1]} : vector<6x32xf32> to vector<1x32xf32>
    %11 = vector.extract_strided_slice %8 {offsets = [2, 0], sizes = [1, 32], strides = [1, 1]} : vector<6x32xf32> to vector<1x32xf32>
    %12 = vector.extract_strided_slice %8 {offsets = [3, 0], sizes = [1, 32], strides = [1, 1]} : vector<6x32xf32> to vector<1x32xf32>
    %13 = vector.extract_strided_slice %8 {offsets = [4, 0], sizes = [1, 32], strides = [1, 1]} : vector<6x32xf32> to vector<1x32xf32>
    %14 = vector.extract_strided_slice %8 {offsets = [5, 0], sizes = [1, 32], strides = [1, 1]} : vector<6x32xf32> to vector<1x32xf32>
    %cst_4 = arith.constant dense<0.000000e+00> : vector<8xf32>
    %15 = vector.multi_reduction <add>, %5, %cst_4 [1] : vector<8x32xf32> to vector<8xf32>
    %16 = vector.shape_cast %15 : vector<8xf32> to vector<8x1xf32>
    %cst_5 = arith.constant 3.200000e+01 : f32
    %17 = vector.broadcast %cst_5 : f32 to vector<8x1xf32>
    %18 = arith.divf %16, %17 : vector<8x1xf32>
    %19 = vector.broadcast %18 : vector<8x1xf32> to vector<8x32xf32>
    %20 = arith.subf %5, %19 : vector<8x32xf32>
    %21 = arith.mulf %20, %20 : vector<8x32xf32>
    %cst_6 = arith.constant dense<0.000000e+00> : vector<8xf32>
    %22 = vector.multi_reduction <add>, %21, %cst_6 [1] : vector<8x32xf32> to vector<8xf32>
    %23 = vector.shape_cast %22 : vector<8xf32> to vector<8x1xf32>
    %cst_7 = arith.constant 3.200000e+01 : f32
    %24 = vector.broadcast %cst_7 : f32 to vector<8x1xf32>
    %25 = arith.divf %23, %24 : vector<8x1xf32>
    %26 = vector.broadcast %18 : vector<8x1xf32> to vector<8x32xf32>
    %27 = arith.subf %5, %26 : vector<8x32xf32>
    %cst_8 = arith.constant 9.99999974E-6 : f32
    %28 = vector.broadcast %cst_8 : f32 to vector<8x1xf32>
    %29 = arith.addf %25, %28 : vector<8x1xf32>
    %30 = math.rsqrt %29 : vector<8x1xf32>
    %31 = vector.broadcast %30 : vector<8x1xf32> to vector<8x32xf32>
    %32 = arith.mulf %27, %31 : vector<8x32xf32>
    %33 = vector.broadcast %9 : vector<1x32xf32> to vector<8x32xf32>
    %34 = arith.mulf %32, %33 : vector<8x32xf32>
    %35 = vector.broadcast %10 : vector<1x32xf32> to vector<8x32xf32>
    %36 = arith.addf %34, %35 : vector<8x32xf32>
    %37 = arith.truncf %36 : vector<8x32xf32> to vector<8x32xbf16>
    %38 = arith.index_cast %c0_i32 : i32 to index
    %c0_9 = arith.constant 0 : index
    %c0_10 = arith.constant 0 : index
    %39 = vector.load %arg2[%38, %c0_9, %c0_10] : memref<2x32x96xbf16, #tpu.memory_space<vmem>>, vector<1x32x96xbf16>
    %40 = vector.shape_cast %39 : vector<1x32x96xbf16> to vector<32x96xbf16>
    %cst_11 = arith.constant dense<0.000000e+00> : vector<8x96xf32>
    %41 = tpu.matmul %37, %40, %cst_11 {dimension_numbers = #tpu.dot_dimension_numbers<[1], [0], [0], [1], [0, 0, 1, 1], [], []>} : vector<8x32xbf16>, vector<32x96xbf16>, vector<8x96xf32> -> vector<8x96xf32>
    %42 = vector.extract_strided_slice %41 {offsets = [0, 0], sizes = [8, 32], strides = [1, 1]} : vector<8x96xf32> to vector<8x32xf32>
    %43 = vector.shape_cast %42 : vector<8x32xf32> to vector<8x4x8xf32>
    %44 = tpu.transpose %43, [1, 0, 2] : vector<8x4x8xf32> -> vector<4x8x8xf32>
    %45 = arith.truncf %44 : vector<4x8x8xf32> to vector<4x8x8xbf16>
    %46 = vector.extract_strided_slice %41 {offsets = [0, 32], sizes = [8, 32], strides = [1, 1]} : vector<8x96xf32> to vector<8x32xf32>
    %47 = vector.shape_cast %46 : vector<8x32xf32> to vector<8x4x8xf32>
    %48 = tpu.transpose %47, [1, 0, 2] : vector<8x4x8xf32> -> vector<4x8x8xf32>
    %49 = arith.truncf %48 : vector<4x8x8xf32> to vector<4x8x8xbf16>
    %50 = vector.extract_strided_slice %41 {offsets = [0, 64], sizes = [8, 32], strides = [1, 1]} : vector<8x96xf32> to vector<8x32xf32>
    %51 = vector.shape_cast %50 : vector<8x32xf32> to vector<8x4x8xf32>
    %52 = tpu.transpose %51, [1, 0, 2] : vector<8x4x8xf32> -> vector<4x8x8xf32>
    %53 = arith.truncf %52 : vector<4x8x8xf32> to vector<4x8x8xbf16>
    "tpu.trace_start"() <{level = 10 : i32, message = "hqd,hkd->hqk"}> : () -> ()
    %cst_12 = arith.constant dense<0.000000e+00> : vector<4x8x8xf32>
    %54 = tpu.matmul %45, %49, %cst_12 {dimension_numbers = #tpu.dot_dimension_numbers<[2], [2], [1], [1], [0, 0, 0, 1, 1, 1], [0], [0]>} : vector<4x8x8xbf16>, vector<4x8x8xbf16>, vector<4x8x8xf32> -> vector<4x8x8xf32>
    "tpu.trace_stop"() : () -> ()
    %55 = vector.shape_cast %3 : vector<1x8x8xi1> to vector<1x8x8xi1>
    %56 = vector.broadcast %55 : vector<1x8x8xi1> to vector<4x8x8xi1>
    %57 = vector.broadcast %cst : f32 to vector<4x8x8xf32>
    %58 = arith.select %56, %54, %57 : vector<4x8x8xi1>, vector<4x8x8xf32>
    %cst_13 = arith.constant dense<0xFF800000> : vector<4x8xf32>
    %59 = vector.multi_reduction <maximumf>, %58, %cst_13 [2] : vector<4x8x8xf32> to vector<4x8xf32>
    %60 = vector.shape_cast %59 : vector<4x8xf32> to vector<4x8x1xf32>
    %61 = vector.broadcast %60 : vector<4x8x1xf32> to vector<4x8x8xf32>
    %62 = arith.subf %58, %61 : vector<4x8x8xf32>
    %63 = math.exp %62 : vector<4x8x8xf32>
    %cst_14 = arith.constant dense<0.000000e+00> : vector<4x8xf32>
    %64 = vector.multi_reduction <add>, %63, %cst_14 [2] : vector<4x8x8xf32> to vector<4x8xf32>
    %65 = vector.shape_cast %64 : vector<4x8xf32> to vector<4x8x1xf32>
    %66 = tpu.reciprocal %65 {approx = true} : vector<4x8x1xf32> -> vector<4x8x1xf32>
    %67 = arith.mulf %65, %66 : vector<4x8x1xf32>
    %cst_15 = arith.constant 2.000000e+00 : f32
    %68 = vector.broadcast %cst_15 : f32 to vector<4x8x1xf32>
    %69 = arith.subf %68, %67 : vector<4x8x1xf32>
    %70 = arith.mulf %66, %69 : vector<4x8x1xf32>
    %71 = vector.broadcast %70 : vector<4x8x1xf32> to vector<4x8x8xf32>
    %72 = arith.mulf %63, %71 : vector<4x8x8xf32>
    %73 = arith.truncf %72 : vector<4x8x8xf32> to vector<4x8x8xbf16>
    "tpu.trace_start"() <{level = 10 : i32, message = "hqk,hkd->hqd"}> : () -> ()
    %cst_16 = arith.constant dense<0.000000e+00> : vector<4x8x8xf32>
    %74 = tpu.matmul %73, %53, %cst_16 {dimension_numbers = #tpu.dot_dimension_numbers<[2], [1], [1], [2], [0, 0, 0, 1, 1, 2], [0], [0]>} : vector<4x8x8xbf16>, vector<4x8x8xbf16>, vector<4x8x8xf32> -> vector<4x8x8xf32>
    "tpu.trace_stop"() : () -> ()
    %75 = tpu.transpose %74, [1, 0, 2] : vector<4x8x8xf32> -> vector<8x4x8xf32>
    %76 = vector.shape_cast %75 : vector<8x4x8xf32> to vector<8x32xf32>
    %77 = arith.truncf %76 : vector<8x32xf32> to vector<8x32xbf16>
    %78 = arith.index_cast %c0_i32 : i32 to index
    %c0_17 = arith.constant 0 : index
    %c0_18 = arith.constant 0 : index
    %79 = vector.load %arg3[%78, %c0_17, %c0_18] : memref<2x32x32xbf16, #tpu.memory_space<vmem>>, vector<1x32x32xbf16>
    %80 = vector.shape_cast %79 : vector<1x32x32xbf16> to vector<32x32xbf16>
    %cst_19 = arith.constant dense<0.000000e+00> : vector<8x32xf32>
    %81 = tpu.matmul %77, %80, %cst_19 {dimension_numbers = #tpu.dot_dimension_numbers<[1], [0], [0], [1], [0, 0, 1, 1], [], []>} : vector<8x32xbf16>, vector<32x32xbf16>, vector<8x32xf32> -> vector<8x32xf32>
    %82 = vector.broadcast %11 : vector<1x32xf32> to vector<8x32xf32>
    %83 = arith.addf %81, %82 : vector<8x32xf32>
    %84 = arith.addf %5, %83 : vector<8x32xf32>
    %cst_20 = arith.constant dense<0.000000e+00> : vector<8xf32>
    %85 = vector.multi_reduction <add>, %84, %cst_20 [1] : vector<8x32xf32> to vector<8xf32>
    %86 = vector.shape_cast %85 : vector<8xf32> to vector<8x1xf32>
    %cst_21 = arith.constant 3.200000e+01 : f32
    %87 = vector.broadcast %cst_21 : f32 to vector<8x1xf32>
    %88 = arith.divf %86, %87 : vector<8x1xf32>
    %89 = vector.broadcast %88 : vector<8x1xf32> to vector<8x32xf32>
    %90 = arith.subf %84, %89 : vector<8x32xf32>
    %91 = arith.mulf %90, %90 : vector<8x32xf32>
    %cst_22 = arith.constant dense<0.000000e+00> : vector<8xf32>
    %92 = vector.multi_reduction <add>, %91, %cst_22 [1] : vector<8x32xf32> to vector<8xf32>
    %93 = vector.shape_cast %92 : vector<8xf32> to vector<8x1xf32>
    %cst_23 = arith.constant 3.200000e+01 : f32
    %94 = vector.broadcast %cst_23 : f32 to vector<8x1xf32>
    %95 = arith.divf %93, %94 : vector<8x1xf32>
    %96 = vector.broadcast %88 : vector<8x1xf32> to vector<8x32xf32>
    %97 = arith.subf %84, %96 : vector<8x32xf32>
    %cst_24 = arith.constant 9.99999974E-6 : f32
    %98 = vector.broadcast %cst_24 : f32 to vector<8x1xf32>
    %99 = arith.addf %95, %98 : vector<8x1xf32>
    %100 = math.rsqrt %99 : vector<8x1xf32>
    %101 = vector.broadcast %100 : vector<8x1xf32> to vector<8x32xf32>
    %102 = arith.mulf %97, %101 : vector<8x32xf32>
    %103 = vector.broadcast %12 : vector<1x32xf32> to vector<8x32xf32>
    %104 = arith.mulf %102, %103 : vector<8x32xf32>
    %105 = vector.broadcast %13 : vector<1x32xf32> to vector<8x32xf32>
    %106 = arith.addf %104, %105 : vector<8x32xf32>
    %107 = arith.truncf %106 : vector<8x32xf32> to vector<8x32xbf16>
    %108 = arith.index_cast %c0_i32 : i32 to index
    %c0_25 = arith.constant 0 : index
    %c0_26 = arith.constant 0 : index
    %109 = vector.load %arg4[%108, %c0_25, %c0_26] : memref<2x32x64xbf16, #tpu.memory_space<vmem>>, vector<1x32x64xbf16>
    %110 = vector.shape_cast %109 : vector<1x32x64xbf16> to vector<32x64xbf16>
    %cst_27 = arith.constant dense<0.000000e+00> : vector<8x64xf32>
    %111 = tpu.matmul %107, %110, %cst_27 {dimension_numbers = #tpu.dot_dimension_numbers<[1], [0], [0], [1], [0, 0, 1, 1], [], []>} : vector<8x32xbf16>, vector<32x64xbf16>, vector<8x64xf32> -> vector<8x64xf32>
    %112 = arith.index_cast %c0_i32 : i32 to index
    %c0_28 = arith.constant 0 : index
    %c0_29 = arith.constant 0 : index
    %113 = vector.load %arg5[%112, %c0_28, %c0_29] : memref<2x1x64xf32, #tpu.memory_space<vmem>>, vector<1x1x64xf32>
    %114 = vector.shape_cast %113 : vector<1x1x64xf32> to vector<1x64xf32>
    %115 = vector.broadcast %114 : vector<1x64xf32> to vector<8x64xf32>
    %116 = arith.addf %111, %115 : vector<8x64xf32>
    %cst_30 = arith.constant 0.000000e+00 : f32
    %117 = vector.broadcast %cst_30 : f32 to vector<8x64xf32>
    %118 = arith.maximumf %116, %117 : vector<8x64xf32>
    %119 = arith.truncf %118 : vector<8x64xf32> to vector<8x64xbf16>
    %120 = arith.index_cast %c0_i32 : i32 to index
    %c0_31 = arith.constant 0 : index
    %c0_32 = arith.constant 0 : index
    %121 = vector.load %arg6[%120, %c0_31, %c0_32] : memref<2x64x32xbf16, #tpu.memory_space<vmem>>, vector<1x64x32xbf16>
    %122 = vector.shape_cast %121 : vector<1x64x32xbf16> to vector<64x32xbf16>
    %cst_33 = arith.constant dense<0.000000e+00> : vector<8x32xf32>
    %123 = tpu.matmul %119, %122, %cst_33 {dimension_numbers = #tpu.dot_dimension_numbers<[1], [0], [0], [1], [0, 0, 1, 1], [], []>} : vector<8x64xbf16>, vector<64x32xbf16>, vector<8x32xf32> -> vector<8x32xf32>
    %124 = vector.broadcast %14 : vector<1x32xf32> to vector<8x32xf32>
    %125 = arith.addf %123, %124 : vector<8x32xf32>
    %126 = arith.addf %84, %125 : vector<8x32xf32>
    %c1_i32 = arith.constant 1 : i32
    %127 = arith.index_cast %c1_i32 : i32 to index
    %c0_34 = arith.constant 0 : index
    %c0_35 = arith.constant 0 : index
    %128 = vector.load %arg7[%127, %c0_34, %c0_35] : memref<2x6x32xf32, #tpu.memory_space<vmem>>, vector<1x6x32xf32>
    %129 = vector.shape_cast %128 : vector<1x6x32xf32> to vector<6x32xf32>
    %130 = vector.extract_strided_slice %129 {offsets = [0, 0], sizes = [1, 32], strides = [1, 1]} : vector<6x32xf32> to vector<1x32xf32>
    %131 = vector.extract_strided_slice %129 {offsets = [1, 0], sizes = [1, 32], strides = [1, 1]} : vector<6x32xf32> to vector<1x32xf32>
    %132 = vector.extract_strided_slice %129 {offsets = [2, 0], sizes = [1, 32], strides = [1, 1]} : vector<6x32xf32> to vector<1x32xf32>
    %133 = vector.extract_strided_slice %129 {offsets = [3, 0], sizes = [1, 32], strides = [1, 1]} : vector<6x32xf32> to vector<1x32xf32>
    %134 = vector.extract_strided_slice %129 {offsets = [4, 0], sizes = [1, 32], strides = [1, 1]} : vector<6x32xf32> to vector<1x32xf32>
    %135 = vector.extract_strided_slice %129 {offsets = [5, 0], sizes = [1, 32], strides = [1, 1]} : vector<6x32xf32> to vector<1x32xf32>
    %cst_36 = arith.constant dense<0.000000e+00> : vector<8xf32>
    %136 = vector.multi_reduction <add>, %126, %cst_36 [1] : vector<8x32xf32> to vector<8xf32>
    %137 = vector.shape_cast %136 : vector<8xf32> to vector<8x1xf32>
    %cst_37 = arith.constant 3.200000e+01 : f32
    %138 = vector.broadcast %cst_37 : f32 to vector<8x1xf32>
    %139 = arith.divf %137, %138 : vector<8x1xf32>
    %140 = vector.broadcast %139 : vector<8x1xf32> to vector<8x32xf32>
    %141 = arith.subf %126, %140 : vector<8x32xf32>
    %142 = arith.mulf %141, %141 : vector<8x32xf32>
    %cst_38 = arith.constant dense<0.000000e+00> : vector<8xf32>
    %143 = vector.multi_reduction <add>, %142, %cst_38 [1] : vector<8x32xf32> to vector<8xf32>
    %144 = vector.shape_cast %143 : vector<8xf32> to vector<8x1xf32>
    %cst_39 = arith.constant 3.200000e+01 : f32
    %145 = vector.broadcast %cst_39 : f32 to vector<8x1xf32>
    %146 = arith.divf %144, %145 : vector<8x1xf32>
    %147 = vector.broadcast %139 : vector<8x1xf32> to vector<8x32xf32>
    %148 = arith.subf %126, %147 : vector<8x32xf32>
    %cst_40 = arith.constant 9.99999974E-6 : f32
    %149 = vector.broadcast %cst_40 : f32 to vector<8x1xf32>
    %150 = arith.addf %146, %149 : vector<8x1xf32>
    %151 = math.rsqrt %150 : vector<8x1xf32>
    %152 = vector.broadcast %151 : vector<8x1xf32> to vector<8x32xf32>
    %153 = arith.mulf %148, %152 : vector<8x32xf32>
    %154 = vector.broadcast %130 : vector<1x32xf32> to vector<8x32xf32>
    %155 = arith.mulf %153, %154 : vector<8x32xf32>
    %156 = vector.broadcast %131 : vector<1x32xf32> to vector<8x32xf32>
    %157 = arith.addf %155, %156 : vector<8x32xf32>
    %158 = arith.truncf %157 : vector<8x32xf32> to vector<8x32xbf16>
    %159 = arith.index_cast %c1_i32 : i32 to index
    %c0_41 = arith.constant 0 : index
    %c0_42 = arith.constant 0 : index
    %160 = vector.load %arg2[%159, %c0_41, %c0_42] : memref<2x32x96xbf16, #tpu.memory_space<vmem>>, vector<1x32x96xbf16>
    %161 = vector.shape_cast %160 : vector<1x32x96xbf16> to vector<32x96xbf16>
    %cst_43 = arith.constant dense<0.000000e+00> : vector<8x96xf32>
    %162 = tpu.matmul %158, %161, %cst_43 {dimension_numbers = #tpu.dot_dimension_numbers<[1], [0], [0], [1], [0, 0, 1, 1], [], []>} : vector<8x32xbf16>, vector<32x96xbf16>, vector<8x96xf32> -> vector<8x96xf32>
    %163 = vector.extract_strided_slice %162 {offsets = [0, 0], sizes = [8, 32], strides = [1, 1]} : vector<8x96xf32> to vector<8x32xf32>
    %164 = vector.shape_cast %163 : vector<8x32xf32> to vector<8x4x8xf32>
    %165 = tpu.transpose %164, [1, 0, 2] : vector<8x4x8xf32> -> vector<4x8x8xf32>
    %166 = arith.truncf %165 : vector<4x8x8xf32> to vector<4x8x8xbf16>
    %167 = vector.extract_strided_slice %162 {offsets = [0, 32], sizes = [8, 32], strides = [1, 1]} : vector<8x96xf32> to vector<8x32xf32>
    %168 = vector.shape_cast %167 : vector<8x32xf32> to vector<8x4x8xf32>
    %169 = tpu.transpose %168, [1, 0, 2] : vector<8x4x8xf32> -> vector<4x8x8xf32>
    %170 = arith.truncf %169 : vector<4x8x8xf32> to vector<4x8x8xbf16>
    %171 = vector.extract_strided_slice %162 {offsets = [0, 64], sizes = [8, 32], strides = [1, 1]} : vector<8x96xf32> to vector<8x32xf32>
    %172 = vector.shape_cast %171 : vector<8x32xf32> to vector<8x4x8xf32>
    %173 = tpu.transpose %172, [1, 0, 2] : vector<8x4x8xf32> -> vector<4x8x8xf32>
    %174 = arith.truncf %173 : vector<4x8x8xf32> to vector<4x8x8xbf16>
    "tpu.trace_start"() <{level = 10 : i32, message = "hqd,hkd->hqk"}> : () -> ()
    %cst_44 = arith.constant dense<0.000000e+00> : vector<4x8x8xf32>
    %175 = tpu.matmul %166, %170, %cst_44 {dimension_numbers = #tpu.dot_dimension_numbers<[2], [2], [1], [1], [0, 0, 0, 1, 1, 1], [0], [0]>} : vector<4x8x8xbf16>, vector<4x8x8xbf16>, vector<4x8x8xf32> -> vector<4x8x8xf32>
    "tpu.trace_stop"() : () -> ()
    %176 = vector.shape_cast %3 : vector<1x8x8xi1> to vector<1x8x8xi1>
    %177 = vector.broadcast %176 : vector<1x8x8xi1> to vector<4x8x8xi1>
    %178 = vector.broadcast %cst : f32 to vector<4x8x8xf32>
    %179 = arith.select %177, %175, %178 : vector<4x8x8xi1>, vector<4x8x8xf32>
    %cst_45 = arith.constant dense<0xFF800000> : vector<4x8xf32>
    %180 = vector.multi_reduction <maximumf>, %179, %cst_45 [2] : vector<4x8x8xf32> to vector<4x8xf32>
    %181 = vector.shape_cast %180 : vector<4x8xf32> to vector<4x8x1xf32>
    %182 = vector.broadcast %181 : vector<4x8x1xf32> to vector<4x8x8xf32>
    %183 = arith.subf %179, %182 : vector<4x8x8xf32>
    %184 = math.exp %183 : vector<4x8x8xf32>
    %cst_46 = arith.constant dense<0.000000e+00> : vector<4x8xf32>
    %185 = vector.multi_reduction <add>, %184, %cst_46 [2] : vector<4x8x8xf32> to vector<4x8xf32>
    %186 = vector.shape_cast %185 : vector<4x8xf32> to vector<4x8x1xf32>
    %187 = tpu.reciprocal %186 {approx = true} : vector<4x8x1xf32> -> vector<4x8x1xf32>
    %188 = arith.mulf %186, %187 : vector<4x8x1xf32>
    %cst_47 = arith.constant 2.000000e+00 : f32
    %189 = vector.broadcast %cst_47 : f32 to vector<4x8x1xf32>
    %190 = arith.subf %189, %188 : vector<4x8x1xf32>
    %191 = arith.mulf %187, %190 : vector<4x8x1xf32>
    %192 = vector.broadcast %191 : vector<4x8x1xf32> to vector<4x8x8xf32>
    %193 = arith.mulf %184, %192 : vector<4x8x8xf32>
    %194 = arith.truncf %193 : vector<4x8x8xf32> to vector<4x8x8xbf16>
    "tpu.trace_start"() <{level = 10 : i32, message = "hqk,hkd->hqd"}> : () -> ()
    %cst_48 = arith.constant dense<0.000000e+00> : vector<4x8x8xf32>
    %195 = tpu.matmul %194, %174, %cst_48 {dimension_numbers = #tpu.dot_dimension_numbers<[2], [1], [1], [2], [0, 0, 0, 1, 1, 2], [0], [0]>} : vector<4x8x8xbf16>, vector<4x8x8xbf16>, vector<4x8x8xf32> -> vector<4x8x8xf32>
    "tpu.trace_stop"() : () -> ()
    %196 = tpu.transpose %195, [1, 0, 2] : vector<4x8x8xf32> -> vector<8x4x8xf32>
    %197 = vector.shape_cast %196 : vector<8x4x8xf32> to vector<8x32xf32>
    %198 = arith.truncf %197 : vector<8x32xf32> to vector<8x32xbf16>
    %199 = arith.index_cast %c1_i32 : i32 to index
    %c0_49 = arith.constant 0 : index
    %c0_50 = arith.constant 0 : index
    %200 = vector.load %arg3[%199, %c0_49, %c0_50] : memref<2x32x32xbf16, #tpu.memory_space<vmem>>, vector<1x32x32xbf16>
    %201 = vector.shape_cast %200 : vector<1x32x32xbf16> to vector<32x32xbf16>
    %cst_51 = arith.constant dense<0.000000e+00> : vector<8x32xf32>
    %202 = tpu.matmul %198, %201, %cst_51 {dimension_numbers = #tpu.dot_dimension_numbers<[1], [0], [0], [1], [0, 0, 1, 1], [], []>} : vector<8x32xbf16>, vector<32x32xbf16>, vector<8x32xf32> -> vector<8x32xf32>
    %203 = vector.broadcast %132 : vector<1x32xf32> to vector<8x32xf32>
    %204 = arith.addf %202, %203 : vector<8x32xf32>
    %205 = arith.addf %126, %204 : vector<8x32xf32>
    %cst_52 = arith.constant dense<0.000000e+00> : vector<8xf32>
    %206 = vector.multi_reduction <add>, %205, %cst_52 [1] : vector<8x32xf32> to vector<8xf32>
    %207 = vector.shape_cast %206 : vector<8xf32> to vector<8x1xf32>
    %cst_53 = arith.constant 3.200000e+01 : f32
    %208 = vector.broadcast %cst_53 : f32 to vector<8x1xf32>
    %209 = arith.divf %207, %208 : vector<8x1xf32>
    %210 = vector.broadcast %209 : vector<8x1xf32> to vector<8x32xf32>
    %211 = arith.subf %205, %210 : vector<8x32xf32>
    %212 = arith.mulf %211, %211 : vector<8x32xf32>
    %cst_54 = arith.constant dense<0.000000e+00> : vector<8xf32>
    %213 = vector.multi_reduction <add>, %212, %cst_54 [1] : vector<8x32xf32> to vector<8xf32>
    %214 = vector.shape_cast %213 : vector<8xf32> to vector<8x1xf32>
    %cst_55 = arith.constant 3.200000e+01 : f32
    %215 = vector.broadcast %cst_55 : f32 to vector<8x1xf32>
    %216 = arith.divf %214, %215 : vector<8x1xf32>
    %217 = vector.broadcast %209 : vector<8x1xf32> to vector<8x32xf32>
    %218 = arith.subf %205, %217 : vector<8x32xf32>
    %cst_56 = arith.constant 9.99999974E-6 : f32
    %219 = vector.broadcast %cst_56 : f32 to vector<8x1xf32>
    %220 = arith.addf %216, %219 : vector<8x1xf32>
    %221 = math.rsqrt %220 : vector<8x1xf32>
    %222 = vector.broadcast %221 : vector<8x1xf32> to vector<8x32xf32>
    %223 = arith.mulf %218, %222 : vector<8x32xf32>
    %224 = vector.broadcast %133 : vector<1x32xf32> to vector<8x32xf32>
    %225 = arith.mulf %223, %224 : vector<8x32xf32>
    %226 = vector.broadcast %134 : vector<1x32xf32> to vector<8x32xf32>
    %227 = arith.addf %225, %226 : vector<8x32xf32>
    %228 = arith.truncf %227 : vector<8x32xf32> to vector<8x32xbf16>
    %229 = arith.index_cast %c1_i32 : i32 to index
    %c0_57 = arith.constant 0 : index
    %c0_58 = arith.constant 0 : index
    %230 = vector.load %arg4[%229, %c0_57, %c0_58] : memref<2x32x64xbf16, #tpu.memory_space<vmem>>, vector<1x32x64xbf16>
    %231 = vector.shape_cast %230 : vector<1x32x64xbf16> to vector<32x64xbf16>
    %cst_59 = arith.constant dense<0.000000e+00> : vector<8x64xf32>
    %232 = tpu.matmul %228, %231, %cst_59 {dimension_numbers = #tpu.dot_dimension_numbers<[1], [0], [0], [1], [0, 0, 1, 1], [], []>} : vector<8x32xbf16>, vector<32x64xbf16>, vector<8x64xf32> -> vector<8x64xf32>
    %233 = arith.index_cast %c1_i32 : i32 to index
    %c0_60 = arith.constant 0 : index
    %c0_61 = arith.constant 0 : index
    %234 = vector.load %arg5[%233, %c0_60, %c0_61] : memref<2x1x64xf32, #tpu.memory_space<vmem>>, vector<1x1x64xf32>
    %235 = vector.shape_cast %234 : vector<1x1x64xf32> to vector<1x64xf32>
    %236 = vector.broadcast %235 : vector<1x64xf32> to vector<8x64xf32>
    %237 = arith.addf %232, %236 : vector<8x64xf32>
    %cst_62 = arith.constant 0.000000e+00 : f32
    %238 = vector.broadcast %cst_62 : f32 to vector<8x64xf32>
    %239 = arith.maximumf %237, %238 : vector<8x64xf32>
    %240 = arith.truncf %239 : vector<8x64xf32> to vector<8x64xbf16>
    %241 = arith.index_cast %c1_i32 : i32 to index
    %c0_63 = arith.constant 0 : index
    %c0_64 = arith.constant 0 : index
    %242 = vector.load %arg6[%241, %c0_63, %c0_64] : memref<2x64x32xbf16, #tpu.memory_space<vmem>>, vector<1x64x32xbf16>
    %243 = vector.shape_cast %242 : vector<1x64x32xbf16> to vector<64x32xbf16>
    %cst_65 = arith.constant dense<0.000000e+00> : vector<8x32xf32>
    %244 = tpu.matmul %240, %243, %cst_65 {dimension_numbers = #tpu.dot_dimension_numbers<[1], [0], [0], [1], [0, 0, 1, 1], [], []>} : vector<8x64xbf16>, vector<64x32xbf16>, vector<8x32xf32> -> vector<8x32xf32>
    %245 = vector.broadcast %135 : vector<1x32xf32> to vector<8x32xf32>
    %246 = arith.addf %244, %245 : vector<8x32xf32>
    %247 = arith.addf %205, %246 : vector<8x32xf32>
    %c2_i32 = arith.constant 2 : i32
    %c0_66 = arith.constant 0 : index
    %c0_67 = arith.constant 0 : index
    %248 = vector.load %arg8[%c0_66, %c0_67] : memref<2x32xf32, #tpu.memory_space<vmem>>, vector<2x32xf32>
    %249 = vector.extract_strided_slice %248 {offsets = [0, 0], sizes = [1, 32], strides = [1, 1]} : vector<2x32xf32> to vector<1x32xf32>
    %250 = vector.extract_strided_slice %248 {offsets = [1, 0], sizes = [1, 32], strides = [1, 1]} : vector<2x32xf32> to vector<1x32xf32>
    %cst_68 = arith.constant dense<0.000000e+00> : vector<8xf32>
    %251 = vector.multi_reduction <add>, %247, %cst_68 [1] : vector<8x32xf32> to vector<8xf32>
    %252 = vector.shape_cast %251 : vector<8xf32> to vector<8x1xf32>
    %cst_69 = arith.constant 3.200000e+01 : f32
    %253 = vector.broadcast %cst_69 : f32 to vector<8x1xf32>
    %254 = arith.divf %252, %253 : vector<8x1xf32>
    %255 = vector.broadcast %254 : vector<8x1xf32> to vector<8x32xf32>
    %256 = arith.subf %247, %255 : vector<8x32xf32>
    %257 = arith.mulf %256, %256 : vector<8x32xf32>
    %cst_70 = arith.constant dense<0.000000e+00> : vector<8xf32>
    %258 = vector.multi_reduction <add>, %257, %cst_70 [1] : vector<8x32xf32> to vector<8xf32>
    %259 = vector.shape_cast %258 : vector<8xf32> to vector<8x1xf32>
    %cst_71 = arith.constant 3.200000e+01 : f32
    %260 = vector.broadcast %cst_71 : f32 to vector<8x1xf32>
    %261 = arith.divf %259, %260 : vector<8x1xf32>
    %262 = vector.broadcast %254 : vector<8x1xf32> to vector<8x32xf32>
    %263 = arith.subf %247, %262 : vector<8x32xf32>
    %cst_72 = arith.constant 9.99999974E-6 : f32
    %264 = vector.broadcast %cst_72 : f32 to vector<8x1xf32>
    %265 = arith.addf %261, %264 : vector<8x1xf32>
    %266 = math.rsqrt %265 : vector<8x1xf32>
    %267 = vector.broadcast %266 : vector<8x1xf32> to vector<8x32xf32>
    %268 = arith.mulf %263, %267 : vector<8x32xf32>
    %269 = vector.broadcast %249 : vector<1x32xf32> to vector<8x32xf32>
    %270 = arith.mulf %268, %269 : vector<8x32xf32>
    %271 = vector.broadcast %250 : vector<1x32xf32> to vector<8x32xf32>
    %272 = arith.addf %270, %271 : vector<8x32xf32>
    %273 = arith.truncf %272 : vector<8x32xf32> to vector<8x32xbf16>
    %c0_73 = arith.constant 0 : index
    %c0_74 = arith.constant 0 : index
    %274 = vector.load %arg9[%c0_73, %c0_74] : memref<32x128xbf16, #tpu.memory_space<vmem>>, vector<32x128xbf16>
    %cst_75 = arith.constant dense<0.000000e+00> : vector<8x128xf32>
    %275 = tpu.matmul %273, %274, %cst_75 {dimension_numbers = #tpu.dot_dimension_numbers<[1], [0], [0], [1], [0, 0, 1, 1], [], []>} : vector<8x32xbf16>, vector<32x128xbf16>, vector<8x128xf32> -> vector<8x128xf32>
    %c0_76 = arith.constant 0 : index
    %c0_77 = arith.constant 0 : index
    %276 = vector.load %arg10[%c0_76, %c0_77] : memref<1x128xf32, #tpu.memory_space<vmem>>, vector<1x128xf32>
    %277 = vector.broadcast %276 : vector<1x128xf32> to vector<8x128xf32>
    %278 = arith.addf %275, %277 : vector<8x128xf32>
    %c0_78 = arith.constant 0 : index
    %c0_79 = arith.constant 0 : index
    %c0_80 = arith.constant 0 : index
    %279 = vector.load %arg11[%c0_78, %c0_79, %c0_80] : memref<1x8x128xf32, #tpu.memory_space<vmem>>, vector<1x8x128xf32>
    %280 = vector.shape_cast %279 : vector<1x8x128xf32> to vector<8x128xf32>
    %281 = vector.shape_cast %278 : vector<8x128xf32> to vector<1x8x128xf32>
    tpu.vector_store %arg11[%c0_78, %c0_79, %c0_80], %281 {strides = array<i32>} : memref<1x8x128xf32, #tpu.memory_space<vmem>>, vector<1x8x128xf32>,
    return
  }
  func.func @transform_0(%arg0: i32) -> (i32, i32, i32) {
    %c0_i32 = arith.constant 0 : i32
    %c0_i32_0 = arith.constant 0 : i32
    %c0_i32_1 = arith.constant 0 : i32
    return %arg0, %c0_i32, %c0_i32_0 : i32, i32, i32
  }
  func.func @transform_1(%arg0: i32) -> (i32, i32, i32) {
    %c0_i32 = arith.constant 0 : i32
    %c0_i32_0 = arith.constant 0 : i32
    %c0_i32_1 = arith.constant 0 : i32
    %c0_i32_2 = arith.constant 0 : i32
    return %c0_i32, %c0_i32_0, %c0_i32_1 : i32, i32, i32
  }
  func.func @transform_2(%arg0: i32) -> (i32, i32, i32) {
    %c0_i32 = arith.constant 0 : i32
    %c0_i32_0 = arith.constant 0 : i32
    %c0_i32_1 = arith.constant 0 : i32
    %c0_i32_2 = arith.constant 0 : i32
    return %c0_i32, %c0_i32_0, %c0_i32_1 : i32, i32, i32
  }
  func.func @transform_3(%arg0: i32) -> (i32, i32, i32) {
    %c0_i32 = arith.constant 0 : i32
    %c0_i32_0 = arith.constant 0 : i32
    %c0_i32_1 = arith.constant 0 : i32
    %c0_i32_2 = arith.constant 0 : i32
    return %c0_i32, %c0_i32_0, %c0_i32_1 : i32, i32, i32
  }
  func.func @transform_4(%arg0: i32) -> (i32, i32, i32) {
    %c0_i32 = arith.constant 0 : i32
    %c0_i32_0 = arith.constant 0 : i32
    %c0_i32_1 = arith.constant 0 : i32
    %c0_i32_2 = arith.constant 0 : i32
    return %c0_i32, %c0_i32_0, %c0_i32_1 : i32, i32, i32
  }
  func.func @transform_5(%arg0: i32) -> (i32, i32, i32) {
    %c0_i32 = arith.constant 0 : i32
    %c0_i32_0 = arith.constant 0 : i32
    %c0_i32_1 = arith.constant 0 : i32
    %c0_i32_2 = arith.constant 0 : i32
    return %c0_i32, %c0_i32_0, %c0_i32_1 : i32, i32, i32
  }
  func.func @transform_6(%arg0: i32) -> (i32, i32, i32) {
    %c0_i32 = arith.constant 0 : i32
    %c0_i32_0 = arith.constant 0 : i32
    %c0_i32_1 = arith.constant 0 : i32
    %c0_i32_2 = arith.constant 0 : i32
    return %c0_i32, %c0_i32_0, %c0_i32_1 : i32, i32, i32
  }
  func.func @transform_7(%arg0: i32) -> (i32, i32) {
    %c0_i32 = arith.constant 0 : i32
    %c0_i32_0 = arith.constant 0 : i32
    %c0_i32_1 = arith.constant 0 : i32
    return %c0_i32, %c0_i32_0 : i32, i32
  }
  func.func @transform_8(%arg0: i32) -> (i32, i32) {
    %c0_i32 = arith.constant 0 : i32
    %c0_i32_0 = arith.constant 0 : i32
    %c0_i32_1 = arith.constant 0 : i32
    return %c0_i32, %c0_i32_0 : i32, i32
  }
  func.func @transform_9(%arg0: i32) -> (i32, i32) {
    %c0_i32 = arith.constant 0 : i32
    %c0_i32_0 = arith.constant 0 : i32
    %c0_i32_1 = arith.constant 0 : i32
    return %c0_i32, %c0_i32_0 : i32, i32
  }
  func.func @transform_10(%arg0: i32) -> (i32, i32, i32) {
    %c0_i32 = arith.constant 0 : i32
    %c0_i32_0 = arith.constant 0 : i32
    %c0_i32_1 = arith.constant 0 : i32
    return %arg0, %c0_i32, %c0_i32_0 : i32, i32, i32
  }
}

module attributes {stable_mosaic.version = 11 : i64} {
  func.func @_decoder_kernel(%arg0: i32, %arg1: memref<1x8x32xf32, #tpu.memory_space<vmem>>, %arg2: memref<2x32x96xbf16, #tpu.memory_space<vmem>>, %arg3: memref<2x32x32xbf16, #tpu.memory_space<vmem>>, %arg4: memref<2x32x64xbf16, #tpu.memory_space<vmem>>, %arg5: memref<2x1x64xf32, #tpu.memory_space<vmem>>, %arg6: memref<2x64x32xbf16, #tpu.memory_space<vmem>>, %arg7: memref<2x6x32xf32, #tpu.memory_space<vmem>>, %arg8: memref<2x32xf32, #tpu.memory_space<vmem>>, %arg9: memref<32x128xbf16, #tpu.memory_space<vmem>>, %arg10: memref<1x128xf32, #tpu.memory_space<vmem>>, %arg11: memref<1x8x128xf32, #tpu.memory_space<vmem>>) attributes {dimension_semantics = [#tpu.dimension_semantics<parallel>], iteration_bounds = array<i64: 2>, scalar_prefetch = 0 : i64, scratch_operands = 0 : i64, tpu.core_type = #tpu.core_type<tc>, window_params = [{transform_indices = @transform_0, window_bounds = array<i64: 1, 8, 32>}, {pipeline_mode = #tpu.pipeline_mode<synchronous>, transform_indices = @transform_1, window_bounds = array<i64: 2, 32, 96>}, {pipeline_mode = #tpu.pipeline_mode<synchronous>, transform_indices = @transform_2, window_bounds = array<i64: 2, 32, 32>}, {pipeline_mode = #tpu.pipeline_mode<synchronous>, transform_indices = @transform_3, window_bounds = array<i64: 2, 32, 64>}, {pipeline_mode = #tpu.pipeline_mode<synchronous>, transform_indices = @transform_4, window_bounds = array<i64: 2, 1, 64>}, {pipeline_mode = #tpu.pipeline_mode<synchronous>, transform_indices = @transform_5, window_bounds = array<i64: 2, 64, 32>}, {pipeline_mode = #tpu.pipeline_mode<synchronous>, transform_indices = @transform_6, window_bounds = array<i64: 2, 6, 32>}, {pipeline_mode = #tpu.pipeline_mode<synchronous>, transform_indices = @transform_7, window_bounds = array<i64: 2, 32>}, {pipeline_mode = #tpu.pipeline_mode<synchronous>, transform_indices = @transform_8, window_bounds = array<i64: 32, 128>}, {pipeline_mode = #tpu.pipeline_mode<synchronous>, transform_indices = @transform_9, window_bounds = array<i64: 1, 128>}, {transform_indices = @transform_10, window_bounds = array<i64: 1, 8, 128>}]} {
    %0 = tpu.iota {dimensions = array<i32: 0>} : vector<8x8xi32>
    %1 = tpu.iota {dimensions = array<i32: 1>} : vector<8x8xi32>
    %2 = arith.cmpi sge, %0, %1 : vector<8x8xi32>
    %3 = vector.shape_cast %2 : vector<8x8xi1> to vector<1x8x8xi1>
    %c0 = arith.constant 0 : index
    %c0_0 = arith.constant 0 : index
    %c0_1 = arith.constant 0 : index
    %4 = vector.load %arg1[%c0, %c0_0, %c0_1] : memref<1x8x32xf32, #tpu.memory_space<vmem>>, vector<1x8x32xf32>
    %5 = vector.shape_cast %4 : vector<1x8x32xf32> to vector<8x32xf32>
    %cst = arith.constant -1.000000e+30 : f32
    %c0_i32 = arith.constant 0 : i32
    %6 = arith.index_cast %c0_i32 : i32 to index
    %c0_2 = arith.constant 0 : index
    %c0_3 = arith.constant 0 : index
    %7 = vector.load %arg7[%6, %c0_2, %c0_3] : memref<2x6x32xf32, #tpu.memory_space<vmem>>, vector<1x6x32xf32>
    %8 = vector.shape_cast %7 : vector<1x6x32xf32> to vector<6x32xf32>
    %9 = vector.extract_strided_slice %8 {offsets = [0, 0], sizes = [1, 32], strides = [1, 1]} : vector<6x32xf32> to vector<1x32xf32>
    %10 = vector.extract_strided_slice %8 {offsets = [1, 0], sizes = [1, 32], strides = [1, 1]} : vector<6x32xf32> to vector<1x32xf32>
    %11 = vector.extract_strided_slice %8 {offsets = [2, 0], sizes = [1, 32], strides = [1, 1]} : vector<6x32xf32> to vector<1x32xf32>
    %12 = vector.extract_strided_slice %8 {offsets = [3, 0], sizes = [1, 32], strides = [1, 1]} : vector<6x32xf32> to vector<1x32xf32>
    %13 = vector.extract_strided_slice %8 {offsets = [4, 0], sizes = [1, 32], strides = [1, 1]} : vector<6x32xf32> to vector<1x32xf32>
    %14 = vector.extract_strided_slice %8 {offsets = [5, 0], sizes = [1, 32], strides = [1, 1]} : vector<6x32xf32> to vector<1x32xf32>
    %cst_4 = arith.constant dense<0.000000e+00> : vector<8xf32>
    %15 = vector.multi_reduction <add>, %5, %cst_4 [1] : vector<8x32xf32> to vector<8xf32>
    %16 = vector.shape_cast %15 : vector<8xf32> to vector<8x1xf32>
    %cst_5 = arith.constant 3.200000e+01 : f32
    %17 = vector.broadcast %cst_5 : f32 to vector<8x1xf32>
    %18 = arith.divf %16, %17 : vector<8x1xf32>
    %19 = vector.broadcast %18 : vector<8x1xf32> to vector<8x32xf32>
    %20 = arith.subf %5, %19 : vector<8x32xf32>
    %21 = arith.mulf %20, %20 : vector<8x32xf32>
    %cst_6 = arith.constant dense<0.000000e+00> : vector<8xf32>
    %22 = vector.multi_reduction <add>, %21, %cst_6 [1] : vector<8x32xf32> to vector<8xf32>
    %23 = vector.shape_cast %22 : vector<8xf32> to vector<8x1xf32>
    %cst_7 = arith.constant 3.200000e+01 : f32
    %24 = vector.broadcast %cst_7 : f32 to vector<8x1xf32>
    %25 = arith.divf %23, %24 : vector<8x1xf32>
    %26 = vector.broadcast %18 : vector<8x1xf32> to vector<8x32xf32>
    %27 = arith.subf %5, %26 : vector<8x32xf32>
    %cst_8 = arith.constant 9.99999974E-6 : f32
    %28 = vector.broadcast %cst_8 : f32 to vector<8x1xf32>
    %29 = arith.addf %25, %28 : vector<8x1xf32>
    %30 = math.rsqrt %29 : vector<8x1xf32>
    %31 = vector.broadcast %30 : vector<8x1xf32> to vector<8x32xf32>
    %32 = arith.mulf %27, %31 : vector<8x32xf32>
    %33 = vector.broadcast %9 : vector<1x32xf32> to vector<8x32xf32>
    %34 = arith.mulf %32, %33 : vector<8x32xf32>
    %35 = vector.broadcast %10 : vector<1x32xf32> to vector<8x32xf32>
    %36 = arith.addf %34, %35 : vector<8x32xf32>
    %37 = arith.truncf %36 : vector<8x32xf32> to vector<8x32xbf16>
    %38 = arith.index_cast %c0_i32 : i32 to index
    %c0_9 = arith.constant 0 : index
    %c0_10 = arith.constant 0 : index
    %39 = vector.load %arg2[%38, %c0_9, %c0_10] : memref<2x32x96xbf16, #tpu.memory_space<vmem>>, vector<1x32x96xbf16>
    %40 = vector.shape_cast %39 : vector<1x32x96xbf16> to vector<32x96xbf16>
    %cst_11 = arith.constant dense<0.000000e+00> : vector<8x96xf32>
    %41 = tpu.matmul %37, %40, %cst_11 {dimension_numbers = #tpu.dot_dimension_numbers<[1], [0], [0], [1], [0, 0, 1, 1], [], []>} : vector<8x32xbf16>, vector<32x96xbf16>, vector<8x96xf32> -> vector<8x96xf32>
    %42 = vector.extract_strided_slice %41 {offsets = [0, 0], sizes = [8, 32], strides = [1, 1]} : vector<8x96xf32> to vector<8x32xf32>
    %43 = vector.shape_cast %42 : vector<8x32xf32> to vector<8x4x8xf32>
    %44 = tpu.transpose %43, [1, 0, 2] : vector<8x4x8xf32> -> vector<4x8x8xf32>
    %45 = arith.truncf %44 : vector<4x8x8xf32> to vector<4x8x8xbf16>
    %46 = vector.extract_strided_slice %41 {offsets = [0, 32], sizes = [8, 32], strides = [1, 1]} : vector<8x96xf32> to vector<8x32xf32>
    %47 = vector.shape_cast %46 : vector<8x32xf32> to vector<8x4x8xf32>
    %48 = tpu.transpose %47, [1, 0, 2] : vector<8x4x8xf32> -> vector<4x8x8xf32>
    %49 = arith.truncf %48 : vector<4x8x8xf32> to vector<4x8x8xbf16>
    %50 = vector.extract_strided_slice %41 {offsets = [0, 64], sizes = [8, 32], strides = [1, 1]} : vector<8x96xf32> to vector<8x32xf32>
    %51 = vector.shape_cast %50 : vector<8x32xf32> to vector<8x4x8xf32>
    %52 = tpu.transpose %51, [1, 0, 2] : vector<8x4x8xf32> -> vector<4x8x8xf32>
    %53 = arith.truncf %52 : vector<4x8x8xf32> to vector<4x8x8xbf16>
    "tpu.trace_start"() <{level = 10 : i32, message = "hqd,hkd->hqk"}> : () -> ()
    %cst_12 = arith.constant dense<0.000000e+00> : vector<4x8x8xf32>
    %54 = tpu.matmul %45, %49, %cst_12 {dimension_numbers = #tpu.dot_dimension_numbers<[2], [2], [1], [1], [0, 0, 0, 1, 1, 1], [0], [0]>} : vector<4x8x8xbf16>, vector<4x8x8xbf16>, vector<4x8x8xf32> -> vector<4x8x8xf32>
    "tpu.trace_stop"() : () -> ()
    %55 = vector.shape_cast %3 : vector<1x8x8xi1> to vector<1x8x8xi1>
    %56 = vector.broadcast %55 : vector<1x8x8xi1> to vector<4x8x8xi1>
    %57 = vector.broadcast %cst : f32 to vector<4x8x8xf32>
    %58 = arith.select %56, %54, %57 : vector<4x8x8xi1>, vector<4x8x8xf32>
    %cst_13 = arith.constant dense<0xFF800000> : vector<4x8xf32>
    %59 = vector.multi_reduction <maximumf>, %58, %cst_13 [2] : vector<4x8x8xf32> to vector<4x8xf32>
    %60 = vector.shape_cast %59 : vector<4x8xf32> to vector<4x8x1xf32>
    %61 = vector.broadcast %60 : vector<4x8x1xf32> to vector<4x8x8xf32>
    %62 = arith.subf %58, %61 : vector<4x8x8xf32>
    %63 = math.exp %62 : vector<4x8x8xf32>
    %cst_14 = arith.constant dense<0.000000e+00> : vector<4x8xf32>
    %64 = vector.multi_reduction <add>, %63, %cst_14 [2] : vector<4x8x8xf32> to vector<4x8xf32>
    %65 = vector.shape_cast %64 : vector<4x8xf32> to vector<4x8x1xf32>
    %66 = tpu.reciprocal %65 {approx = true} : vector<4x8x1xf32> -> vector<4x8x1xf32>
    %67 = arith.mulf %65, %66 : vector<4x8x1xf32>
    %cst_15 = arith.constant 2.000000e+00 : f32
    %68 = vector.broadcast %cst_15 : f32 to vector<4x8x1xf32>
    %69 = arith.subf %68, %67 : vector<4x8x1xf32>
    %70 = arith.mulf %66, %69 : vector<4x8x1xf32>
    %71 = vector.broadcast %70 : vector<4x8x1xf32> to vector<4x8x8xf32>
    %72 = arith.mulf %63, %71 : vector<4x8x8xf32>
    %73 = arith.truncf %72 : vector<4x8x8xf32> to vector<4x8x8xbf16>
    "tpu.trace_start"() <{level = 10 : i32, message = "hqk,hkd->hqd"}> : () -> ()
    %cst_16 = arith.constant dense<0.000000e+00> : vector<4x8x8xf32>
    %74 = tpu.matmul %73, %53, %cst_16 {dimension_numbers = #tpu.dot_dimension_numbers<[2], [1], [1], [2], [0, 0, 0, 1, 1, 2], [0], [0]>} : vector<4x8x8xbf16>, vector<4x8x8xbf16>, vector<4x8x8xf32> -> vector<4x8x8xf32>
    "tpu.trace_stop"() : () -> ()
    %75 = tpu.transpose %74, [1, 0, 2] : vector<4x8x8xf32> -> vector<8x4x8xf32>
    %76 = vector.shape_cast %75 : vector<8x4x8xf32> to vector<8x32xf32>
    %77 = arith.truncf %76 : vector<8x32xf32> to vector<8x32xbf16>
    %78 = arith.index_cast %c0_i32 : i32 to index
    %c0_17 = arith.constant 0 : index
    %c0_18 = arith.constant 0 : index
    %79 = vector.load %arg3[%78, %c0_17, %c0_18] : memref<2x32x32xbf16, #tpu.memory_space<vmem>>, vector<1x32x32xbf16>
    %80 = vector.shape_cast %79 : vector<1x32x32xbf16> to vector<32x32xbf16>
    %cst_19 = arith.constant dense<0.000000e+00> : vector<8x32xf32>
    %81 = tpu.matmul %77, %80, %cst_19 {dimension_numbers = #tpu.dot_dimension_numbers<[1], [0], [0], [1], [0, 0, 1, 1], [], []>} : vector<8x32xbf16>, vector<32x32xbf16>, vector<8x32xf32> -> vector<8x32xf32>
    %82 = vector.broadcast %11 : vector<1x32xf32> to vector<8x32xf32>
    %83 = arith.addf %81, %82 : vector<8x32xf32>
    %84 = arith.addf %5, %83 : vector<8x32xf32>
    %cst_20 = arith.constant dense<0.000000e+00> : vector<8xf32>
    %85 = vector.multi_reduction <add>, %84, %cst_20 [1] : vector<8x32xf32> to vector<8xf32>
    %86 = vector.shape_cast %85 : vector<8xf32> to vector<8x1xf32>
    %cst_21 = arith.constant 3.200000e+01 : f32
    %87 = vector.broadcast %cst_21 : f32 to vector<8x1xf32>
    %88 = arith.divf %86, %87 : vector<8x1xf32>
    %89 = vector.broadcast %88 : vector<8x1xf32> to vector<8x32xf32>
    %90 = arith.subf %84, %89 : vector<8x32xf32>
    %91 = arith.mulf %90, %90 : vector<8x32xf32>
    %cst_22 = arith.constant dense<0.000000e+00> : vector<8xf32>
    %92 = vector.multi_reduction <add>, %91, %cst_22 [1] : vector<8x32xf32> to vector<8xf32>
    %93 = vector.shape_cast %92 : vector<8xf32> to vector<8x1xf32>
    %cst_23 = arith.constant 3.200000e+01 : f32
    %94 = vector.broadcast %cst_23 : f32 to vector<8x1xf32>
    %95 = arith.divf %93, %94 : vector<8x1xf32>
    %96 = vector.broadcast %88 : vector<8x1xf32> to vector<8x32xf32>
    %97 = arith.subf %84, %96 : vector<8x32xf32>
    %cst_24 = arith.constant 9.99999974E-6 : f32
    %98 = vector.broadcast %cst_24 : f32 to vector<8x1xf32>
    %99 = arith.addf %95, %98 : vector<8x1xf32>
    %100 = math.rsqrt %99 : vector<8x1xf32>
    %101 = vector.broadcast %100 : vector<8x1xf32> to vector<8x32xf32>
    %102 = arith.mulf %97, %101 : vector<8x32xf32>
    %103 = vector.broadcast %12 : vector<1x32xf32> to vector<8x32xf32>
    %104 = arith.mulf %102, %103 : vector<8x32xf32>
    %105 = vector.broadcast %13 : vector<1x32xf32> to vector<8x32xf32>
    %106 = arith.addf %104, %105 : vector<8x32xf32>
    %107 = arith.truncf %106 : vector<8x32xf32> to vector<8x32xbf16>
    %108 = arith.index_cast %c0_i32 : i32 to index
    %c0_25 = arith.constant 0 : index
    %c0_26 = arith.constant 0 : index
    %109 = vector.load %arg4[%108, %c0_25, %c0_26] : memref<2x32x64xbf16, #tpu.memory_space<vmem>>, vector<1x32x64xbf16>
    %110 = vector.shape_cast %109 : vector<1x32x64xbf16> to vector<32x64xbf16>
    %cst_27 = arith.constant dense<0.000000e+00> : vector<8x64xf32>
    %111 = tpu.matmul %107, %110, %cst_27 {dimension_numbers = #tpu.dot_dimension_numbers<[1], [0], [0], [1], [0, 0, 1, 1], [], []>} : vector<8x32xbf16>, vector<32x64xbf16>, vector<8x64xf32> -> vector<8x64xf32>
    %112 = arith.index_cast %c0_i32 : i32 to index
    %c0_28 = arith.constant 0 : index
    %c0_29 = arith.constant 0 : index
    %113 = vector.load %arg5[%112, %c0_28, %c0_29] : memref<2x1x64xf32, #tpu.memory_space<vmem>>, vector<1x1x64xf32>
    %114 = vector.shape_cast %113 : vector<1x1x64xf32> to vector<1x64xf32>
    %115 = vector.broadcast %114 : vector<1x64xf32> to vector<8x64xf32>
    %116 = arith.addf %111, %115 : vector<8x64xf32>
    %cst_30 = arith.constant 0.000000e+00 : f32
    %117 = vector.broadcast %cst_30 : f32 to vector<8x64xf32>
    %118 = arith.maximumf %116, %117 : vector<8x64xf32>
    %119 = arith.truncf %118 : vector<8x64xf32> to vector<8x64xbf16>
    %120 = arith.index_cast %c0_i32 : i32 to index
    %c0_31 = arith.constant 0 : index
    %c0_32 = arith.constant 0 : index
    %121 = vector.load %arg6[%120, %c0_31, %c0_32] : memref<2x64x32xbf16, #tpu.memory_space<vmem>>, vector<1x64x32xbf16>
    %122 = vector.shape_cast %121 : vector<1x64x32xbf16> to vector<64x32xbf16>
    %cst_33 = arith.constant dense<0.000000e+00> : vector<8x32xf32>
    %123 = tpu.matmul %119, %122, %cst_33 {dimension_numbers = #tpu.dot_dimension_numbers<[1], [0], [0], [1], [0, 0, 1, 1], [], []>} : vector<8x64xbf16>, vector<64x32xbf16>, vector<8x32xf32> -> vector<8x32xf32>
    %124 = vector.broadcast %14 : vector<1x32xf32> to vector<8x32xf32>
    %125 = arith.addf %123, %124 : vector<8x32xf32>
    %126 = arith.addf %84, %125 : vector<8x32xf32>
    %c1_i32 = arith.constant 1 : i32
    %127 = arith.index_cast %c1_i32 : i32 to index
    %c0_34 = arith.constant 0 : index
    %c0_35 = arith.constant 0 : index
    %128 = vector.load %arg7[%127, %c0_34, %c0_35] : memref<2x6x32xf32, #tpu.memory_space<vmem>>, vector<1x6x32xf32>
    %129 = vector.shape_cast %128 : vector<1x6x32xf32> to vector<6x32xf32>
    %130 = vector.extract_strided_slice %129 {offsets = [0, 0], sizes = [1, 32], strides = [1, 1]} : vector<6x32xf32> to vector<1x32xf32>
    %131 = vector.extract_strided_slice %129 {offsets = [1, 0], sizes = [1, 32], strides = [1, 1]} : vector<6x32xf32> to vector<1x32xf32>
    %132 = vector.extract_strided_slice %129 {offsets = [2, 0], sizes = [1, 32], strides = [1, 1]} : vector<6x32xf32> to vector<1x32xf32>
    %133 = vector.extract_strided_slice %129 {offsets = [3, 0], sizes = [1, 32], strides = [1, 1]} : vector<6x32xf32> to vector<1x32xf32>
    %134 = vector.extract_strided_slice %129 {offsets = [4, 0], sizes = [1, 32], strides = [1, 1]} : vector<6x32xf32> to vector<1x32xf32>
    %135 = vector.extract_strided_slice %129 {offsets = [5, 0], sizes = [1, 32], strides = [1, 1]} : vector<6x32xf32> to vector<1x32xf32>
    %cst_36 = arith.constant dense<0.000000e+00> : vector<8xf32>
    %136 = vector.multi_reduction <add>, %126, %cst_36 [1] : vector<8x32xf32> to vector<8xf32>
    %137 = vector.shape_cast %136 : vector<8xf32> to vector<8x1xf32>
    %cst_37 = arith.constant 3.200000e+01 : f32
    %138 = vector.broadcast %cst_37 : f32 to vector<8x1xf32>
    %139 = arith.divf %137, %138 : vector<8x1xf32>
    %140 = vector.broadcast %139 : vector<8x1xf32> to vector<8x32xf32>
    %141 = arith.subf %126, %140 : vector<8x32xf32>
    %142 = arith.mulf %141, %141 : vector<8x32xf32>
    %cst_38 = arith.constant dense<0.000000e+00> : vector<8xf32>
    %143 = vector.multi_reduction <add>, %142, %cst_38 [1] : vector<8x32xf32> to vector<8xf32>
    %144 = vector.shape_cast %143 : vector<8xf32> to vector<8x1xf32>
    %cst_39 = arith.constant 3.200000e+01 : f32
    %145 = vector.broadcast %cst_39 : f32 to vector<8x1xf32>
    %146 = arith.divf %144, %145 : vector<8x1xf32>
    %147 = vector.broadcast %139 : vector<8x1xf32> to vector<8x32xf32>
    %148 = arith.subf %126, %147 : vector<8x32xf32>
    %cst_40 = arith.constant 9.99999974E-6 : f32
    %149 = vector.broadcast %cst_40 : f32 to vector<8x1xf32>
    %150 = arith.addf %146, %149 : vector<8x1xf32>
    %151 = math.rsqrt %150 : vector<8x1xf32>
    %152 = vector.broadcast %151 : vector<8x1xf32> to vector<8x32xf32>
    %153 = arith.mulf %148, %152 : vector<8x32xf32>
    %154 = vector.broadcast %130 : vector<1x32xf32> to vector<8x32xf32>
    %155 = arith.mulf %153, %154 : vector<8x32xf32>
    %156 = vector.broadcast %131 : vector<1x32xf32> to vector<8x32xf32>
    %157 = arith.addf %155, %156 : vector<8x32xf32>
    %158 = arith.truncf %157 : vector<8x32xf32> to vector<8x32xbf16>
    %159 = arith.index_cast %c1_i32 : i32 to index
    %c0_41 = arith.constant 0 : index
    %c0_42 = arith.constant 0 : index
    %160 = vector.load %arg2[%159, %c0_41, %c0_42] : memref<2x32x96xbf16, #tpu.memory_space<vmem>>, vector<1x32x96xbf16>
    %161 = vector.shape_cast %160 : vector<1x32x96xbf16> to vector<32x96xbf16>
    %cst_43 = arith.constant dense<0.000000e+00> : vector<8x96xf32>
    %162 = tpu.matmul %158, %161, %cst_43 {dimension_numbers = #tpu.dot_dimension_numbers<[1], [0], [0], [1], [0, 0, 1, 1], [], []>} : vector<8x32xbf16>, vector<32x96xbf16>, vector<8x96xf32> -> vector<8x96xf32>
    %163 = vector.extract_strided_slice %162 {offsets = [0, 0], sizes = [8, 32], strides = [1, 1]} : vector<8x96xf32> to vector<8x32xf32>
    %164 = vector.shape_cast %163 : vector<8x32xf32> to vector<8x4x8xf32>
    %165 = tpu.transpose %164, [1, 0, 2] : vector<8x4x8xf32> -> vector<4x8x8xf32>
    %166 = arith.truncf %165 : vector<4x8x8xf32> to vector<4x8x8xbf16>
    %167 = vector.extract_strided_slice %162 {offsets = [0, 32], sizes = [8, 32], strides = [1, 1]} : vector<8x96xf32> to vector<8x32xf32>
    %168 = vector.shape_cast %167 : vector<8x32xf32> to vector<8x4x8xf32>
    %169 = tpu.transpose %168, [1, 0, 2] : vector<8x4x8xf32> -> vector<4x8x8xf32>
    %170 = arith.truncf %169 : vector<4x8x8xf32> to vector<4x8x8xbf16>
    %171 = vector.extract_strided_slice %162 {offsets = [0, 64], sizes = [8, 32], strides = [1, 1]} : vector<8x96xf32> to vector<8x32xf32>
    %172 = vector.shape_cast %171 : vector<8x32xf32> to vector<8x4x8xf32>
    %173 = tpu.transpose %172, [1, 0, 2] : vector<8x4x8xf32> -> vector<4x8x8xf32>
    %174 = arith.truncf %173 : vector<4x8x8xf32> to vector<4x8x8xbf16>
    "tpu.trace_start"() <{level = 10 : i32, message = "hqd,hkd->hqk"}> : () -> ()
    %cst_44 = arith.constant dense<0.000000e+00> : vector<4x8x8xf32>
    %175 = tpu.matmul %166, %170, %cst_44 {dimension_numbers = #tpu.dot_dimension_numbers<[2], [2], [1], [1], [0, 0, 0, 1, 1, 1], [0], [0]>} : vector<4x8x8xbf16>, vector<4x8x8xbf16>, vector<4x8x8xf32> -> vector<4x8x8xf32>
    "tpu.trace_stop"() : () -> ()
    %176 = vector.shape_cast %3 : vector<1x8x8xi1> to vector<1x8x8xi1>
    %177 = vector.broadcast %176 : vector<1x8x8xi1> to vector<4x8x8xi1>
    %178 = vector.broadcast %cst : f32 to vector<4x8x8xf32>
    %179 = arith.select %177, %175, %178 : vector<4x8x8xi1>, vector<4x8x8xf32>
    %cst_45 = arith.constant dense<0xFF800000> : vector<4x8xf32>
    %180 = vector.multi_reduction <maximumf>, %179, %cst_45 [2] : vector<4x8x8xf32> to vector<4x8xf32>
    %181 = vector.shape_cast %180 : vector<4x8xf32> to vector<4x8x1xf32>
    %182 = vector.broadcast %181 : vector<4x8x1xf32> to vector<4x8x8xf32>
    %183 = arith.subf %179, %182 : vector<4x8x8xf32>
    %184 = math.exp %183 : vector<4x8x8xf32>
    %cst_46 = arith.constant dense<0.000000e+00> : vector<4x8xf32>
    %185 = vector.multi_reduction <add>, %184, %cst_46 [2] : vector<4x8x8xf32> to vector<4x8xf32>
    %186 = vector.shape_cast %185 : vector<4x8xf32> to vector<4x8x1xf32>
    %187 = tpu.reciprocal %186 {approx = true} : vector<4x8x1xf32> -> vector<4x8x1xf32>
    %188 = arith.mulf %186, %187 : vector<4x8x1xf32>
    %cst_47 = arith.constant 2.000000e+00 : f32
    %189 = vector.broadcast %cst_47 : f32 to vector<4x8x1xf32>
    %190 = arith.subf %189, %188 : vector<4x8x1xf32>
    %191 = arith.mulf %187, %190 : vector<4x8x1xf32>
    %192 = vector.broadcast %191 : vector<4x8x1xf32> to vector<4x8x8xf32>
    %193 = arith.mulf %184, %192 : vector<4x8x8xf32>
    %194 = arith.truncf %193 : vector<4x8x8xf32> to vector<4x8x8xbf16>
    "tpu.trace_start"() <{level = 10 : i32, message = "hqk,hkd->hqd"}> : () -> ()
    %cst_48 = arith.constant dense<0.000000e+00> : vector<4x8x8xf32>
    %195 = tpu.matmul %194, %174, %cst_48 {dimension_numbers = #tpu.dot_dimension_numbers<[2], [1], [1], [2], [0, 0, 0, 1, 1, 2], [0], [0]>} : vector<4x8x8xbf16>, vector<4x8x8xbf16>, vector<4x8x8xf32> -> vector<4x8x8xf32>
    "tpu.trace_stop"() : () -> ()
    %196 = tpu.transpose %195, [1, 0, 2] : vector<4x8x8xf32> -> vector<8x4x8xf32>
    %197 = vector.shape_cast %196 : vector<8x4x8xf32> to vector<8x32xf32>
    %198 = arith.truncf %197 : vector<8x32xf32> to vector<8x32xbf16>
    %199 = arith.index_cast %c1_i32 : i32 to index
    %c0_49 = arith.constant 0 : index
    %c0_50 = arith.constant 0 : index
    %200 = vector.load %arg3[%199, %c0_49, %c0_50] : memref<2x32x32xbf16, #tpu.memory_space<vmem>>, vector<1x32x32xbf16>
    %201 = vector.shape_cast %200 : vector<1x32x32xbf16> to vector<32x32xbf16>
    %cst_51 = arith.constant dense<0.000000e+00> : vector<8x32xf32>
    %202 = tpu.matmul %198, %201, %cst_51 {dimension_numbers = #tpu.dot_dimension_numbers<[1], [0], [0], [1], [0, 0, 1, 1], [], []>} : vector<8x32xbf16>, vector<32x32xbf16>, vector<8x32xf32> -> vector<8x32xf32>
    %203 = vector.broadcast %132 : vector<1x32xf32> to vector<8x32xf32>
    %204 = arith.addf %202, %203 : vector<8x32xf32>
    %205 = arith.addf %126, %204 : vector<8x32xf32>
    %cst_52 = arith.constant dense<0.000000e+00> : vector<8xf32>
    %206 = vector.multi_reduction <add>, %205, %cst_52 [1] : vector<8x32xf32> to vector<8xf32>
    %207 = vector.shape_cast %206 : vector<8xf32> to vector<8x1xf32>
    %cst_53 = arith.constant 3.200000e+01 : f32
    %208 = vector.broadcast %cst_53 : f32 to vector<8x1xf32>
    %209 = arith.divf %207, %208 : vector<8x1xf32>
    %210 = vector.broadcast %209 : vector<8x1xf32> to vector<8x32xf32>
    %211 = arith.subf %205, %210 : vector<8x32xf32>
    %212 = arith.mulf %211, %211 : vector<8x32xf32>
    %cst_54 = arith.constant dense<0.000000e+00> : vector<8xf32>
    %213 = vector.multi_reduction <add>, %212, %cst_54 [1] : vector<8x32xf32> to vector<8xf32>
    %214 = vector.shape_cast %213 : vector<8xf32> to vector<8x1xf32>
    %cst_55 = arith.constant 3.200000e+01 : f32
    %215 = vector.broadcast %cst_55 : f32 to vector<8x1xf32>
    %216 = arith.divf %214, %215 : vector<8x1xf32>
    %217 = vector.broadcast %209 : vector<8x1xf32> to vector<8x32xf32>
    %218 = arith.subf %205, %217 : vector<8x32xf32>
    %cst_56 = arith.constant 9.99999974E-6 : f32
    %219 = vector.broadcast %cst_56 : f32 to vector<8x1xf32>
    %220 = arith.addf %216, %219 : vector<8x1xf32>
    %221 = math.rsqrt %220 : vector<8x1xf32>
    %222 = vector.broadcast %221 : vector<8x1xf32> to vector<8x32xf32>
    %223 = arith.mulf %218, %222 : vector<8x32xf32>
    %224 = vector.broadcast %133 : vector<1x32xf32> to vector<8x32xf32>
    %225 = arith.mulf %223, %224 : vector<8x32xf32>
    %226 = vector.broadcast %134 : vector<1x32xf32> to vector<8x32xf32>
    %227 = arith.addf %225, %226 : vector<8x32xf32>
    %228 = arith.truncf %227 : vector<8x32xf32> to vector<8x32xbf16>
    %229 = arith.index_cast %c1_i32 : i32 to index
    %c0_57 = arith.constant 0 : index
    %c0_58 = arith.constant 0 : index
    %230 = vector.load %arg4[%229, %c0_57, %c0_58] : memref<2x32x64xbf16, #tpu.memory_space<vmem>>, vector<1x32x64xbf16>
    %231 = vector.shape_cast %230 : vector<1x32x64xbf16> to vector<32x64xbf16>
    %cst_59 = arith.constant dense<0.000000e+00> : vector<8x64xf32>
    %232 = tpu.matmul %228, %231, %cst_59 {dimension_numbers = #tpu.dot_dimension_numbers<[1], [0], [0], [1], [0, 0, 1, 1], [], []>} : vector<8x32xbf16>, vector<32x64xbf16>, vector<8x64xf32> -> vector<8x64xf32>
    %233 = arith.index_cast %c1_i32 : i32 to index
    %c0_60 = arith.constant 0 : index
    %c0_61 = arith.constant 0 : index
    %234 = vector.load %arg5[%233, %c0_60, %c0_61] : memref<2x1x64xf32, #tpu.memory_space<vmem>>, vector<1x1x64xf32>
    %235 = vector.shape_cast %234 : vector<1x1x64xf32> to vector<1x64xf32>
    %236 = vector.broadcast %235 : vector<1x64xf32> to vector<8x64xf32>
    %237 = arith.addf %232, %236 : vector<8x64xf32>
    %cst_62 = arith.constant 0.000000e+00 : f32
    %238 = vector.broadcast %cst_62 : f32 to vector<8x64xf32>
    %239 = arith.maximumf %237, %238 : vector<8x64xf32>
    %240 = arith.truncf %239 : vector<8x64xf32> to vector<8x64xbf16>
    %241 = arith.index_cast %c1_i32 : i32 to index
    %c0_63 = arith.constant 0 : index
    %c0_64 = arith.constant 0 : index
    %242 = vector.load %arg6[%241, %c0_63, %c0_64] : memref<2x64x32xbf16, #tpu.memory_space<vmem>>, vector<1x64x32xbf16>
    %243 = vector.shape_cast %242 : vector<1x64x32xbf16> to vector<64x32xbf16>
    %cst_65 = arith.constant dense<0.000000e+00> : vector<8x32xf32>
    %244 = tpu.matmul %240, %243, %cst_65 {dimension_numbers = #tpu.dot_dimension_numbers<[1], [0], [0], [1], [0, 0, 1, 1], [], []>} : vector<8x64xbf16>, vector<64x32xbf16>, vector<8x32xf32> -> vector<8x32xf32>
    %245 = vector.broadcast %135 : vector<1x32xf32> to vector<8x32xf32>
    %246 = arith.addf %244, %245 : vector<8x32xf32>
    %247 = arith.addf %205, %246 : vector<8x32xf32>
    %c2_i32 = arith.constant 2 : i32
    %c0_66 = arith.constant 0 : index
    %c0_67 = arith.constant 0 : index
    %248 = vector.load %arg8[%c0_66, %c0_67] : memref<2x32xf32, #tpu.memory_space<vmem>>, vector<2x32xf32>
    %249 = vector.extract_strided_slice %248 {offsets = [0, 0], sizes = [1, 32], strides = [1, 1]} : vector<2x32xf32> to vector<1x32xf32>
    %250 = vector.extract_strided_slice %248 {offsets = [1, 0], sizes = [1, 32], strides = [1, 1]} : vector<2x32xf32> to vector<1x32xf32>
    %cst_68 = arith.constant dense<0.000000e+00> : vector<8xf32>
    %251 = vector.multi_reduction <add>, %247, %cst_68 [1] : vector<8x32xf32> to vector<8xf32>
    %252 = vector.shape_cast %251 : vector<8xf32> to vector<8x1xf32>
    %cst_69 = arith.constant 3.200000e+01 : f32
    %253 = vector.broadcast %cst_69 : f32 to vector<8x1xf32>
    %254 = arith.divf %252, %253 : vector<8x1xf32>
    %255 = vector.broadcast %254 : vector<8x1xf32> to vector<8x32xf32>
    %256 = arith.subf %247, %255 : vector<8x32xf32>
    %257 = arith.mulf %256, %256 : vector<8x32xf32>
    %cst_70 = arith.constant dense<0.000000e+00> : vector<8xf32>
    %258 = vector.multi_reduction <add>, %257, %cst_70 [1] : vector<8x32xf32> to vector<8xf32>
    %259 = vector.shape_cast %258 : vector<8xf32> to vector<8x1xf32>
    %cst_71 = arith.constant 3.200000e+01 : f32
    %260 = vector.broadcast %cst_71 : f32 to vector<8x1xf32>
    %261 = arith.divf %259, %260 : vector<8x1xf32>
    %262 = vector.broadcast %254 : vector<8x1xf32> to vector<8x32xf32>
    %263 = arith.subf %247, %262 : vector<8x32xf32>
    %cst_72 = arith.constant 9.99999974E-6 : f32
    %264 = vector.broadcast %cst_72 : f32 to vector<8x1xf32>
    %265 = arith.addf %261, %264 : vector<8x1xf32>
    %266 = math.rsqrt %265 : vector<8x1xf32>
    %267 = vector.broadcast %266 : vector<8x1xf32> to vector<8x32xf32>
    %268 = arith.mulf %263, %267 : vector<8x32xf32>
    %269 = vector.broadcast %249 : vector<1x32xf32> to vector<8x32xf32>
    %270 = arith.mulf %268, %269 : vector<8x32xf32>
    %271 = vector.broadcast %250 : vector<1x32xf32> to vector<8x32xf32>
    %272 = arith.addf %270, %271 : vector<8x32xf32>
    %273 = arith.truncf %272 : vector<8x32xf32> to vector<8x32xbf16>
    %c0_73 = arith.constant 0 : index
    %c0_74 = arith.constant 0 : index
    %274 = vector.load %arg9[%c0_73, %c0_74] : memref<32x128xbf16, #tpu.memory_space<vmem>>, vector<32x128xbf16>
    %cst_75 = arith.constant dense<0.000000e+00> : vector<8x128xf32>
    %275 = tpu.matmul %273, %274, %cst_75 {dimension_numbers = #tpu.dot_dimension_numbers<[1], [0], [0], [1], [0, 0, 1, 1], [], []>} : vector<8x32xbf16>, vector<32x128xbf16>, vector<8x128xf32> -> vector<8x128xf32>
    %c0_76 = arith.constant 0 : index
    %c0_77 = arith.constant 0 : index
    %276 = vector.load %arg10[%c0_76, %c0_77] : memref<1x128xf32, #tpu.memory_space<vmem>>, vector<1x128xf32>
    %277 = vector.broadcast %276 : vector<1x128xf32> to vector<8x128xf32>
    %278 = arith.addf %275, %277 : vector<8x128xf32>
    %c0_78 = arith.constant 0 : index
    %c0_79 = arith.constant 0 : index
    %c0_80 = arith.constant 0 : index
    %279 = vector.load %arg11[%c0_78, %c0_79, %c0_80] : memref<1x8x128xf32, #tpu.memory_space<vmem>>, vector<1x8x128xf32>
    %280 = vector.shape_cast %279 : vector<1x8x128xf32> to vector<8x128xf32>
    %281 = vector.shape_cast %278 : vector<8x128xf32> to vector<1x8x128xf32>
    tpu.vector_store %arg11[%c0_78, %c0_79, %c0_80], %281 {strides = array<i32>} : memref<1x8x128xf32, #tpu.memory_space<vmem>>, vector<1x8x128xf32>,
    return
  }
  func.func @transform_0(%arg0: i32) -> (i32, i32, i32) {
    %c0_i32 = arith.constant 0 : i32
    %c0_i32_0 = arith.constant 0 : i32
    %c0_i32_1 = arith.constant 0 : i32
    return %arg0, %c0_i32, %c0_i32_0 : i32, i32, i32
  }
  func.func @transform_1(%arg0: i32) -> (i32, i32, i32) {
    %c0_i32 = arith.constant 0 : i32
    %c0_i32_0 = arith.constant 0 : i32
    %c0_i32_1 = arith.constant 0 : i32
    %c0_i32_2 = arith.constant 0 : i32
    return %c0_i32, %c0_i32_0, %c0_i32_1 : i32, i32, i32
  }
  func.func @transform_2(%arg0: i32) -> (i32, i32, i32) {
    %c0_i32 = arith.constant 0 : i32
    %c0_i32_0 = arith.constant 0 : i32
    %c0_i32_1 = arith.constant 0 : i32
    %c0_i32_2 = arith.constant 0 : i32
    return %c0_i32, %c0_i32_0, %c0_i32_1 : i32, i32, i32
  }
  func.func @transform_3(%arg0: i32) -> (i32, i32, i32) {
    %c0_i32 = arith.constant 0 : i32
    %c0_i32_0 = arith.constant 0 : i32
    %c0_i32_1 = arith.constant 0 : i32
    %c0_i32_2 = arith.constant 0 : i32
    return %c0_i32, %c0_i32_0, %c0_i32_1 : i32, i32, i32
  }
  func.func @transform_4(%arg0: i32) -> (i32, i32, i32) {
    %c0_i32 = arith.constant 0 : i32
    %c0_i32_0 = arith.constant 0 : i32
    %c0_i32_1 = arith.constant 0 : i32
    %c0_i32_2 = arith.constant 0 : i32
    return %c0_i32, %c0_i32_0, %c0_i32_1 : i32, i32, i32
  }
  func.func @transform_5(%arg0: i32) -> (i32, i32, i32) {
    %c0_i32 = arith.constant 0 : i32
    %c0_i32_0 = arith.constant 0 : i32
    %c0_i32_1 = arith.constant 0 : i32
    %c0_i32_2 = arith.constant 0 : i32
    return %c0_i32, %c0_i32_0, %c0_i32_1 : i32, i32, i32
  }
  func.func @transform_6(%arg0: i32) -> (i32, i32, i32) {
    %c0_i32 = arith.constant 0 : i32
    %c0_i32_0 = arith.constant 0 : i32
    %c0_i32_1 = arith.constant 0 : i32
    %c0_i32_2 = arith.constant 0 : i32
    return %c0_i32, %c0_i32_0, %c0_i32_1 : i32, i32, i32
  }
  func.func @transform_7(%arg0: i32) -> (i32, i32) {
    %c0_i32 = arith.constant 0 : i32
    %c0_i32_0 = arith.constant 0 : i32
    %c0_i32_1 = arith.constant 0 : i32
    return %c0_i32, %c0_i32_0 : i32, i32
  }
  func.func @transform_8(%arg0: i32) -> (i32, i32) {
    %c0_i32 = arith.constant 0 : i32
    %c0_i32_0 = arith.constant 0 : i32
    %c0_i32_1 = arith.constant 0 : i32
    return %c0_i32, %c0_i32_0 : i32, i32
  }
  func.func @transform_9(%arg0: i32) -> (i32, i32) {
    %c0_i32 = arith.constant 0 : i32
    %c0_i32_0 = arith.constant 0 : i32
    %c0_i32_1 = arith.constant 0 : i32
    return %c0_i32, %c0_i32_0 : i32, i32
  }
  func.func @transform_10(%arg0: i32) -> (i32, i32, i32) {
    %c0_i32 = arith.constant 0 : i32
    %c0_i32_0 = arith.constant 0 : i32
    %c0_i32_1 = arith.constant 0 : i32
    return %arg0, %c0_i32, %c0_i32_0 : i32, i32, i32
  }
}

</mosaic_0001>

<bundles_post_ra>
// kernel: tpu_custom_call.1
= control target key start
LH: loop header
LB: loop body
LE: loop exit
PB: predicated region body
PF: predicated region fallthrough
CT: control target
= control target key end

     0   :  { %s4726_s0 = inlined_call_operand.hbm [shape: f32[2,8,32], index: 0, kind: input, shape index: {}]   ;;  %s4727_s1 = inlined_call_operand.vmem [shape: bf16[2,32,96], index: 1, kind: input, shape index: {}]   ;;  %s4728_s2 = inlined_call_operand.vmem [shape: bf16[2,32,32], index: 2, kind: input, shape index: {}]   ;;  %s4729_s3 = inlined_call_operand.vmem [shape: bf16[2,32,64], index: 3, kind: input, shape index: {}]   ;;  %s4730_s4 = inlined_call_operand.vmem [shape: f32[2,1,64], index: 4, kind: input, shape index: {}]   ;;  %s4731_s5 = inlined_call_operand.vmem [shape: bf16[2,64,32], index: 5, kind: input, shape index: {}]   ;;  %s4732_s6 = inlined_call_operand.vmem [shape: f32[2,6,32], index: 6, kind: input, shape index: {}]   ;;  %s4733_s7 = inlined_call_operand.vmem [shape: f32[2,32], index: 7, kind: input, shape index: {}]   ;;  %s4734_s8 = inlined_call_operand.hbm [shape: bf16[32,128], index: 8, kind: input, shape index: {}]   ;;  %s4735_s9 = inlined_call_operand.vmem [shape: f32[1,128], index: 9, kind: input, shape index: {}]   ;;  %s4736_s10 = inlined_call_operand.hbm [shape: f32[2,8,128], index: 10, kind: output, shape index: {}]  }
   0x1   :  { %4747 = sst [smem:[#allocation15_spill]] %s4734_s8 }
   0x2   :  { %15 = vsyncpa [#allocation3], 0 }
   0x3   :  { %17 = vsyncpa [#allocation3 + $0x1], 0 }
   0x4   :  { %18 = vsyncpa [#allocation6], 0 }
   0x5   :  { %19 = vsyncpa [#allocation4], 0 }
   0x6   :  { %21 = vsyncpa [#allocation4 + $0x1], 0  ;;  %s3986_s13 = smov 0   ;;  %s3988_s14 = smov 0  }
   0x7   :  { %s3990_s15 = smov 0   ;;  %s3992_s16 = smov 0  }
   0x8 LB: > { %4748 = sst [smem:[#allocation11_spill]] %s3900_s13  ;;  %s4007_s17 = sadd.s32 4294967295, %s3912_s16   ;;  %s3912_s16 = sphi %s3992_s16, %s4773_s16   ;;  %s3908_s15 = sphi %s3990_s15, %s4777_s15   ;;  %s3904_s14 = sphi %s3988_s14, %s4776_s14   ;;  %s3900_s13 = sphi %s3986_s13, %s4775_s13  }
   0x9   : > { %s3314_s18 = sadd.s32 4294967294, %s3912_s16   ;;  %p47_p0 = scmp.ne.s32.totalorder %s3904_s14, %s3900_s13 }
   0xa   : > { %p4741_p1 = scmp.eq.s32.totalorder %s4007_s17, 0  ;;  %p266_p3 = scmp.eq.s32.totalorder %s3314_s18, 1 }
   0xb   : > { %p3315_p5 = scmp.ge.s32.totalorder %s3912_s16, 1  ;;  %p273_p7 = scmp.lt.s32.totalorder %s3912_s16, 3 }
   0xc   : > { %p4016_p4 = por %p4741_p1, %p47_p0  ;;  %p4021_p6 = por %p266_p3, %p47_p0 }
   0xd   : > { %p4026_p8 = pnand %p3315_p5, %p273_p7  ;;  %s3914_s22 = smov [#allocation5]  }
   0xe   : > { %s4749_s19 = scalar_select %p4016_p4, 1, 0 }
   0xf   : > { %s4750_s20 = scalar_select %p4021_p6, 1, 0 }
  0x10   : > { %s4752_s21 = scalar_select %p4026_p8, 1, 0 }
  0x11   : > { %4751 = sst [smem:[#allocation12_spill]] %s4750_s20  ;;  %s306_s23 = sshll.u32 %s3914_s22, 4  ;;  %s307_s23 = int_to_ptr.vmem [resolvable:$true] %s306_s23 }
  0x12   : > { %p3663_p9 = pneg %p4026_p8  ;;  %s4040_s25 = sadd.s32 1, %s3912_s16  }
  0x13   : > { %4754 = sst [smem:[#allocation13_spill]] %s4040_s25  ;;  %s34_s26 = sadd.s32 1, %s3908_s15 }
  0x14   : > { %p4035_p11 = pnand %p3663_p9, %p4741_p1  ;;  %s31_s27 = ssub.s32 %s3912_s16, %s4040_s25 }
  0x15   : > { %s3801_s28 = scalar_lea.vmem %s307_s23, 256  ;;  %p3809_p5 = scmp.lt.s32.totalorder %s307_s23, %s307_s23 }
  0x16   : > { %p3792_p12 = pneg %p4035_p11  ;;  %p3802_p13 = scmp.ne.s32.totalorder %s307_s23, %s3801_s28 }
  0x17   : > { %p3810_p7 = scmp.lt.s32.totalorder %s3801_s28, %s3801_s28 }
  0x18   : > { %p3804_p0 = pnand %p3802_p13, %p3792_p12 }
  0x19   : > { %p3811_p10 = por %p3810_p7, %p3809_p5 }
  0x1a   : > { %p3805_p3 = pneg %p3804_p0 }
  0x1c   : > { %p3812_p2 = pnand %p3811_p10, %p3805_p3 }
  0x1e   : > { %3815 = shalt.err (!%p3812_p2)
}
  0x1f   : > { %s3915_s29 = smov 64   ;;  %s3916_s30 = smov 4  }
  0x20   : > { %s4755_s8 = sld [smem:[#allocation15_spill]]  ;;  %p32_p9 = scmp.eq.s32.totalorder %s31_s27, 0 }
  0x21   : > { %p41_p12 = scmp.ne.s32.totalorder %s3908_s15, %s3904_s14  ;;  %p42_p10 = scmp.eq.s32.totalorder %s3912_s16, 0 }
  0x22   : > { %p3676_p2 = scmp.lt.s32.totalorder %s3912_s16, 2  ;;  %p4757_p0 = scmp.eq.s32.totalorder %s4007_s17, 1 }
  0x23   : > { %s4057_s18 = scalar_select %p32_p9, %s3908_s15, %s34_s26  }
  0x24   : > { %p43_p13 = por %p42_p10, %p41_p12  ;;  %p4061_p3 = por %p4757_p0, %p41_p12 }
  0x25   : > { %4756 = sst [smem:[#allocation14_spill]] %s4057_s18  ;;  %s323_s28 = sand.u32 1, %s3908_s15  }
  0x26   : > { %3666 = dma.hbm_to_vmem [thread:$0]  (!%p4035_p11), %s4755_s8, 256, %s307_s23, [#allocation6], %s3915_s29, %s3915_s29, %s3916_s30  }
  0x27   : > { %s4758_s22 = scalar_select %p4061_p3, 1, 0 }
  0x28   : > { %s3319_s25 = sshll.u32 %s3912_s16, 7  ;;  %s3318_s20 = sshll.u32 %s323_s28, 3 }
  0x29   : > { %s4070_s11 = scalar_lea.hbm %s4726_s0, %s3319_s25  ;;  %s327_s23 = scalar_lea.vmem [#allocation2], %s3318_s20 }
  0x2a   : > { %s334_s26 = sshll.u32 %s327_s23, 4  ;;  %p4072_p11 = pnand %p3676_p2, %p43_p13  ;;  %s335_s26 = int_to_ptr.vmem [resolvable:$true] %s334_s26 }
  0x2b   : > { %s324_s29 = scalar_lea.sflag [#allocation3], %s323_s28  ;;  %s3816_s30 = scalar_lea.hbm %s4070_s11, 128 }
  0x2c   : > { %p3817_p5 = scmp.ne.s32.totalorder %s4070_s11, %s3816_s30  ;;  %p3818_p7 = pneg %p4072_p11 }
  0x2d   : > { %s3821_s12 = scalar_lea.hbm %s4726_s0, 256  ;;  %p3822_p10 = scmp.lt.s32.totalorder %s4070_s11, %s4726_s0 }
  0x2e   : > { %p3819_p9 = pnand %p3818_p7, %p3817_p5  ;;  %p3823_p2 = scmp.lt.s32.totalorder %s3821_s12, %s3816_s30 }
  0x30   : > { %p3820_p12 = pneg %p3819_p9  ;;  %p3824_p13 = por %p3823_p2, %p3822_p10 }
  0x32   : > { %p3825_p0 = pnand %p3824_p13, %p3820_p12 }
  0x34   : > { %3828 = shalt.err (!%p3825_p0)
}
  0x35   : > { %s3829_s23 = scalar_lea.vmem %s335_s26, 128  ;;  %s3917_s28 = smov [#allocation2]  }
  0x36   : > { %p3830_p1 = scmp.ne.s32.totalorder %s335_s26, %s3829_s23  ;;  %s3834_s8 = sshll.u32 %s3917_s28, 4  ;;  %s3835_s8 = int_to_ptr.vmem [resolvable:$false] %s3834_s8 }
  0x37   : > { %s3836_s18 = scalar_lea.vmem %s3835_s8, 256  ;;  %p3837_p5 = scmp.lt.s32.totalorder %s335_s26, %s3835_s8 }
  0x38   : > { %p3832_p6 = pnand %p3830_p1, %p3818_p7  ;;  %p3838_p9 = scmp.lt.s32.totalorder %s3836_s18, %s3829_s23 }
  0x3a   : > { %p3833_p3 = pneg %p3832_p6  ;;  %p3839_p4 = por %p3838_p9, %p3837_p5 }
  0x3c   : > { %p3840_p8 = pnand %p3839_p4, %p3833_p3 }
  0x3e   : > { %3843 = shalt.err (!%p3840_p8)
}
  0x3f   : > { %3670 = dma.hbm_to_vmem [thread:$0]  (!%p4072_p11), %s4070_s11, 128, %s335_s26, %s324_s29  }
  0x40   : > { %p4760_p12 = scmp.ne.s32.totalorder %s4752_s21, 0 }
  0x41   : > { %s4093_s30 = sand.u32 (!%p4760_p12), 1, %s3904_s14   ;;  %p4761_p1 = scmp.ne.s32.totalorder (!%p4760_p12), %s4749_s19, 0 }
  0x42   : > { %343 = sbr.rel (%p4760_p12) target bundleno = 5677 (0x162d), region = 60  ;;  %s4745_s13 = sshll.u32 (!%p4760_p12), %s4093_s30, 3 }
  0x43   : > { %s346_s8 = scalar_lea.sflag (!%p4760_p12), [#allocation3], %s4093_s30  ;;  %s349_s18 = scalar_lea.vmem (!%p4760_p12), [#allocation2], %s4745_s13 }
  0x47   : > { %3887 = dma.done.wait (%p4761_p1), %s346_s8, 128  }
  0x48   : > { %3889 = vsyncadd (%p4761_p1), %s346_s8, 4294967168  ;;  %p4762_p4 = scmp.eq.s32.totalorder %s4007_s17, 0 }
  0x4a   : > { %3891 = dma.done.wait (%p4762_p4), [#allocation6], 256   ;;  %p4763_p6 = pmov %p4762_p4 }
  0x4b   : > { %vm398_vm0 = vcmask 261120   ;;  %v4107_v0 = vld [vmem:[%s349_s18] sm:$0xff]  ;;  %v3918_v8 = vmov 0.0   ;;  %vm3919_vm1 = vmmov 0   ;;  %v391_v13 = vlaneseq  ;;  %s3920_s25 = smov 104   ;;  %s3921_s12 = smov 120  }
  0x4c   : > { %3893 = vsyncadd (%p4763_p6), [#allocation6], 4294967040  ;;  %v399_v1 = vsel %vm398_vm0, %v4107_v0, 0.0  ;;  %v3726_v7 = vld [vmem:[%s4727_s1 + $0x8] sm:$0xff]   ;;  %3479 = vmatprep.subr.bf16.mxu0 %v3918_v8  ;;  %3483 = vmatprep.mubr.msk.bf16.mxu0 %vm3919_vm1, %v3918_v8  ;;  %v3727_v9 = vld [vmem:[%s4727_s1] sm:$0xff]   ;;  %s3922_s24 = smov 112  }
  0x4d   : > { %400 = vadd.xlane.f32.xlu0 %v399_v1  ;;  %3480 = vmatpush3.bf16.msra.mxu0 %v3726_v7  ;;  %v4128_v14 = vshrl.u32 %v391_v13, 7  ;;  %v4136_v16 = vld [vmem:[%s4732_s6] sm:$0x3f]  ;;  %s3923_s20 = smov 96   ;;  %v3924_v32 = vmov 1983009808  }
  0x4e   : > { %3487 = vmatprep.subr.bf16.mxu1 %v3918_v8  ;;  %3481 = vmatprep.subr.bf16.mxu0 %v3918_v8  ;;  %v496_v33 = vunpack.c.l.s4 %v3924_v32  ;;  %v3925_v36 = vmov 1934713408   ;;  %vm937_vm2 = vcmask 64512   ;;  %s3926_s23 = smov 64   ;;  %vm1191_vm4 = vcmask 1043456   ;;  %s3927_s21 = smov 16  }
  0x4f   : > { %3489 = vmatprep.mubr.msk.bf16.mxu1 %vm3919_vm1, %v3918_v8  ;;  %v4131_v15 = vsub.s32 0, %v4128_v14  ;;  %v4139_v17 = vsub.s32 1, %v4128_v14  ;;  %v528_v37 = vunpack.c.l.s4 %v3925_v36  ;;  %s3928_s11 = smov 8   ;;  %s4746_s26 = smov 24   ;;  %vm1522_vm5 = vcmask 130048  }
  0x50   : > { %v497_v34 = vunpack.c.0.s8 %v496_v33  ;;  %vm1524_vm6 = vcmask 195584   ;;  %vm1719_vm7 = vcmask 523264   ;;  %s3413_s8 = sshll.u32 %s4007_s17, 7  ;;  %s4767_s18 = sshll.u32 %s4093_s30, 3 }
  0x51   : > { %3482 = vmatpush3.bf16.msra.mxu0 %v3727_v9  ;;  %v416_v18 = vrot.slane %v4136_v16, %v4131_v15  ;;  %v421_v21 = vrot.slane %v4136_v16, %v4139_v17  ;;  %v529_v44 = vunpack.c.0.s8 %v528_v37  ;;  %s389_s19 = scalar_lea.vmem [#allocation7], %s4767_s18  ;;  %s4683_s29 = scalar_lea.hbm %s4736_s10, %s3413_s8 }
  0x52   : > { %3493 = vmatprep.subr.bf16.mxu0 %v3918_v8  ;;  %v4175_v40 = vsub.s32 %v497_v34, %v4128_v14  ;;  %s3234_s13 = sshll.u32 %s389_s19, 4  ;;  %p4768_p3 = scmp.ne.s32.totalorder %s4758_s22, 0  ;;  %s4685_s13 = int_to_ptr.vmem [resolvable:$true] %s3234_s13 }
  0x53   : > { %v4186_v50 = vsub.s32 %v529_v44, %v4128_v14  ;;  %s3844_s17 = scalar_lea.vmem %s4685_s13, 128 }
  0x54   : > { %p3845_p8 = scmp.ne.s32.totalorder %s4685_s13, %s3844_s17 }
  0x56   : > { %p3846_p11 = pnand %p3845_p8, %p4768_p3 }
  0x58   : > { %p3847_p7 = pneg %p3846_p11 }
  0xd6   : > { %v401_v2 = vpop.xlane.xlu0 %400 }
  0xd7   : > { %v403_v3 = vmul.f32 0.03125, %v401_v2 }
  0xd9   : > { %v404_v4 = vsub.f32 %v4107_v0, %v403_v3 }
  0xdb   : > { %v405_v5 = vmul.f32 %v404_v4, %v404_v4 }
  0xdd   : > { %v406_v6 = vsel %vm398_vm0, %v405_v5, 0.0 }
  0xde   : > { %407 = vadd.xlane.f32.xlu0 %v406_v6 }
 0x167   : > { %v408_v10 = vpop.xlane.xlu0 %407 }
 0x168   : > { %v409_v11 = vmul.f32 0.03125, %v408_v10 }
 0x16a   : > { %v410_v12 = vadd.f32 1e-05, %v409_v11 }
 0x16c   : > { %3748 = vrsqrt.f32 %v410_v12 }
 0x179   : > { %v3749_v19 = vpop.eup %3748 }
 0x17a   : > { %v412_v20 = vmul.f32 %v3749_v19, %v404_v4 }
 0x17c   : > { %v417_v22 = vmul.f32 %v416_v18, %v412_v20 }
 0x17e   : > { %v422_v23 = vadd.f32 %v421_v21, %v417_v22 }
 0x180   : > { %v423_v24 = vpack.c.bf16 %v422_v23, %v422_v23 }
 0x182   : > { %3484 = vmatmul.mubr.msk.bf16.vlgmr.msra.gmra.mxu0 %vm398_vm0, %v423_v24 }
 0x183   : > { %3495 = vmatprep.mubr.msk.bf16.mxu0 %vm3919_vm1, %v3918_v8 }
 0x242   : > { %v4148_v25 = vpop.f32.mrf.mxu0 }
 0x243   : > { %490 = vrot.lane.b32.xlu0 %v4148_v25, %s3920_s25  ;;  %484 = vrot.lane.b32.xlu1 %v4148_v25, %s3921_s12 }
 0x244   : > { %v3485_v26 = vpop.f32.mrf.mxu0 }
 0x246   : > { %v480_v27 = vpop.f32.mrf.mxu0 }
 0x247   : > { %487 = vrot.lane.b32.xlu1 %v4148_v25, %s3922_s24 }
 0x248   : > { %v3486_v28 = vpop.f32.mrf.mxu0 }
 0x24b   : > { %633 = vrot.lane.b32.xlu1 %v4148_v25, %s3923_s20 }
 0x2b5   : > { %v4158_v29 = vpop.permute.xlu1 %484  ;;  %v4166_v31 = vpop.permute.xlu0 %490 }
 0x2b6   : > { %635 = vrot.lane.b32.xlu1 %v4158_v29, %s3923_s20  ;;  %v509_v41 = vcombine.low %v4158_v29, %v4166_v31  ;;  %v510_v42 = vcombine.high %v4158_v29, %v4166_v31 }
 0x2b8   : > { %v517_v47 = vrot.slane %v509_v41, %v4175_v40  ;;  %v524_v48 = vrot.slane %v510_v42, %v4175_v40 }
 0x2b9   : > { %v4162_v30 = vpop.permute.xlu1 %487 }
 0x2ba   : > { %637 = vrot.lane.b32.xlu1 %v4162_v30, %s3923_s20  ;;  %v493_v38 = vcombine.low %v4148_v25, %v4162_v30  ;;  %v494_v39 = vcombine.high %v4148_v25, %v4162_v30 }
 0x2bc   : > { %v501_v45 = vrot.slane %v493_v38, %v4175_v40  ;;  %v508_v46 = vrot.slane %v494_v39, %v4175_v40 }
 0x2bd   : > { %v634_v35 = vpop.permute.xlu1 %633 }
 0x2be   : > { %639 = vrot.lane.b32.xlu1 %v4166_v31, %s3923_s20  ;;  %v525_v51 = vcombine.low %v501_v45, %v517_v47  ;;  %v526_v52 = vcombine.high %v501_v45, %v517_v47  ;;  %v541_v53 = vcombine.low %v508_v46, %v524_v48  ;;  %v542_v54 = vcombine.high %v508_v46, %v524_v48 }
 0x2c0   : > { %v533_v60 = vrot.slane %v525_v51, %v4186_v50  ;;  %v540_v61 = vrot.slane %v526_v52, %v4186_v50  ;;  %v549_v62 = vrot.slane %v541_v53, %v4186_v50  ;;  %v556_v63 = vrot.slane %v542_v54, %v4186_v50 }
 0x2c2   : > { %v561_v10 = vcombine.low %v533_v60, %v540_v61  ;;  %v3327_v11 = vcombine.high %v533_v60, %v540_v61  ;;  %v577_v12 = vcombine.low %v549_v62, %v556_v63  ;;  %v3328_v18 = vcombine.high %v549_v62, %v556_v63 }
 0x2c4   : > { %v568_v28 = vrot.slane %v561_v10, %v4175_v40  ;;  %v576_v32 = vrot.slane %v3327_v11, %v4175_v40  ;;  %v584_v33 = vrot.slane %v577_v12, %v4175_v40  ;;  %v592_v34 = vrot.slane %v3328_v18, %v4175_v40 }
 0x2c6   : > { %v593_v46 = vcombine.low %v568_v28, %v576_v32  ;;  %v609_v47 = vcombine.low %v584_v33, %v592_v34  ;;  %v594_v61 = vcombine.high %v568_v28, %v576_v32  ;;  %v610_v62 = vcombine.high %v584_v33, %v592_v34 }
 0x328   : > { %v636_v43 = vpop.permute.xlu1 %635 }
 0x32c   : > { %v638_v49 = vpop.permute.xlu1 %637 }
 0x32d   : > { %v645_v55 = vcombine.low %v634_v35, %v638_v49  ;;  %v646_v56 = vcombine.high %v634_v35, %v638_v49 }
 0x32f   : > { %v653_v1 = vrot.slane %v645_v55, %v4175_v40  ;;  %v660_v2 = vrot.slane %v646_v56, %v4175_v40  ;;  %v601_v55 = vrot.slane %v593_v46, %v4186_v50  ;;  %v617_v56 = vrot.slane %v609_v47, %v4186_v50 }
 0x330   : > { %v640_v57 = vpop.permute.xlu1 %639 }
 0x331   : > { %v661_v58 = vcombine.low %v636_v43, %v640_v57  ;;  %v662_v59 = vcombine.high %v636_v43, %v640_v57  ;;  %v625_v63 = vcombine.low %v601_v55, %v617_v56 }
 0x333   : > { %v669_v3 = vrot.slane %v661_v58, %v4175_v40  ;;  %v676_v4 = vrot.slane %v662_v59, %v4175_v40 }
 0x335   : > { %v677_v5 = vcombine.low %v653_v1, %v669_v3  ;;  %v678_v6 = vcombine.high %v653_v1, %v669_v3  ;;  %v693_v7 = vcombine.low %v660_v2, %v676_v4  ;;  %v694_v9 = vcombine.high %v660_v2, %v676_v4 }
 0x336   : > { %v626_v1 = vcombine.high %v601_v55, %v617_v56  ;;  %v629_v4 = vpack.c.bf16 %v625_v63, %v625_v63 }
 0x337   : > { %v685_v19 = vrot.slane %v677_v5, %v4186_v50  ;;  %v692_v20 = vrot.slane %v678_v6, %v4186_v50  ;;  %v701_v21 = vrot.slane %v693_v7, %v4186_v50  ;;  %v708_v22 = vrot.slane %v694_v9, %v4186_v50 }
 0x338   : > { %v630_v5 = vpack.c.bf16 %v626_v1, %v626_v1  ;;  %v608_v6 = vrot.slane %v594_v61, %v4186_v50  ;;  %v624_v7 = vrot.slane %v610_v62, %v4186_v50 }
 0x339   : > { %v713_v23 = vcombine.low %v685_v19, %v692_v20  ;;  %v3329_v24 = vcombine.high %v685_v19, %v692_v20  ;;  %v729_v26 = vcombine.low %v701_v21, %v708_v22  ;;  %v3330_v27 = vcombine.high %v701_v21, %v708_v22 }
 0x33a   : > { %v627_v11 = vcombine.low %v608_v6, %v624_v7  ;;  %v628_v12 = vcombine.high %v608_v6, %v624_v7  ;;  %v394_v20 = vand.u32 127, %v391_v13 }
 0x33b   : > { %v720_v35 = vrot.slane %v713_v23, %v4175_v40  ;;  %v728_v36 = vrot.slane %v3329_v24, %v4175_v40  ;;  %v736_v37 = vrot.slane %v729_v26, %v4175_v40  ;;  %v744_v38 = vrot.slane %v3330_v27, %v4175_v40 }
 0x33c   : > { %v631_v18 = vpack.c.bf16 %v627_v11, %v627_v11  ;;  %v632_v19 = vpack.c.bf16 %v628_v12, %v628_v12  ;;  %vm4238_vm3 = vcmp.ge.s32.totalorder %v4128_v14, %v394_v20 }
 0x33d   : > { %v745_v39 = vcombine.low %v720_v35, %v728_v36  ;;  %v761_v41 = vcombine.low %v736_v37, %v744_v38  ;;  %v746_v42 = vcombine.high %v720_v35, %v728_v36  ;;  %v762_v43 = vcombine.high %v736_v37, %v744_v38 }
 0x33f   : > { %v753_v44 = vrot.slane %v745_v39, %v4186_v50  ;;  %v769_v45 = vrot.slane %v761_v41, %v4186_v50  ;;  %v760_v51 = vrot.slane %v746_v42, %v4186_v50  ;;  %v776_v52 = vrot.slane %v762_v43, %v4186_v50 }
 0x341   : > { %v777_v48 = vcombine.low %v753_v44, %v769_v45  ;;  %v778_v49 = vcombine.high %v753_v44, %v769_v45  ;;  %v779_v59 = vcombine.low %v760_v51, %v776_v52  ;;  %v780_v60 = vcombine.high %v760_v51, %v776_v52 }
 0x343   : > { %v781_v53 = vpack.c.bf16 %v777_v48, %v777_v48  ;;  %v782_v54 = vpack.c.bf16 %v778_v49, %v778_v49  ;;  %v783_v2 = vpack.c.bf16 %v779_v59, %v779_v59  ;;  %v784_v3 = vpack.c.bf16 %v780_v60, %v780_v60 }
 0x345   : > { %v942_v57 = vsel %vm937_vm2, %v781_v53, 0  ;;  %v988_v58 = vsel %vm937_vm2, %v782_v54, 0  ;;  %v1034_v9 = vsel %vm937_vm2, %v783_v2, 0  ;;  %v1080_v10 = vsel %vm937_vm2, %v784_v3, 0 }
 0x346   : > { %3488 = vmatpush3.bf16.xpose.msra.mxu1 %v942_v57  ;;  %3494 = vmatpush3.bf16.xpose.msra.mxu0 %v988_v58 }
 0x347   : > { %3499 = vmatprep.subr.bf16.mxu1 %v3918_v8  ;;  %3505 = vmatprep.subr.bf16.mxu0 %v3918_v8 }
 0x34d   : > { %3490 = vmatmul.mubr.msk.bf16.vlgmr.msra.gmra.mxu1 %vm937_vm2, %v629_v4  ;;  %3496 = vmatmul.mubr.msk.bf16.vlgmr.msra.gmra.mxu0 %vm937_vm2, %v630_v5 }
 0x34e   : > { %3500 = vmatpush3.bf16.xpose.msra.mxu1 %v1034_v9  ;;  %3506 = vmatpush3.bf16.xpose.msra.mxu0 %v1080_v10 }
 0x34f   : > { %3501 = vmatprep.mubr.msk.bf16.mxu1 %vm3919_vm1, %v3918_v8  ;;  %3507 = vmatprep.mubr.msk.bf16.mxu0 %vm3919_vm1, %v3918_v8 }
 0x350   : > { %3511 = vmatprep.subr.bf16.mxu1 %v3918_v8  ;;  %3517 = vmatprep.subr.bf16.mxu0 %v3918_v8 }
 0x355   : > { %3502 = vmatmul.mubr.msk.bf16.vlgmr.msra.gmra.mxu1 %vm937_vm2, %v631_v18  ;;  %3508 = vmatmul.mubr.msk.bf16.vlgmr.msra.gmra.mxu0 %vm937_vm2, %v632_v19 }
 0x356   : > { %3513 = vmatprep.mubr.msk.bf16.mxu1 %vm3919_vm1, %v3918_v8  ;;  %3519 = vmatprep.mubr.msk.bf16.mxu0 %vm3919_vm1, %v3918_v8 }
 0x40d   : > { %v978_v22 = vpop.f32.mrf.mxu1  ;;  %v1024_v23 = vpop.f32.mrf.mxu0 }
 0x40e   : > { %v1124_v24 = vsel %vm4238_vm3, %v978_v22, -1e+30  ;;  %v1125_v26 = vsel %vm4238_vm3, %v1024_v23, -1e+30 }
 0x40f   : > { %v3491_v27 = vpop.f32.mrf.mxu1  ;;  %v3497_v28 = vpop.f32.mrf.mxu0  ;;  %v1128_v32 = vsel %vm937_vm2, %v1124_v24, -inf  ;;  %v1131_v33 = vsel %vm937_vm2, %v1125_v26, -inf }
 0x410   : > { %1129 = vmax.xlane.f32.xlu1 %v1128_v32  ;;  %1132 = vmax.xlane.f32.xlu0 %v1131_v33 }
 0x411   : > { %v981_v13 = vpop.f32.mrf.mxu1  ;;  %v1027_v34 = vpop.f32.mrf.mxu0 }
 0x413   : > { %v3492_v35 = vpop.f32.mrf.mxu1  ;;  %v3498_v36 = vpop.f32.mrf.mxu0 }
 0x415   : > { %v1070_v37 = vpop.f32.mrf.mxu1  ;;  %v1116_v38 = vpop.f32.mrf.mxu0 }
 0x416   : > { %v1126_v39 = vsel %vm4238_vm3, %v1070_v37, -1e+30  ;;  %v1127_v41 = vsel %vm4238_vm3, %v1116_v38, -1e+30 }
 0x417   : > { %v3503_v42 = vpop.f32.mrf.mxu1  ;;  %v3509_v43 = vpop.f32.mrf.mxu0  ;;  %v1134_v44 = vsel %vm937_vm2, %v1126_v39, -inf  ;;  %v1137_v45 = vsel %vm937_vm2, %v1127_v41, -inf }
 0x418   : > { %1135 = vmax.xlane.f32.xlu1 %v1134_v44  ;;  %1138 = vmax.xlane.f32.xlu0 %v1137_v45 }
 0x419   : > { %v1073_v46 = vpop.f32.mrf.mxu1  ;;  %v1119_v47 = vpop.f32.mrf.mxu0 }
 0x41b   : > { %v3504_v48 = vpop.f32.mrf.mxu1  ;;  %v3510_v49 = vpop.f32.mrf.mxu0 }
 0x429   : > { %785 = vrot.lane.b32.xlu1 %v4148_v25, %s3926_s23 }
 0x499   : > { %v1130_v51 = vpop.xlane.xlu1 %1129  ;;  %v1133_v52 = vpop.xlane.xlu0 %1132 }
 0x49a   : > { %v1140_v53 = vsub.f32 %v1124_v24, %v1130_v51  ;;  %v1141_v54 = vsub.f32 %v1125_v26, %v1133_v52 }
 0x49c   : > { %v1144_v55 = vmul.f32 1.442695, %v1140_v53  ;;  %v1146_v56 = vmul.f32 1.442695, %v1141_v54 }
 0x49e   : > { %3750 = vpow2.f32 %v1144_v55 }
 0x49f   : > { %3752 = vpow2.f32 %v1146_v56 }
 0x4a1   : > { %v1136_v57 = vpop.xlane.xlu1 %1135  ;;  %v1139_v58 = vpop.xlane.xlu0 %1138 }
 0x4a2   : > { %v1142_v59 = vsub.f32 %v1126_v39, %v1136_v57  ;;  %v1143_v60 = vsub.f32 %v1127_v41, %v1139_v58 }
 0x4a4   : > { %v1148_v61 = vmul.f32 1.442695, %v1142_v59  ;;  %v1150_v62 = vmul.f32 1.442695, %v1143_v60 }
 0x4a5   : > { %v786_v7 = vpop.permute.xlu1 %785 }
 0x4a6   : > { %3754 = vpow2.f32 %v1148_v61 }
 0x4a7   : > { %3756 = vpow2.f32 %v1150_v62 }
 0x4ab   : > { %v4256_v63 = vpop.eup %3750 }
 0x4ac   : > { %v4258_v1 = vpop.eup %3752  ;;  %v1152_v25 = vsel %vm937_vm2, %v4256_v63, 0.0 }
 0x4ad   : > { %1153 = vadd.xlane.f32.xlu1 %v1152_v25  ;;  %v1155_v2 = vsel %vm937_vm2, %v4258_v1, 0.0 }
 0x4ae   : > { %1156 = vadd.xlane.f32.xlu0 %v1155_v2 }
 0x4b3   : > { %v4264_v3 = vpop.eup %3754 }
 0x4b4   : > { %v4266_v4 = vpop.eup %3756  ;;  %v1158_v5 = vsel %vm937_vm2, %v4264_v3, 0.0 }
 0x4b5   : > { %1159 = vadd.xlane.f32.xlu1 %v1158_v5  ;;  %v1161_v6 = vsel %vm937_vm2, %v4266_v4, 0.0 }
 0x4b6   : > { %1162 = vadd.xlane.f32.xlu0 %v1161_v6 }
 0x4c6   : > { %789 = vrot.lane.b32.xlu1 %v4162_v30, %s3926_s23 }
 0x4ca   : > { %791 = vrot.lane.b32.xlu1 %v4166_v31, %s3926_s23 }
 0x4cc   : > { %787 = vrot.lane.b32.xlu0 %v4158_v29, %s3926_s23 }
 0x536   : > { %v1154_v9 = vpop.xlane.xlu1 %1153 }
 0x537   : > { %v1157_v10 = vpop.xlane.xlu0 %1156  ;;  %3758 = vrcp.f32 %v1154_v9 }
 0x538   : > { %3760 = vrcp.f32 %v1157_v10 }
 0x53e   : > { %v1160_v11 = vpop.xlane.xlu1 %1159 }
 0x53f   : > { %v1163_v12 = vpop.xlane.xlu0 %1162  ;;  %3762 = vrcp.f32 %v1160_v11 }
 0x540   : > { %3764 = vrcp.f32 %v1163_v12 }
 0x542   : > { %v790_v18 = vpop.permute.xlu1 %789 }
 0x543   : > { %v797_v19 = vcombine.low %v786_v7, %v790_v18  ;;  %v798_v20 = vcombine.high %v786_v7, %v790_v18  ;;  %v788_v22 = vpop.permute.xlu0 %787 }
 0x544   : > { %v3759_v31 = vpop.eup %3758 }
 0x545   : > { %v805_v26 = vrot.slane %v797_v19, %v4175_v40  ;;  %v812_v29 = vrot.slane %v798_v20, %v4175_v40  ;;  %v3761_v32 = vpop.eup %3760  ;;  %v1168_v36 = vmul.f32 %v3759_v31, %v1154_v9 }
 0x546   : > { %v792_v30 = vpop.permute.xlu1 %791  ;;  %v1169_v37 = vmul.f32 %v3761_v32, %v1157_v10 }
 0x547   : > { %v813_v23 = vcombine.low %v788_v22, %v792_v30  ;;  %v814_v24 = vcombine.high %v788_v22, %v792_v30  ;;  %v1172_v47 = vsub.f32 2.0, %v1168_v36 }
 0x548   : > { %v1173_v48 = vsub.f32 2.0, %v1169_v37 }
 0x549   : > { %v821_v27 = vrot.slane %v813_v23, %v4175_v40  ;;  %v828_v28 = vrot.slane %v814_v24, %v4175_v40  ;;  %v1176_v60 = vmul.f32 %v3759_v31, %v1172_v47 }
 0x54a   : > { %v1177_v61 = vmul.f32 %v3761_v32, %v1173_v48 }
 0x54b   : > { %v829_v33 = vcombine.low %v805_v26, %v821_v27  ;;  %v830_v13 = vcombine.high %v805_v26, %v821_v27  ;;  %v845_v34 = vcombine.low %v812_v29, %v828_v28  ;;  %v846_v35 = vcombine.high %v812_v29, %v828_v28 }
 0x54c   : > { %v3763_v52 = vpop.eup %3762  ;;  %v1180_v20 = vmul.f32 %v4256_v63, %v1176_v60  ;;  %v1181_v22 = vmul.f32 %v4258_v1, %v1177_v61 }
 0x54d   : > { %v837_v38 = vrot.slane %v829_v33, %v4186_v50  ;;  %v844_v39 = vrot.slane %v830_v13, %v4186_v50  ;;  %v853_v41 = vrot.slane %v845_v34, %v4186_v50  ;;  %v860_v42 = vrot.slane %v846_v35, %v4186_v50  ;;  %v3765_v55 = vpop.eup %3764 }
 0x54e   : > { %v1170_v2 = vmul.f32 %v3763_v52, %v1160_v11  ;;  %v1171_v5 = vmul.f32 %v3765_v55, %v1163_v12  ;;  %v1184_v27 = vpack.c.bf16 %v1180_v20, %v1180_v20  ;;  %v1185_v28 = vpack.c.bf16 %v1181_v22, %v1181_v22 }
 0x54f   : > { %v865_v43 = vcombine.low %v837_v38, %v844_v39  ;;  %v3331_v44 = vcombine.high %v837_v38, %v844_v39  ;;  %v881_v45 = vcombine.low %v853_v41, %v860_v42  ;;  %v3332_v46 = vcombine.high %v853_v41, %v860_v42 }
 0x550   : > { %v1174_v30 = vsub.f32 2.0, %v1170_v2  ;;  %v1175_v23 = vsub.f32 2.0, %v1171_v5 }
 0x551   : > { %v872_v49 = vrot.slane %v865_v43, %v4175_v40  ;;  %v880_v51 = vrot.slane %v3331_v44, %v4175_v40  ;;  %v888_v53 = vrot.slane %v881_v45, %v4175_v40  ;;  %v896_v54 = vrot.slane %v3332_v46, %v4175_v40 }
 0x552   : > { %v1178_v32 = vmul.f32 %v3763_v52, %v1174_v30  ;;  %v1179_v33 = vmul.f32 %v3765_v55, %v1175_v23 }
 0x553   : > { %v897_v56 = vcombine.low %v872_v49, %v880_v51  ;;  %v898_v57 = vcombine.high %v872_v49, %v880_v51  ;;  %v913_v58 = vcombine.low %v888_v53, %v896_v54  ;;  %v914_v59 = vcombine.high %v888_v53, %v896_v54 }
 0x554   : > { %v1182_v13 = vmul.f32 %v4264_v3, %v1178_v32  ;;  %v1183_v34 = vmul.f32 %v4266_v4, %v1179_v33 }
 0x555   : > { %v905_v62 = vrot.slane %v897_v56, %v4186_v50  ;;  %v912_v25 = vrot.slane %v898_v57, %v4186_v50  ;;  %v921_v6 = vrot.slane %v913_v58, %v4186_v50  ;;  %v928_v7 = vrot.slane %v914_v59, %v4186_v50  ;;  %v3728_v59 = vld [vmem:[%s4728_s2 + $0x8] sm:$0xff]  }
 0x556   : > { %v1186_v35 = vpack.c.bf16 %v1182_v13, %v1182_v13  ;;  %v1187_v36 = vpack.c.bf16 %v1183_v34, %v1183_v34 }
 0x557   : > { %v929_v9 = vcombine.low %v905_v62, %v921_v6  ;;  %v930_v10 = vcombine.high %v905_v62, %v921_v6  ;;  %v931_v18 = vcombine.low %v912_v25, %v928_v7  ;;  %v932_v19 = vcombine.high %v912_v25, %v928_v7 }
 0x559   : > { %v933_v24 = vpack.c.bf16 %v929_v9, %v929_v9  ;;  %v934_v31 = vpack.c.bf16 %v930_v10, %v930_v10  ;;  %v935_v26 = vpack.c.bf16 %v931_v18, %v931_v18  ;;  %v936_v29 = vpack.c.bf16 %v932_v19, %v932_v19  ;;  %v3729_v18 = vld [vmem:[%s4728_s2] sm:$0xff]  }
 0x55b   : > { %v1193_v11 = vsel %vm1191_vm4, %v933_v24, 0  ;;  %v1239_v12 = vsel %vm1191_vm4, %v934_v31, 0  ;;  %v1285_v63 = vsel %vm1191_vm4, %v935_v26, 0  ;;  %v1331_v1 = vsel %vm1191_vm4, %v936_v29, 0 }
 0x55c   : > { %3512 = vmatpush3.bf16.msra.mxu1 %v1193_v11  ;;  %3518 = vmatpush3.bf16.msra.mxu0 %v1239_v12 }
 0x55d   : > { %3523 = vmatprep.subr.bf16.mxu1 %v3918_v8  ;;  %3529 = vmatprep.subr.bf16.mxu0 %v3918_v8 }
 0x55f   : > { %3514 = vmatmul.mubr.msk.bf16.vlgmr.msra.gmra.mxu1 %vm937_vm2, %v1184_v27  ;;  %3520 = vmatmul.mubr.msk.bf16.vlgmr.msra.gmra.mxu0 %vm937_vm2, %v1185_v28 }
 0x560   : > { %3524 = vmatpush3.bf16.msra.mxu1 %v1285_v63  ;;  %3530 = vmatpush3.bf16.msra.mxu0 %v1331_v1 }
 0x561   : > { %3525 = vmatprep.mubr.msk.bf16.mxu1 %vm3919_vm1, %v3918_v8  ;;  %3531 = vmatprep.mubr.msk.bf16.mxu0 %vm3919_vm1, %v3918_v8 }
 0x562   : > { %3535 = vmatprep.subr.bf16.mxu1 %v3918_v8  ;;  %3543 = vmatprep.subr.bf16.mxu0 %v3918_v8 }
 0x567   : > { %3526 = vmatmul.mubr.msk.bf16.vlgmr.msra.gmra.mxu1 %vm937_vm2, %v1186_v35  ;;  %3532 = vmatmul.mubr.msk.bf16.vlgmr.msra.gmra.mxu0 %vm937_vm2, %v1187_v36 }
 0x568   : > { %3539 = vmatprep.mubr.msk.bf16.mxu1 %vm3919_vm1, %v3918_v8  ;;  %3547 = vmatprep.mubr.msk.bf16.mxu0 %vm3919_vm1, %v3918_v8 }
 0x569   : > { %3536 = vmatpush3.bf16.msra.mxu1 %v3728_v59  ;;  %v3733_v59 = vld [vmem:[%s4731_s5 + $0x10] sm:$0xff]  }
 0x56a   : > { %3537 = vmatprep.subr.bf16.mxu1 %v3918_v8 }
 0x56d   : > { %3538 = vmatpush3.bf16.msra.mxu1 %v3729_v18 }
 0x56e   : > { %3551 = vmatprep.subr.bf16.mxu1 %v3918_v8 }
 0x61f   : > { %v1229_v3 = vpop.f32.mrf.mxu1  ;;  %v1275_v4 = vpop.f32.mrf.mxu0 }
 0x621   : > { %v3515_v37 = vpop.f32.mrf.mxu1  ;;  %v3521_v38 = vpop.f32.mrf.mxu0 }
 0x623   : > { %v1232_v39 = vpop.f32.mrf.mxu1  ;;  %v1278_v41 = vpop.f32.mrf.mxu0 }
 0x625   : > { %v3516_v42 = vpop.f32.mrf.mxu1  ;;  %v3522_v43 = vpop.f32.mrf.mxu0 }
 0x626   : > { %v1533_v42 = vsub.s32 2, %v4128_v14 }
 0x627   : > { %v1321_v44 = vpop.f32.mrf.mxu1  ;;  %v1367_v45 = vpop.f32.mrf.mxu0 }
 0x628   : > { %v1373_v46 = vcombine.low %v1229_v3, %v1321_v44  ;;  %v1374_v47 = vcombine.high %v1229_v3, %v1321_v44  ;;  %v1389_v48 = vcombine.low %v1275_v4, %v1367_v45  ;;  %v1390_v49 = vcombine.high %v1275_v4, %v1367_v45 }
 0x629   : > { %v3527_v51 = vpop.f32.mrf.mxu1  ;;  %v3533_v52 = vpop.f32.mrf.mxu0  ;;  %v1534_v43 = vrot.slane %v4136_v16, %v1533_v42 }
 0x62a   : > { %v1381_v53 = vrot.slane %v1373_v46, %v4175_v40  ;;  %v1388_v54 = vrot.slane %v1374_v47, %v4175_v40  ;;  %v1397_v55 = vrot.slane %v1389_v48, %v4175_v40  ;;  %v1404_v56 = vrot.slane %v1390_v49, %v4175_v40 }
 0x62b   : > { %v1324_v57 = vpop.f32.mrf.mxu1  ;;  %v1370_v58 = vpop.f32.mrf.mxu0 }
 0x62c   : > { %v1405_v60 = vcombine.low %v1381_v53, %v1397_v55  ;;  %v1406_v61 = vcombine.high %v1381_v53, %v1397_v55  ;;  %v1421_v62 = vcombine.low %v1388_v54, %v1404_v56  ;;  %v1422_v25 = vcombine.high %v1388_v54, %v1404_v56  ;;  %v3730_v57 = vld [vmem:[%s4729_s3 + $0x8] sm:$0xff]   ;;  %v3732_v58 = vld [vmem:[%s4731_s5 + $0x18] sm:$0xff]  }
 0x62d   : > { %v3528_v2 = vpop.f32.mrf.mxu1  ;;  %v3534_v5 = vpop.f32.mrf.mxu0  ;;  %3544 = vmatpush3.bf16.msra.mxu0 %v3730_v57 }
 0x62e   : > { %v1413_v6 = vrot.slane %v1405_v60, %v4186_v50  ;;  %v1420_v7 = vrot.slane %v1406_v61, %v4186_v50  ;;  %v1429_v9 = vrot.slane %v1421_v62, %v4186_v50  ;;  %v1436_v10 = vrot.slane %v1422_v25, %v4186_v50  ;;  %3545 = vmatprep.subr.bf16.mxu0 %v3918_v8 }
 0x62f   : > { %v1606_v25 = vsub.s32 3, %v4128_v14  ;;  %v1611_v2 = vsub.s32 4, %v4128_v14 }
 0x630   : > { %v1441_v19 = vcombine.low %v1413_v6, %v1420_v7  ;;  %v3341_v20 = vcombine.high %v1413_v6, %v1420_v7  ;;  %v1457_v22 = vcombine.low %v1429_v9, %v1436_v10  ;;  %v3342_v30 = vcombine.high %v1429_v9, %v1436_v10 }
 0x631   : > { %v1607_v5 = vrot.slane %v4136_v16, %v1606_v25  ;;  %v1612_v9 = vrot.slane %v4136_v16, %v1611_v2 }
 0x632   : > { %v1448_v23 = vrot.slane %v1441_v19, %v4175_v40  ;;  %v1456_v24 = vrot.slane %v3341_v20, %v4175_v40  ;;  %v1464_v31 = vrot.slane %v1457_v22, %v4175_v40  ;;  %v1472_v11 = vrot.slane %v3342_v30, %v4175_v40  ;;  %v3734_v20 = vld [vmem:[%s4731_s5 + $0x8] sm:$0xff]   ;;  %v3735_v22 = vld [vmem:[%s4731_s5] sm:$0xff]  }
 0x633   : > { %v3346_v30 = vld [vmem:[%s4730_s4] ss:$0 sm:$0xff] }
 0x634   : > { %v1474_v12 = vcombine.high %v1448_v23, %v1456_v24  ;;  %v1490_v26 = vcombine.high %v1464_v31, %v1472_v11  ;;  %v1473_v29 = vcombine.low %v1448_v23, %v1456_v24  ;;  %v1489_v27 = vcombine.low %v1464_v31, %v1472_v11 }
 0x636   : > { %v1488_v28 = vrot.slane %v1474_v12, %v4186_v50  ;;  %v1504_v32 = vrot.slane %v1490_v26, %v4186_v50  ;;  %v1481_v33 = vrot.slane %v1473_v29, %v4186_v50  ;;  %v1497_v63 = vrot.slane %v1489_v27, %v4186_v50 }
 0x637   : > { %v1693_v27 = vsub.s32 5, %v4128_v14  ;;  %v3747_v14 = vld [vmem:[#allocation5] sm:$0xff]  }
 0x638   : > { %v1507_v1 = vcombine.low %v1488_v28, %v1504_v32  ;;  %v1506_v13 = vcombine.high %v1481_v33, %v1497_v63  ;;  %v1505_v34 = vcombine.low %v1481_v33, %v1497_v63  ;;  %v1508_v35 = vcombine.high %v1488_v28, %v1504_v32 }
 0x639   : > { %v1694_v28 = vrot.slane %v4136_v16, %v1693_v27  ;;  %v3736_v16 = vld [vmem:[%s4727_s1 + $0x18] sm:$0xff]  }
 0x63a   : > { %1514 = vrot.lane.b32.xlu1 %v1507_v1, %s3927_s21  ;;  %1510 = vrot.lane.b32.xlu0 %v1506_v13, %s3928_s11 }
 0x63e   : > { %1518 = vrot.lane.b32.xlu0 %v1508_v35, %s4746_s26 }
 0x6ac   : > { %v1511_v36 = vpop.permute.xlu0 %1510  ;;  %v1515_v3 = vpop.permute.xlu1 %1514 }
 0x6ad   : > { %v1521_v4 = vsel %vm937_vm2, %v1505_v34, %v1511_v36 }
 0x6ae   : > { %v1523_v38 = vsel %vm1522_vm5, %v1521_v4, %v1515_v3 }
 0x6b0   : > { %v1519_v37 = vpop.permute.xlu0 %1518 }
 0x6b1   : > { %v1525_v39 = vsel %vm1524_vm6, %v1523_v38, %v1519_v37 }
 0x6b2   : > { %v1526_v41 = vpack.c.bf16 %v1525_v39, %v1525_v39  ;;  %v3737_v39 = vld [vmem:[%s4727_s1 + $0x10] sm:$0xff]  }
 0x6b4   : > { %3540 = vmatmul.mubr.msk.bf16.vlgmr.msra.gmra.mxu1 %vm398_vm0, %v1526_v41 }
 0x6b5   : > { %3559 = vmatprep.mubr.msk.bf16.mxu1 %vm3919_vm1, %v3918_v8  ;;  %3552 = vmatpush3.bf16.msra.mxu1 %v3732_v58 }
 0x6b6   : > { %3553 = vmatprep.subr.bf16.mxu1 %v3918_v8 }
 0x6b9   : > { %3554 = vmatpush3.bf16.msra.mxu1 %v3733_v59 }
 0x6ba   : > { %3555 = vmatprep.subr.bf16.mxu1 %v3918_v8 }
 0x6bd   : > { %3556 = vmatpush3.bf16.msra.mxu1 %v3734_v20 }
 0x6be   : > { %3557 = vmatprep.subr.bf16.mxu1 %v3918_v8 }
 0x6c1   : > { %3558 = vmatpush3.bf16.msra.mxu1 %v3735_v22 }
 0x6c2   : > { %3577 = vmatprep.subr.bf16.mxu1 %v3918_v8 }
 0x774   : > { %v1584_v44 = vpop.f32.mrf.mxu1 }
 0x775   : > { %v1585_v45 = vadd.f32 %v1584_v44, %v1534_v43 }
 0x776   : > { %v3541_v46 = vpop.f32.mrf.mxu1 }
 0x777   : > { %v1590_v47 = vadd.f32 %v1585_v45, %v4107_v0  ;;  %v3731_v0 = vld [vmem:[%s4729_s3] sm:$0xff]   ;;  %v4420_v45 = vld [vmem:[%s4732_s6 + $0x8] sm:$0x3f] }
 0x778   : > { %v1587_v48 = vpop.f32.mrf.mxu1  ;;  %3546 = vmatpush3.bf16.msra.mxu0 %v3731_v0  ;;  %v1782_v46 = vrot.slane %v4420_v45, %v4131_v15 }
 0x779   : > { %v1591_v49 = vsel %vm398_vm0, %v1590_v47, 0.0  ;;  %3563 = vmatprep.subr.bf16.mxu0 %v3918_v8 }
 0x77a   : > { %1592 = vadd.xlane.f32.xlu1 %v1591_v49  ;;  %v3542_v51 = vpop.f32.mrf.mxu1  ;;  %v1787_v49 = vrot.slane %v4420_v45, %v4139_v17 }
 0x803   : > { %v1593_v52 = vpop.xlane.xlu1 %1592 }
 0x804   : > { %v1594_v53 = vmul.f32 0.03125, %v1593_v52 }
 0x806   : > { %v1595_v54 = vsub.f32 %v1590_v47, %v1594_v53 }
 0x808   : > { %v1596_v55 = vmul.f32 %v1595_v54, %v1595_v54 }
 0x80a   : > { %v1597_v56 = vsel %vm398_vm0, %v1596_v55, 0.0 }
 0x80b   : > { %1598 = vadd.xlane.f32.xlu0 %v1597_v56 }
 0x894   : > { %v1599_v60 = vpop.xlane.xlu0 %1598 }
 0x895   : > { %v1600_v61 = vmul.f32 0.03125, %v1599_v60 }
 0x897   : > { %v1601_v62 = vadd.f32 1e-05, %v1600_v61 }
 0x899   : > { %3766 = vrsqrt.f32 %v1601_v62 }
 0x8a6   : > { %v3767_v6 = vpop.eup %3766 }
 0x8a7   : > { %v1603_v7 = vmul.f32 %v3767_v6, %v1595_v54 }
 0x8a9   : > { %v1608_v10 = vmul.f32 %v1607_v5, %v1603_v7 }
 0x8ab   : > { %v1613_v18 = vadd.f32 %v1612_v9, %v1608_v10 }
 0x8ad   : > { %v1614_v19 = vpack.c.bf16 %v1613_v18, %v1613_v18 }
 0x8af   : > { %3548 = vmatmul.mubr.msk.bf16.vlgmr.msra.gmra.mxu0 %vm398_vm0, %v1614_v19 }
 0x8b0   : > { %3567 = vmatprep.mubr.msk.bf16.mxu0 %vm3919_vm1, %v3918_v8  ;;  %3564 = vmatpush3.bf16.msra.mxu0 %v3736_v16 }
 0x8b1   : > { %3565 = vmatprep.subr.bf16.mxu0 %v3918_v8 }
 0x8b4   : > { %3566 = vmatpush3.bf16.msra.mxu0 %v3737_v39 }
 0x8b5   : > { %3571 = vmatprep.subr.bf16.mxu0 %v3918_v8 }
 0x96f   : > { %v1675_v23 = vpop.f32.mrf.mxu0 }
 0x970   : > { %v1676_v24 = vadd.f32 %v3346_v30, %v1675_v23 }
 0x971   : > { %v3549_v31 = vpop.f32.mrf.mxu0 }
 0x972   : > { %v1681_v11 = vmax.f32 %v1676_v24, 0.0 }
 0x973   : > { %v1678_v12 = vpop.f32.mrf.mxu0 }
 0x974   : > { %v1682_v26 = vpack.c.bf16 %v1681_v11, %v1681_v11 }
 0x975   : > { %v3550_v29 = vpop.f32.mrf.mxu0 }
 0x976   : > { %3560 = vmatmul.mubr.msk.bf16.vlgmr.msra.gmra.mxu1 %vm1719_vm7, %v1682_v26 }
 0x977   : > { %3579 = vmatprep.mubr.msk.bf16.mxu1 %vm3919_vm1, %v3918_v8 }
 0xa36   : > { %v1757_v32 = vpop.f32.mrf.mxu1 }
 0xa37   : > { %v1758_v33 = vadd.f32 %v1757_v32, %v1694_v28 }
 0xa38   : > { %v3561_v63 = vpop.f32.mrf.mxu1 }
 0xa39   : > { %v4403_v1 = vadd.f32 %v1758_v33, %v1590_v47 }
 0xa3a   : > { %v1760_v13 = vpop.f32.mrf.mxu1 }
 0xa3b   : > { %v1766_v34 = vsel %vm398_vm0, %v4403_v1, 0.0 }
 0xa3c   : > { %1767 = vadd.xlane.f32.xlu0 %v1766_v34  ;;  %v3562_v35 = vpop.f32.mrf.mxu1 }
 0xac5   : > { %v1768_v36 = vpop.xlane.xlu0 %1767 }
 0xac6   : > { %v1769_v3 = vmul.f32 0.03125, %v1768_v36 }
 0xac8   : > { %v1770_v4 = vsub.f32 %v4403_v1, %v1769_v3 }
 0xaca   : > { %v1771_v37 = vmul.f32 %v1770_v4, %v1770_v4 }
 0xacc   : > { %v1772_v38 = vsel %vm398_vm0, %v1771_v37, 0.0 }
 0xacd   : > { %1773 = vadd.xlane.f32.xlu1 %v1772_v38 }
 0xb56   : > { %v1774_v41 = vpop.xlane.xlu1 %1773 }
 0xb57   : > { %v1775_v43 = vmul.f32 0.03125, %v1774_v41 }
 0xb59   : > { %v1776_v44 = vadd.f32 1e-05, %v1775_v43 }
 0xb5b   : > { %3768 = vrsqrt.f32 %v1776_v44 }
 0xb68   : > { %v3769_v47 = vpop.eup %3768 }
 0xb69   : > { %v1778_v48 = vmul.f32 %v3769_v47, %v1770_v4 }
 0xb6b   : > { %v1783_v51 = vmul.f32 %v1782_v46, %v1778_v48 }
 0xb6d   : > { %v1788_v52 = vadd.f32 %v1787_v49, %v1783_v51 }
 0xb6f   : > { %v1789_v53 = vpack.c.bf16 %v1788_v52, %v1788_v52 }
 0xb71   : > { %3568 = vmatmul.mubr.msk.bf16.vlgmr.msra.gmra.mxu0 %vm398_vm0, %v1789_v53 }
 0xb72   : > { %3573 = vmatprep.mubr.msk.bf16.mxu0 %vm3919_vm1, %v3918_v8 }
 0xc31   : > { %v4429_v54 = vpop.f32.mrf.mxu0 }
 0xc32   : > { %1854 = vrot.lane.b32.xlu1 %v4429_v54, %s3922_s24  ;;  %1851 = vrot.lane.b32.xlu0 %v4429_v54, %s3921_s12  ;;  %s3930_s12 = smov [#allocation7]  }
 0xc33   : > { %v3569_v55 = vpop.f32.mrf.mxu0  ;;  %s3848_s24 = sshll.u32 %s3930_s12, 4  ;;  %s3849_s24 = int_to_ptr.vmem [resolvable:$false] %s3848_s24 }
 0xc34   : > { %p3851_p10 = scmp.lt.s32.totalorder %s4685_s13, %s3849_s24 }
 0xc35   : > { %v1847_v56 = vpop.f32.mrf.mxu0 }
 0xc36   : > { %1857 = vrot.lane.b32.xlu1 %v4429_v54, %s3920_s25  ;;  %2000 = vrot.lane.b32.xlu0 %v4429_v54, %s3923_s20  ;;  %s3221_s25 = scalar_lea.sflag [#allocation4], %s4093_s30 }
 0xc37   : > { %v3570_v57 = vpop.f32.mrf.mxu0 }
 0xca4   : > { %v4439_v0 = vpop.permute.xlu1 %1854  ;;  %v4441_v58 = vpop.permute.xlu0 %1851 }
 0xca5   : > { %2004 = vrot.lane.b32.xlu0 %v4439_v0, %s3923_s20  ;;  %2002 = vrot.lane.b32.xlu1 %v4441_v58, %s3923_s20  ;;  %v1860_v62 = vcombine.low %v4429_v54, %v4439_v0  ;;  %v1861_v5 = vcombine.high %v4429_v54, %v4439_v0 }
 0xca7   : > { %v1868_v10 = vrot.slane %v1860_v62, %v4175_v40  ;;  %v1875_v18 = vrot.slane %v1861_v5, %v4175_v40 }
 0xca8   : > { %v4447_v59 = vpop.permute.xlu1 %1857  ;;  %v2001_v6 = vpop.permute.xlu0 %2000 }
 0xca9   : > { %2006 = vrot.lane.b32.xlu1 %v4447_v59, %s3923_s20  ;;  %v1876_v60 = vcombine.low %v4441_v58, %v4447_v59  ;;  %v1877_v61 = vcombine.high %v4441_v58, %v4447_v59  ;;  %s3850_s20 = scalar_lea.vmem %s3849_s24, 256 }
 0xcaa   : > { %p3852_p2 = scmp.lt.s32.totalorder %s3850_s20, %s3844_s17 }
 0xcab   : > { %v1884_v7 = vrot.slane %v1876_v60, %v4175_v40  ;;  %v1891_v9 = vrot.slane %v1877_v61, %v4175_v40 }
 0xcac   : > { %p3853_p13 = por %p3852_p2, %p3851_p10 }
 0xcad   : > { %v1892_v22 = vcombine.low %v1868_v10, %v1884_v7  ;;  %v1893_v30 = vcombine.high %v1868_v10, %v1884_v7  ;;  %v1908_v23 = vcombine.low %v1875_v18, %v1891_v9  ;;  %v1909_v24 = vcombine.high %v1875_v18, %v1891_v9 }
 0xcae   : > { %p3854_p0 = pnand %p3853_p13, %p3847_p7 }
 0xcaf   : > { %v1900_v28 = vrot.slane %v1892_v22, %v4186_v50  ;;  %v1907_v32 = vrot.slane %v1893_v30, %v4186_v50  ;;  %v1916_v33 = vrot.slane %v1908_v23, %v4186_v50  ;;  %v1923_v63 = vrot.slane %v1909_v24, %v4186_v50 }
 0xcb1   : > { %v1928_v16 = vcombine.low %v1900_v28, %v1907_v32  ;;  %v3363_v39 = vcombine.high %v1900_v28, %v1907_v32  ;;  %v1944_v41 = vcombine.low %v1916_v33, %v1923_v63  ;;  %v3364_v43 = vcombine.high %v1916_v33, %v1923_v63 }
 0xcb3   : > { %v1935_v55 = vrot.slane %v1928_v16, %v4175_v40  ;;  %v1943_v56 = vrot.slane %v3363_v39, %v4175_v40  ;;  %v1951_v57 = vrot.slane %v1944_v41, %v4175_v40  ;;  %v1959_v60 = vrot.slane %v3364_v43, %v4175_v40 }
 0xcb5   : > { %v1960_v22 = vcombine.low %v1935_v55, %v1943_v56  ;;  %v1976_v30 = vcombine.low %v1951_v57, %v1959_v60 }
 0xcb7   : > { %v1984_v28 = vrot.slane %v1976_v30, %v4186_v50 }
 0xd17   : > { %v2003_v19 = vpop.permute.xlu1 %2002  ;;  %v2005_v20 = vpop.permute.xlu0 %2004 }
 0xd18   : > { %v2012_v31 = vcombine.low %v2001_v6, %v2005_v20  ;;  %v2013_v11 = vcombine.high %v2001_v6, %v2005_v20 }
 0xd1a   : > { %v2020_v13 = vrot.slane %v2012_v31, %v4175_v40  ;;  %v2027_v34 = vrot.slane %v2013_v11, %v4175_v40 }
 0xd1b   : > { %v2007_v12 = vpop.permute.xlu1 %2006 }
 0xd1c   : > { %v2028_v26 = vcombine.low %v2003_v19, %v2007_v12  ;;  %v2029_v29 = vcombine.high %v2003_v19, %v2007_v12 }
 0xd1e   : > { %v2036_v35 = vrot.slane %v2028_v26, %v4175_v40  ;;  %v2043_v36 = vrot.slane %v2029_v29, %v4175_v40  ;;  %v1968_v29 = vrot.slane %v1960_v22, %v4186_v50 }
 0xd20   : > { %v2044_v3 = vcombine.low %v2020_v13, %v2036_v35  ;;  %v2045_v4 = vcombine.high %v2020_v13, %v2036_v35  ;;  %v2060_v37 = vcombine.low %v2027_v34, %v2043_v36  ;;  %v2061_v38 = vcombine.high %v2027_v34, %v2043_v36 }
 0xd21   : > { %v1961_v34 = vcombine.high %v1935_v55, %v1943_v56  ;;  %v1992_v35 = vcombine.low %v1968_v29, %v1984_v28  ;;  %v1993_v36 = vcombine.high %v1968_v29, %v1984_v28 }
 0xd22   : > { %v2052_v44 = vrot.slane %v2044_v3, %v4186_v50  ;;  %v2059_v46 = vrot.slane %v2045_v4, %v4186_v50  ;;  %v2068_v47 = vrot.slane %v2060_v37, %v4186_v50  ;;  %v2075_v48 = vrot.slane %v2061_v38, %v4186_v50 }
 0xd23   : > { %v1977_v3 = vcombine.high %v1951_v57, %v1959_v60  ;;  %v1996_v38 = vpack.c.bf16 %v1992_v35, %v1992_v35  ;;  %v1997_v16 = vpack.c.bf16 %v1993_v36, %v1993_v36  ;;  %v1975_v39 = vrot.slane %v1961_v34, %v4186_v50 }
 0xd24   : > { %v2080_v49 = vcombine.low %v2052_v44, %v2059_v46  ;;  %v3365_v51 = vcombine.high %v2052_v44, %v2059_v46  ;;  %v2096_v52 = vcombine.low %v2068_v47, %v2075_v48  ;;  %v3366_v53 = vcombine.high %v2068_v47, %v2075_v48 }
 0xd25   : > { %v1991_v41 = vrot.slane %v1977_v3, %v4186_v50 }
 0xd26   : > { %v2087_v61 = vrot.slane %v2080_v49, %v4175_v40  ;;  %v2095_v62 = vrot.slane %v3365_v51, %v4175_v40  ;;  %v2103_v5 = vrot.slane %v2096_v52, %v4175_v40  ;;  %v2111_v6 = vrot.slane %v3366_v53, %v4175_v40 }
 0xd27   : > { %v1994_v46 = vcombine.low %v1975_v39, %v1991_v41  ;;  %v1995_v47 = vcombine.high %v1975_v39, %v1991_v41 }
 0xd28   : > { %v2112_v7 = vcombine.low %v2087_v61, %v2095_v62  ;;  %v2128_v9 = vcombine.low %v2103_v5, %v2111_v6  ;;  %v2113_v10 = vcombine.high %v2087_v61, %v2095_v62  ;;  %v2129_v18 = vcombine.high %v2103_v5, %v2111_v6 }
 0xd29   : > { %v1998_v48 = vpack.c.bf16 %v1994_v46, %v1994_v46  ;;  %v1999_v49 = vpack.c.bf16 %v1995_v47, %v1995_v47 }
 0xd2a   : > { %v2120_v19 = vrot.slane %v2112_v7, %v4186_v50  ;;  %v2136_v20 = vrot.slane %v2128_v9, %v4186_v50  ;;  %v2127_v31 = vrot.slane %v2113_v10, %v4186_v50  ;;  %v2143_v11 = vrot.slane %v2129_v18, %v4186_v50 }
 0xd2c   : > { %v2144_v23 = vcombine.low %v2120_v19, %v2136_v20  ;;  %v2145_v24 = vcombine.high %v2120_v19, %v2136_v20  ;;  %v2146_v63 = vcombine.low %v2127_v31, %v2143_v11  ;;  %v2147_v13 = vcombine.high %v2127_v31, %v2143_v11 }
 0xd2e   : > { %v2148_v12 = vpack.c.bf16 %v2144_v23, %v2144_v23  ;;  %v2149_v26 = vpack.c.bf16 %v2145_v24, %v2145_v24  ;;  %v2150_v4 = vpack.c.bf16 %v2146_v63, %v2146_v63  ;;  %v2151_v37 = vpack.c.bf16 %v2147_v13, %v2147_v13 }
 0xd30   : > { %v2308_v32 = vsel %vm937_vm2, %v2148_v12, 0  ;;  %v2354_v33 = vsel %vm937_vm2, %v2149_v26, 0  ;;  %v2400_v43 = vsel %vm937_vm2, %v2150_v4, 0  ;;  %v2446_v44 = vsel %vm937_vm2, %v2151_v37, 0 }
 0xd31   : > { %3572 = vmatpush3.bf16.xpose.msra.mxu0 %v2308_v32  ;;  %3578 = vmatpush3.bf16.xpose.msra.mxu1 %v2354_v33 }
 0xd32   : > { %3583 = vmatprep.subr.bf16.mxu0 %v3918_v8  ;;  %3589 = vmatprep.subr.bf16.mxu1 %v3918_v8 }
 0xd38   : > { %3574 = vmatmul.mubr.msk.bf16.vlgmr.msra.gmra.mxu0 %vm937_vm2, %v1996_v38  ;;  %3580 = vmatmul.mubr.msk.bf16.vlgmr.msra.gmra.mxu1 %vm937_vm2, %v1997_v16 }
 0xd39   : > { %3584 = vmatpush3.bf16.xpose.msra.mxu0 %v2400_v43  ;;  %3590 = vmatpush3.bf16.xpose.msra.mxu1 %v2446_v44 }
 0xd3a   : > { %3585 = vmatprep.mubr.msk.bf16.mxu0 %vm3919_vm1, %v3918_v8  ;;  %3591 = vmatprep.mubr.msk.bf16.mxu1 %vm3919_vm1, %v3918_v8 }
 0xd3b   : > { %3595 = vmatprep.subr.bf16.mxu0 %v3918_v8  ;;  %3601 = vmatprep.subr.bf16.mxu1 %v3918_v8 }
 0xd40   : > { %3586 = vmatmul.mubr.msk.bf16.vlgmr.msra.gmra.mxu0 %vm937_vm2, %v1998_v48  ;;  %3592 = vmatmul.mubr.msk.bf16.vlgmr.msra.gmra.mxu1 %vm937_vm2, %v1999_v49 }
 0xd41   : > { %3597 = vmatprep.mubr.msk.bf16.mxu0 %vm3919_vm1, %v3918_v8  ;;  %3603 = vmatprep.mubr.msk.bf16.mxu1 %vm3919_vm1, %v3918_v8 }
 0xdf8   : > { %v2344_v51 = vpop.f32.mrf.mxu0  ;;  %v2390_v52 = vpop.f32.mrf.mxu1 }
 0xdf9   : > { %v2488_v53 = vsel %vm4238_vm3, %v2344_v51, -1e+30  ;;  %v2489_v55 = vsel %vm4238_vm3, %v2390_v52, -1e+30 }
 0xdfa   : > { %v3575_v56 = vpop.f32.mrf.mxu0  ;;  %v3581_v57 = vpop.f32.mrf.mxu1  ;;  %v2495_v60 = vsel %vm937_vm2, %v2489_v55, -inf  ;;  %v2492_v61 = vsel %vm937_vm2, %v2488_v53, -inf }
 0xdfb   : > { %2496 = vmax.xlane.f32.xlu1 %v2495_v60  ;;  %2493 = vmax.xlane.f32.xlu0 %v2492_v61 }
 0xdfc   : > { %v2347_v62 = vpop.f32.mrf.mxu0  ;;  %v2393_v5 = vpop.f32.mrf.mxu1 }
 0xdfe   : > { %v3576_v6 = vpop.f32.mrf.mxu0  ;;  %v3582_v7 = vpop.f32.mrf.mxu1 }
 0xe00   : > { %v2436_v9 = vpop.f32.mrf.mxu0  ;;  %v2482_v10 = vpop.f32.mrf.mxu1 }
 0xe01   : > { %v2490_v18 = vsel %vm4238_vm3, %v2436_v9, -1e+30  ;;  %v2491_v30 = vsel %vm4238_vm3, %v2482_v10, -1e+30 }
 0xe02   : > { %v3587_v19 = vpop.f32.mrf.mxu0  ;;  %v3593_v20 = vpop.f32.mrf.mxu1  ;;  %v2498_v22 = vsel %vm937_vm2, %v2490_v18, -inf  ;;  %v2501_v12 = vsel %vm937_vm2, %v2491_v30, -inf }
 0xe03   : > { %2499 = vmax.xlane.f32.xlu0 %v2498_v22 }
 0xe04   : > { %v2439_v23 = vpop.f32.mrf.mxu0  ;;  %v2485_v24 = vpop.f32.mrf.mxu1 }
 0xe06   : > { %v3588_v31 = vpop.f32.mrf.mxu0  ;;  %v3594_v11 = vpop.f32.mrf.mxu1 }
 0xe07   : > { %2502 = vmax.xlane.f32.xlu0 %v2501_v12 }
 0xe0c   : > { %2152 = vrot.lane.b32.xlu1 %v4429_v54, %s3926_s23 }
 0xe84   : > { %v2497_v26 = vpop.xlane.xlu1 %2496  ;;  %v2494_v29 = vpop.xlane.xlu0 %2493 }
 0xe85   : > { %v2505_v28 = vsub.f32 %v2489_v55, %v2497_v26  ;;  %v2504_v32 = vsub.f32 %v2488_v53, %v2494_v29 }
 0xe87   : > { %v2510_v33 = vmul.f32 1.442695, %v2505_v28  ;;  %v2508_v63 = vmul.f32 1.442695, %v2504_v32 }
 0xe88   : > { %v2153_v44 = vpop.permute.xlu1 %2152 }
 0xe89   : > { %3770 = vpow2.f32 %v2510_v33 }
 0xe8a   : > { %3772 = vpow2.f32 %v2508_v63 }
 0xe8c   : > { %v2500_v21 = vpop.xlane.xlu0 %2499 }
 0xe8d   : > { %v2506_v13 = vsub.f32 %v2490_v18, %v2500_v21 }
 0xe8f   : > { %v2512_v34 = vmul.f32 1.442695, %v2506_v13 }
 0xe90   : > { %v2503_v35 = vpop.xlane.xlu0 %2502 }
 0xe91   : > { %3774 = vpow2.f32 %v2512_v34  ;;  %v2507_v36 = vsub.f32 %v2491_v30, %v2503_v35 }
 0xe93   : > { %v2514_v3 = vmul.f32 1.442695, %v2507_v36 }
 0xe95   : > { %3776 = vpow2.f32 %v2514_v3 }
 0xe96   : > { %v4525_v4 = vpop.eup %3770 }
 0xe97   : > { %v4527_v37 = vpop.eup %3772  ;;  %v2519_v54 = vsel %vm937_vm2, %v4525_v4, 0.0 }
 0xe98   : > { %v2516_v38 = vsel %vm937_vm2, %v4527_v37, 0.0  ;;  %2520 = vadd.xlane.f32.xlu0 %v2519_v54 }
 0xe99   : > { %2517 = vadd.xlane.f32.xlu1 %v2516_v38 }
 0xe9e   : > { %v4533_v16 = vpop.eup %3774 }
 0xe9f   : > { %v2522_v39 = vsel %vm937_vm2, %v4533_v16, 0.0 }
 0xea0   : > { %2523 = vadd.xlane.f32.xlu1 %v2522_v39 }
 0xea2   : > { %v4537_v41 = vpop.eup %3776 }
 0xea3   : > { %v2525_v43 = vsel %vm937_vm2, %v4537_v41, 0.0 }
 0xea4   : > { %2526 = vadd.xlane.f32.xlu0 %v2525_v43 }
 0xeb1   : > { %2156 = vrot.lane.b32.xlu1 %v4439_v0, %s3926_s23 }
 0xeb5   : > { %2158 = vrot.lane.b32.xlu1 %v4447_v59, %s3926_s23 }
 0xeba   : > { %2154 = vrot.lane.b32.xlu0 %v4441_v58, %s3926_s23  ;;  %s4766_s23 = smov 24  }
 0xf21   : > { %v2521_v46 = vpop.xlane.xlu0 %2520 }
 0xf22   : > { %v2518_v47 = vpop.xlane.xlu1 %2517  ;;  %3778 = vrcp.f32 %v2521_v46 }
 0xf23   : > { %3780 = vrcp.f32 %v2518_v47 }
 0xf29   : > { %v2524_v48 = vpop.xlane.xlu1 %2523 }
 0xf2a   : > { %3782 = vrcp.f32 %v2524_v48 }
 0xf2d   : > { %v2157_v49 = vpop.permute.xlu1 %2156  ;;  %v2527_v51 = vpop.xlane.xlu0 %2526 }
 0xf2e   : > { %v2164_v52 = vcombine.low %v2153_v44, %v2157_v49  ;;  %v2165_v53 = vcombine.high %v2153_v44, %v2157_v49  ;;  %3784 = vrcp.f32 %v2527_v51 }
 0xf2f   : > { %v3779_v59 = vpop.eup %3778 }
 0xf30   : > { %v2172_v60 = vrot.slane %v2164_v52, %v4175_v40  ;;  %v2179_v58 = vrot.slane %v2165_v53, %v4175_v40  ;;  %v3781_v5 = vpop.eup %3780  ;;  %v2533_v19 = vmul.f32 %v3779_v59, %v2521_v46 }
 0xf31   : > { %v2159_v55 = vpop.permute.xlu1 %2158  ;;  %v2155_v0 = vpop.permute.xlu0 %2154  ;;  %v2532_v18 = vmul.f32 %v3781_v5, %v2518_v47 }
 0xf32   : > { %v2180_v56 = vcombine.low %v2155_v0, %v2159_v55  ;;  %v2181_v57 = vcombine.high %v2155_v0, %v2159_v55  ;;  %v2537_v29 = vsub.f32 2.0, %v2533_v19 }
 0xf33   : > { %v2536_v26 = vsub.f32 2.0, %v2532_v18 }
 0xf34   : > { %v2188_v61 = vrot.slane %v2180_v56, %v4175_v40  ;;  %v2195_v62 = vrot.slane %v2181_v57, %v4175_v40  ;;  %v2541_v38 = vmul.f32 %v3779_v59, %v2537_v29 }
 0xf35   : > { %v2540_v54 = vmul.f32 %v3781_v5, %v2536_v26 }
 0xf36   : > { %v2196_v6 = vcombine.low %v2172_v60, %v2188_v61  ;;  %v2197_v7 = vcombine.high %v2172_v60, %v2188_v61  ;;  %v2212_v9 = vcombine.low %v2179_v58, %v2195_v62  ;;  %v2213_v10 = vcombine.high %v2179_v58, %v2195_v62 }
 0xf37   : > { %v3783_v33 = vpop.eup %3782  ;;  %v2544_v56 = vmul.f32 %v4527_v37, %v2540_v54  ;;  %v2545_v57 = vmul.f32 %v4525_v4, %v2541_v38 }
 0xf38   : > { %v2204_v20 = vrot.slane %v2196_v6, %v4186_v50  ;;  %v2211_v22 = vrot.slane %v2197_v7, %v4186_v50  ;;  %v2220_v30 = vrot.slane %v2212_v9, %v4186_v50  ;;  %v2227_v23 = vrot.slane %v2213_v10, %v4186_v50 }
 0xf39   : > { %v2534_v44 = vmul.f32 %v3783_v33, %v2524_v48  ;;  %v2549_v6 = vpack.c.bf16 %v2545_v57, %v2545_v57  ;;  %v2548_v7 = vpack.c.bf16 %v2544_v56, %v2544_v56  ;;  %v3739_v57 = vld [vmem:[%s4728_s2 + $0x10] sm:$0xff]  }
 0xf3a   : > { %v2232_v24 = vcombine.low %v2204_v20, %v2211_v22  ;;  %v3367_v31 = vcombine.high %v2204_v20, %v2211_v22  ;;  %v2248_v11 = vcombine.low %v2220_v30, %v2227_v23  ;;  %v3368_v12 = vcombine.high %v2220_v30, %v2227_v23 }
 0xf3b   : > { %v3785_v13 = vpop.eup %3784  ;;  %v2538_v60 = vsub.f32 2.0, %v2534_v44 }
 0xf3c   : > { %v2239_v28 = vrot.slane %v2232_v24, %v4175_v40  ;;  %v2247_v32 = vrot.slane %v3367_v31, %v4175_v40  ;;  %v2255_v63 = vrot.slane %v2248_v11, %v4175_v40  ;;  %v2263_v21 = vrot.slane %v3368_v12, %v4175_v40 }
 0xf3d   : > { %v2535_v46 = vmul.f32 %v3785_v13, %v2527_v51  ;;  %v2542_v9 = vmul.f32 %v3783_v33, %v2538_v60 }
 0xf3e   : > { %v2264_v34 = vcombine.low %v2239_v28, %v2247_v32  ;;  %v2265_v35 = vcombine.high %v2239_v28, %v2247_v32  ;;  %v2280_v36 = vcombine.low %v2255_v63, %v2263_v21  ;;  %v2281_v3 = vcombine.high %v2255_v63, %v2263_v21 }
 0xf3f   : > { %v2539_v59 = vsub.f32 2.0, %v2535_v46  ;;  %v2546_v18 = vmul.f32 %v4533_v16, %v2542_v9 }
 0xf40   : > { %v2272_v39 = vrot.slane %v2264_v34, %v4186_v50  ;;  %v2279_v43 = vrot.slane %v2265_v35, %v4186_v50  ;;  %v2288_v47 = vrot.slane %v2280_v36, %v4186_v50  ;;  %v2295_v49 = vrot.slane %v2281_v3, %v4186_v50 }
 0xf41   : > { %v2543_v10 = vmul.f32 %v3785_v13, %v2539_v59  ;;  %v2550_v20 = vpack.c.bf16 %v2546_v18, %v2546_v18 }
 0xf42   : > { %v2296_v52 = vcombine.low %v2272_v39, %v2288_v47  ;;  %v2297_v53 = vcombine.high %v2272_v39, %v2288_v47  ;;  %v2298_v55 = vcombine.low %v2279_v43, %v2295_v49  ;;  %v2299_v0 = vcombine.high %v2279_v43, %v2295_v49  ;;  %v3738_v39 = vld [vmem:[%s4728_s2 + $0x18] sm:$0xff]  }
 0xf43   : > { %v2547_v19 = vmul.f32 %v4537_v41, %v2543_v10 }
 0xf44   : > { %v2300_v58 = vpack.c.bf16 %v2296_v52, %v2296_v52  ;;  %v2301_v61 = vpack.c.bf16 %v2297_v53, %v2297_v53  ;;  %v2302_v51 = vpack.c.bf16 %v2298_v55, %v2298_v55  ;;  %v2303_v5 = vpack.c.bf16 %v2299_v0, %v2299_v0 }
 0xf45   : > { %v2551_v22 = vpack.c.bf16 %v2547_v19, %v2547_v19 }
 0xf46   : > { %v2556_v62 = vsel %vm1191_vm4, %v2300_v58, 0  ;;  %v2602_v48 = vsel %vm1191_vm4, %v2301_v61, 0  ;;  %v2648_v4 = vsel %vm1191_vm4, %v2302_v51, 0  ;;  %v2694_v37 = vsel %vm1191_vm4, %v2303_v5, 0 }
 0xf47   : > { %3596 = vmatpush3.bf16.msra.mxu0 %v2556_v62  ;;  %3602 = vmatpush3.bf16.msra.mxu1 %v2602_v48 }
 0xf48   : > { %3607 = vmatprep.subr.bf16.mxu0 %v3918_v8  ;;  %3613 = vmatprep.subr.bf16.mxu1 %v3918_v8 }
 0xf4a   : > { %3598 = vmatmul.mubr.msk.bf16.vlgmr.msra.gmra.mxu0 %vm937_vm2, %v2548_v7  ;;  %3604 = vmatmul.mubr.msk.bf16.vlgmr.msra.gmra.mxu1 %vm937_vm2, %v2549_v6 }
 0xf4b   : > { %3608 = vmatpush3.bf16.msra.mxu0 %v2648_v4  ;;  %3614 = vmatpush3.bf16.msra.mxu1 %v2694_v37 }
 0xf4c   : > { %3609 = vmatprep.mubr.msk.bf16.mxu0 %vm3919_vm1, %v3918_v8  ;;  %3615 = vmatprep.mubr.msk.bf16.mxu1 %vm3919_vm1, %v3918_v8 }
 0xf4d   : > { %3619 = vmatprep.subr.bf16.mxu0 %v3918_v8  ;;  %3627 = vmatprep.subr.bf16.mxu1 %v3918_v8 }
 0xf52   : > { %3610 = vmatmul.mubr.msk.bf16.vlgmr.msra.gmra.mxu0 %vm937_vm2, %v2550_v20  ;;  %3616 = vmatmul.mubr.msk.bf16.vlgmr.msra.gmra.mxu1 %vm937_vm2, %v2551_v22 }
 0xf53   : > { %3623 = vmatprep.mubr.msk.bf16.mxu0 %vm3919_vm1, %v3918_v8  ;;  %3631 = vmatprep.mubr.msk.bf16.mxu1 %vm3919_vm1, %v3918_v8 }
 0xf54   : > { %3620 = vmatpush3.bf16.msra.mxu0 %v3738_v39 }
 0xf55   : > { %3621 = vmatprep.subr.bf16.mxu0 %v3918_v8 }
 0xf58   : > { %3622 = vmatpush3.bf16.msra.mxu0 %v3739_v57 }
 0xf59   : > { %3635 = vmatprep.subr.bf16.mxu0 %v3918_v8 }
0x100a   : > { %v2592_v16 = vpop.f32.mrf.mxu0  ;;  %v2638_v41 = vpop.f32.mrf.mxu1 }
0x100c   : > { %v3599_v30 = vpop.f32.mrf.mxu0  ;;  %v3605_v23 = vpop.f32.mrf.mxu1 }
0x100e   : > { %v2595_v24 = vpop.f32.mrf.mxu0  ;;  %v2641_v31 = vpop.f32.mrf.mxu1 }
0x1010   : > { %v3600_v11 = vpop.f32.mrf.mxu0  ;;  %v3606_v12 = vpop.f32.mrf.mxu1 }
0x1011   : > { %v2896_v12 = vrot.slane %v4420_v45, %v1533_v42  ;;  %v3740_v42 = vld [vmem:[%s4729_s3 + $0x18] sm:$0xff]  }
0x1012   : > { %v2684_v26 = vpop.f32.mrf.mxu0  ;;  %v2730_v29 = vpop.f32.mrf.mxu1  ;;  %3628 = vmatpush3.bf16.msra.mxu1 %v3740_v42 }
0x1013   : > { %v2736_v28 = vcombine.low %v2592_v16, %v2684_v26  ;;  %v2737_v32 = vcombine.high %v2592_v16, %v2684_v26  ;;  %v2752_v33 = vcombine.low %v2638_v41, %v2730_v29  ;;  %v2753_v63 = vcombine.high %v2638_v41, %v2730_v29  ;;  %3629 = vmatprep.subr.bf16.mxu1 %v3918_v8 }
0x1014   : > { %v3611_v21 = vpop.f32.mrf.mxu0  ;;  %v3617_v13 = vpop.f32.mrf.mxu1 }
0x1015   : > { %v2744_v34 = vrot.slane %v2736_v28, %v4175_v40  ;;  %v2751_v35 = vrot.slane %v2737_v32, %v4175_v40  ;;  %v2760_v36 = vrot.slane %v2752_v33, %v4175_v40  ;;  %v2767_v3 = vrot.slane %v2753_v63, %v4175_v40 }
0x1016   : > { %v2687_v54 = vpop.f32.mrf.mxu0  ;;  %v2733_v38 = vpop.f32.mrf.mxu1 }
0x1017   : > { %v2768_v43 = vcombine.low %v2744_v34, %v2760_v36  ;;  %v2769_v44 = vcombine.high %v2744_v34, %v2760_v36  ;;  %v2784_v46 = vcombine.low %v2751_v35, %v2767_v3  ;;  %v2785_v47 = vcombine.high %v2751_v35, %v2767_v3  ;;  %v3742_v54 = vld [vmem:[%s4731_s5 + $0x38] sm:$0xff]   ;;  %v3743_v38 = vld [vmem:[%s4731_s5 + $0x30] sm:$0xff]  }
0x1018   : > { %v3612_v49 = vpop.f32.mrf.mxu0  ;;  %v3618_v52 = vpop.f32.mrf.mxu1 }
0x1019   : > { %v2776_v53 = vrot.slane %v2768_v43, %v4186_v50  ;;  %v2783_v55 = vrot.slane %v2769_v44, %v4186_v50  ;;  %v2792_v0 = vrot.slane %v2784_v46, %v4186_v50  ;;  %v2799_v56 = vrot.slane %v2785_v47, %v4186_v50 }
0x101a   : > { %v2969_v46 = vrot.slane %v4420_v45, %v1606_v25  ;;  %v2974_v52 = vrot.slane %v4420_v45, %v1611_v2  ;;  %v3745_v25 = vld [vmem:[%s4731_s5 + $0x20] sm:$0xff]  }
0x101b   : > { %v2804_v60 = vcombine.low %v2776_v53, %v2783_v55  ;;  %v3377_v59 = vcombine.high %v2776_v53, %v2783_v55  ;;  %v2820_v58 = vcombine.low %v2792_v0, %v2799_v56  ;;  %v3378_v61 = vcombine.high %v2792_v0, %v2799_v56  ;;  %v3744_v56 = vld [vmem:[%s4731_s5 + $0x28] sm:$0xff]   ;;  %v3391_v2 = vld [vmem:[%s4730_s4 + $0x1] ss:$0 sm:$0xff] }
0x101d   : > { %v2811_v62 = vrot.slane %v2804_v60, %v4175_v40  ;;  %v2819_v48 = vrot.slane %v3377_v59, %v4175_v40  ;;  %v2827_v51 = vrot.slane %v2820_v58, %v4175_v40  ;;  %v2835_v5 = vrot.slane %v3378_v61, %v4175_v40 }
0x101f   : > { %v2837_v6 = vcombine.high %v2811_v62, %v2819_v48  ;;  %v2853_v7 = vcombine.high %v2827_v51, %v2835_v5  ;;  %v2836_v9 = vcombine.low %v2811_v62, %v2819_v48  ;;  %v2852_v10 = vcombine.low %v2827_v51, %v2835_v5 }
0x1020   : > { %v3059_v51 = vrot.slane %v4420_v45, %v1693_v27 }
0x1021   : > { %v2851_v4 = vrot.slane %v2837_v6, %v4186_v50  ;;  %v2867_v37 = vrot.slane %v2853_v7, %v4186_v50  ;;  %v2844_v18 = vrot.slane %v2836_v9, %v4186_v50  ;;  %v2860_v19 = vrot.slane %v2852_v10, %v4186_v50 }
0x1023   : > { %v2870_v20 = vcombine.low %v2851_v4, %v2867_v37  ;;  %v2869_v22 = vcombine.high %v2844_v18, %v2860_v19  ;;  %v2868_v16 = vcombine.low %v2844_v18, %v2860_v19  ;;  %v2871_v40 = vcombine.high %v2851_v4, %v2867_v37 }
0x1025   : > { %2877 = vrot.lane.b32.xlu1 %v2870_v20, %s3927_s21  ;;  %2873 = vrot.lane.b32.xlu0 %v2869_v22, %s3928_s11 }
0x1029   : > { %2881 = vrot.lane.b32.xlu0 %v2871_v40, %s4766_s23  ;;  %v3746_v40 = vld [vmem:[#allocation5 + $0x8] sm:$0xff]  }
0x1097   : > { %v2874_v41 = vpop.permute.xlu0 %2873  ;;  %v2878_v30 = vpop.permute.xlu1 %2877 }
0x1098   : > { %v2884_v23 = vsel %vm937_vm2, %v2868_v16, %v2874_v41 }
0x1099   : > { %v2885_v31 = vsel %vm1522_vm5, %v2884_v23, %v2878_v30  ;;  %v3128_v30 = vld [vmem:[%s4733_s7] sm:$0x3] }
0x109a   : > { %v3145_v23 = vrot.slane %v3128_v30, %v4131_v15 }
0x109b   : > { %v2882_v24 = vpop.permute.xlu0 %2881 }
0x109c   : > { %v2886_v11 = vsel %vm1524_vm6, %v2885_v31, %v2882_v24 }
0x109d   : > { %v2887_v50 = vpack.c.bf16 %v2886_v11, %v2886_v11  ;;  %v3150_v11 = vrot.slane %v3128_v30, %v4139_v17 }
0x109f   : > { %3624 = vmatmul.mubr.msk.bf16.vlgmr.msra.gmra.mxu0 %vm398_vm0, %v2887_v50 }
0x10a0   : > { %3643 = vmatprep.mubr.msk.bf16.mxu0 %vm3919_vm1, %v3918_v8  ;;  %3636 = vmatpush3.bf16.msra.mxu0 %v3742_v54 }
0x10a1   : > { %3637 = vmatprep.subr.bf16.mxu0 %v3918_v8 }
0x10a4   : > { %3638 = vmatpush3.bf16.msra.mxu0 %v3743_v38 }
0x10a5   : > { %3639 = vmatprep.subr.bf16.mxu0 %v3918_v8 }
0x10a8   : > { %3640 = vmatpush3.bf16.msra.mxu0 %v3744_v56 }
0x10a9   : > { %3641 = vmatprep.subr.bf16.mxu0 %v3918_v8 }
0x10ac   : > { %3642 = vmatpush3.bf16.msra.mxu0 %v3745_v25 }
0x115f   : > { %v2946_v26 = vpop.f32.mrf.mxu0 }
0x1160   : > { %v2947_v29 = vadd.f32 %v2946_v26, %v2896_v12  ;;  %v3408_v26 = vld [vmem:[%s4735_s9] ss:$0 sm:$0xff] }
0x1161   : > { %v3625_v28 = vpop.f32.mrf.mxu0 }
0x1162   : > { %v2952_v32 = vadd.f32 %v2947_v29, %v4403_v1  ;;  %v3741_v1 = vld [vmem:[%s4729_s3 + $0x10] sm:$0xff]  }
0x1163   : > { %v2949_v33 = vpop.f32.mrf.mxu0  ;;  %3630 = vmatpush3.bf16.msra.mxu1 %v3741_v1 }
0x1164   : > { %v2953_v63 = vsel %vm398_vm0, %v2952_v32, 0.0  ;;  %3647 = vmatprep.subr.bf16.mxu1 %v3918_v8 }
0x1165   : > { %2954 = vadd.xlane.f32.xlu1 %v2953_v63  ;;  %v3626_v21 = vpop.f32.mrf.mxu0 }
0x11ee   : > { %v2955_v13 = vpop.xlane.xlu1 %2954 }
0x11ef   : > { %v2956_v34 = vmul.f32 0.03125, %v2955_v13 }
0x11f1   : > { %v2957_v35 = vsub.f32 %v2952_v32, %v2956_v34 }
0x11f3   : > { %v2958_v36 = vmul.f32 %v2957_v35, %v2957_v35 }
0x11f5   : > { %v2959_v3 = vsel %vm398_vm0, %v2958_v36, 0.0 }
0x11f6   : > { %2960 = vadd.xlane.f32.xlu0 %v2959_v3 }
0x127f   : > { %v2961_v39 = vpop.xlane.xlu0 %2960 }
0x1280   : > { %v2962_v43 = vmul.f32 0.03125, %v2961_v39 }
0x1282   : > { %v2963_v44 = vadd.f32 1e-05, %v2962_v43 }
0x1284   : > { %3786 = vrsqrt.f32 %v2963_v44 }
0x1291   : > { %v3787_v47 = vpop.eup %3786 }
0x1292   : > { %v2965_v49 = vmul.f32 %v3787_v47, %v2957_v35 }
0x1294   : > { %v2970_v53 = vmul.f32 %v2969_v46, %v2965_v49 }
0x1296   : > { %v2975_v55 = vadd.f32 %v2974_v52, %v2970_v53 }
0x1298   : > { %v2976_v0 = vpack.c.bf16 %v2975_v55, %v2975_v55 }
0x129a   : > { %3632 = vmatmul.mubr.msk.bf16.vlgmr.msra.gmra.mxu1 %vm398_vm0, %v2976_v0 }
0x129b   : > { %3651 = vmatprep.mubr.msk.bf16.mxu1 %vm3919_vm1, %v3918_v8  ;;  %3648 = vmatpush3.bf16.msra.mxu1 %v3746_v40 }
0x129c   : > { %3649 = vmatprep.subr.bf16.mxu1 %v3918_v8 }
0x129f   : > { %3650 = vmatpush3.bf16.msra.mxu1 %v3747_v14 }
0x135a   : > { %v3039_v57 = vpop.f32.mrf.mxu1 }
0x135b   : > { %v3040_v60 = vadd.f32 %v3391_v2, %v3039_v57 }
0x135c   : > { %v3633_v59 = vpop.f32.mrf.mxu1 }
0x135d   : > { %v3045_v58 = vmax.f32 %v3040_v60, 0.0 }
0x135e   : > { %v3042_v61 = vpop.f32.mrf.mxu1 }
0x135f   : > { %v3046_v62 = vpack.c.bf16 %v3045_v58, %v3045_v58 }
0x1360   : > { %v3634_v48 = vpop.f32.mrf.mxu1 }
0x1361   : > { %3644 = vmatmul.mubr.msk.bf16.vlgmr.msra.gmra.mxu0 %vm1719_vm7, %v3046_v62 }
0x1421   : > { %v3121_v5 = vpop.f32.mrf.mxu0 }
0x1422   : > { %v3122_v6 = vadd.f32 %v3121_v5, %v3059_v51 }
0x1423   : > { %v3645_v7 = vpop.f32.mrf.mxu0 }
0x1424   : > { %v3127_v9 = vadd.f32 %v3122_v6, %v2952_v32 }
0x1425   : > { %v3124_v10 = vpop.f32.mrf.mxu0 }
0x1426   : > { %v3129_v4 = vsel %vm398_vm0, %v3127_v9, 0.0 }
0x1427   : > { %3130 = vadd.xlane.f32.xlu0 %v3129_v4  ;;  %v3646_v37 = vpop.f32.mrf.mxu0 }
0x14b0   : > { %v3131_v18 = vpop.xlane.xlu0 %3130 }
0x14b1   : > { %v3132_v19 = vmul.f32 0.03125, %v3131_v18 }
0x14b3   : > { %v3133_v20 = vsub.f32 %v3127_v9, %v3132_v19 }
0x14b5   : > { %v3134_v22 = vmul.f32 %v3133_v20, %v3133_v20 }
0x14b7   : > { %v3135_v16 = vsel %vm398_vm0, %v3134_v22, 0.0 }
0x14b8   : > { %3136 = vadd.xlane.f32.xlu1 %v3135_v16 }
0x1541   : > { %v3137_v27 = vpop.xlane.xlu1 %3136 }
0x1542   : > { %v3138_v45 = vmul.f32 0.03125, %v3137_v27 }
0x1544   : > { %v3139_v41 = vadd.f32 1e-05, %v3138_v45 }
0x1546   : > { %3788 = vrsqrt.f32 %v3139_v41 }
0x1553   : > { %v3789_v24 = vpop.eup %3788 }
0x1554   : > { %v3141_v31 = vmul.f32 %v3789_v24, %v3133_v20 }
0x1556   : > { %v3146_v50 = vmul.f32 %v3145_v23, %v3141_v31 }
0x1558   : > { %v3151_v8 = vadd.f32 %v3150_v11, %v3146_v50 }
0x155a   : > { %v3152_v12 = vpack.c.bf16 %v3151_v8, %v3151_v8 }
0x155c   : > { %3652 = vmatmul.mubr.msk.bf16.vlgmr.msra.gmra.mxu1 %vm398_vm0, %v3152_v12 }
0x161c   : > { %v3213_v15 = vpop.f32.mrf.mxu1 }
0x161d   : > { %v3214_v29 = vadd.f32 %v3408_v26, %v3213_v15 }
0x161e   : > { %v3653_v17 = vpop.f32.mrf.mxu1 }
0x161f   : > { %3219 = vst [vmem:[%s389_s19] sm:$0xff] %v3214_v29 }
0x1620   : > { %v3216_v28 = vpop.f32.mrf.mxu1 }
0x1621   : > { %3857 = shalt.err (!%p3854_p0)
}
0x1622   : > { %s3858_s23 = scalar_lea.hbm %s4683_s29, 128  ;;  %s3862_s11 = scalar_lea.hbm %s4736_s10, 256 }
0x1623   : > { %p3859_p5 = scmp.ne.s32.totalorder %s4683_s29, %s3858_s23  ;;  %p3863_p1 = scmp.lt.s32.totalorder %s4683_s29, %s4736_s10 }
0x1624   : > { %p3864_p4 = scmp.lt.s32.totalorder %s3862_s11, %s3858_s23 }
0x1625   : > { %p3860_p9 = pnand %p3859_p5, %p4768_p3 }
0x1626   : > { %p3865_p6 = por %p3864_p4, %p3863_p1 }
0x1627   : > { %p3861_p12 = pneg %p3860_p9 }
0x1629   : > { %p3866_p8 = pnand %p3865_p6, %p3861_p12 }
0x162b   : > { %3869 = shalt.err (!%p3866_p8)
}
0x162c   : > { %3661 = dma.vmem_to_hbm [thread:$0]  (%p4768_p3), %s4685_s13, 128, %s4683_s29, %s3221_s25   ;;  %v3654_v32 = vpop.f32.mrf.mxu1 }
0x162d PF: > { %s4769_s18 = sld [smem:[#allocation11_spill]]  ;;  %p4772_p7 = scmp.ge.s32.totalorder %s3912_s16, 2 }
0x162e   : > { %s4770_s19 = sld [smem:[#allocation12_spill]] }
0x1633   : > { %s3246_s26 = sand.u32 1, %s4769_s18  }
0x1634   : > { %p4771_p11 = scmp.ne.s32.totalorder %s4770_s19, 0  ;;  %s3247_s27 = scalar_lea.sflag [#allocation4], %s3246_s26 }
0x1636   : > { %p3672_p10 = pnand %p4772_p7, %p4771_p11 }
0x1638   : > { %p3673_p2 = pneg %p3672_p10 }
0x163a   : > { %3895 = dma.done.wait (%p3673_p2), %s3247_s27, 128  }
0x163b   : > { %3897 = vsyncadd (%p3673_p2), %s3247_s27, 4294967168  ;;  %s4773_s16 = sld [smem:[#allocation13_spill]]  ;;  %s4775_s13 = smov %s3904_s14 }
0x163c   : > { %s4774_s22 = sld [smem:[#allocation14_spill]]  ;;  %s4776_s14 = smov %s3908_s15 }
0x1641   : > { %p24_p13 = scmp.ge.s32.totalorder %s4773_s16, 4  }
0x1642   : > { %s4777_s15 = smov %s4774_s22 }
0x1643   :  { %26 = sbr.rel (!%p24_p13) target bundleno = 8 (0x8), region = 115 }
0x1648   :  { %3252 = vsyncpa [#allocation3], 1 }
0x1649   :  { %3254 = vsyncpa [#allocation3 + $0x1], 1 }
0x164a   :  { %3255 = vsyncpa [#allocation6], 1 }
0x164b   :  { %3256 = vsyncpa [#allocation4], 1 }
0x164c   :  { %3258 = vsyncpa [#allocation4 + $0x1], 1 }

// kernel: tpu_custom_call.1
= control target key start
LH: loop header
LB: loop body
LE: loop exit
PB: predicated region body
PF: predicated region fallthrough
CT: control target
= control target key end

     0   :  { %s4726_s0 = inlined_call_operand.hbm [shape: f32[2,8,32], index: 0, kind: input, shape index: {}]   ;;  %s4727_s1 = inlined_call_operand.vmem [shape: bf16[2,32,96], index: 1, kind: input, shape index: {}]   ;;  %s4728_s2 = inlined_call_operand.vmem [shape: bf16[2,32,32], index: 2, kind: input, shape index: {}]   ;;  %s4729_s3 = inlined_call_operand.vmem [shape: bf16[2,32,64], index: 3, kind: input, shape index: {}]   ;;  %s4730_s4 = inlined_call_operand.vmem [shape: f32[2,1,64], index: 4, kind: input, shape index: {}]   ;;  %s4731_s5 = inlined_call_operand.vmem [shape: bf16[2,64,32], index: 5, kind: input, shape index: {}]   ;;  %s4732_s6 = inlined_call_operand.vmem [shape: f32[2,6,32], index: 6, kind: input, shape index: {}]   ;;  %s4733_s7 = inlined_call_operand.vmem [shape: f32[2,32], index: 7, kind: input, shape index: {}]   ;;  %s4734_s8 = inlined_call_operand.hbm [shape: bf16[32,128], index: 8, kind: input, shape index: {}]   ;;  %s4735_s9 = inlined_call_operand.vmem [shape: f32[1,128], index: 9, kind: input, shape index: {}]   ;;  %s4736_s10 = inlined_call_operand.hbm [shape: f32[2,8,128], index: 10, kind: output, shape index: {}]  }
   0x1   :  { %4747 = sst [smem:[#allocation15_spill]] %s4734_s8 }
   0x2   :  { %15 = vsyncpa [#allocation3], 0 }
   0x3   :  { %17 = vsyncpa [#allocation3 + $0x1], 0 }
   0x4   :  { %18 = vsyncpa [#allocation6], 0 }
   0x5   :  { %19 = vsyncpa [#allocation4], 0 }
   0x6   :  { %21 = vsyncpa [#allocation4 + $0x1], 0  ;;  %s3986_s13 = smov 0   ;;  %s3988_s14 = smov 0  }
   0x7   :  { %s3990_s15 = smov 0   ;;  %s3992_s16 = smov 0  }
   0x8 LB: > { %4748 = sst [smem:[#allocation11_spill]] %s3900_s13  ;;  %s4007_s17 = sadd.s32 4294967295, %s3912_s16   ;;  %s3912_s16 = sphi %s3992_s16, %s4773_s16   ;;  %s3908_s15 = sphi %s3990_s15, %s4777_s15   ;;  %s3904_s14 = sphi %s3988_s14, %s4776_s14   ;;  %s3900_s13 = sphi %s3986_s13, %s4775_s13  }
   0x9   : > { %s3314_s18 = sadd.s32 4294967294, %s3912_s16   ;;  %p47_p0 = scmp.ne.s32.totalorder %s3904_s14, %s3900_s13 }
   0xa   : > { %p4741_p1 = scmp.eq.s32.totalorder %s4007_s17, 0  ;;  %p266_p3 = scmp.eq.s32.totalorder %s3314_s18, 1 }
   0xb   : > { %p3315_p5 = scmp.ge.s32.totalorder %s3912_s16, 1  ;;  %p273_p7 = scmp.lt.s32.totalorder %s3912_s16, 3 }
   0xc   : > { %p4016_p4 = por %p4741_p1, %p47_p0  ;;  %p4021_p6 = por %p266_p3, %p47_p0 }
   0xd   : > { %p4026_p8 = pnand %p3315_p5, %p273_p7  ;;  %s3914_s22 = smov [#allocation5]  }
   0xe   : > { %s4749_s19 = scalar_select %p4016_p4, 1, 0 }
   0xf   : > { %s4750_s20 = scalar_select %p4021_p6, 1, 0 }
  0x10   : > { %s4752_s21 = scalar_select %p4026_p8, 1, 0 }
  0x11   : > { %4751 = sst [smem:[#allocation12_spill]] %s4750_s20  ;;  %s306_s23 = sshll.u32 %s3914_s22, 4  ;;  %s307_s23 = int_to_ptr.vmem [resolvable:$true] %s306_s23 }
  0x12   : > { %p3663_p9 = pneg %p4026_p8  ;;  %s4040_s25 = sadd.s32 1, %s3912_s16  }
  0x13   : > { %4754 = sst [smem:[#allocation13_spill]] %s4040_s25  ;;  %s34_s26 = sadd.s32 1, %s3908_s15 }
  0x14   : > { %p4035_p11 = pnand %p3663_p9, %p4741_p1  ;;  %s31_s27 = ssub.s32 %s3912_s16, %s4040_s25 }
  0x15   : > { %s3801_s28 = scalar_lea.vmem %s307_s23, 256  ;;  %p3809_p5 = scmp.lt.s32.totalorder %s307_s23, %s307_s23 }
  0x16   : > { %p3792_p12 = pneg %p4035_p11  ;;  %p3802_p13 = scmp.ne.s32.totalorder %s307_s23, %s3801_s28 }
  0x17   : > { %p3810_p7 = scmp.lt.s32.totalorder %s3801_s28, %s3801_s28 }
  0x18   : > { %p3804_p0 = pnand %p3802_p13, %p3792_p12 }
  0x19   : > { %p3811_p10 = por %p3810_p7, %p3809_p5 }
  0x1a   : > { %p3805_p3 = pneg %p3804_p0 }
  0x1c   : > { %p3812_p2 = pnand %p3811_p10, %p3805_p3 }
  0x1e   : > { %3815 = shalt.err (!%p3812_p2)
}
  0x1f   : > { %s3915_s29 = smov 64   ;;  %s3916_s30 = smov 4  }
  0x20   : > { %s4755_s8 = sld [smem:[#allocation15_spill]]  ;;  %p32_p9 = scmp.eq.s32.totalorder %s31_s27, 0 }
  0x21   : > { %p41_p12 = scmp.ne.s32.totalorder %s3908_s15, %s3904_s14  ;;  %p42_p10 = scmp.eq.s32.totalorder %s3912_s16, 0 }
  0x22   : > { %p3676_p2 = scmp.lt.s32.totalorder %s3912_s16, 2  ;;  %p4757_p0 = scmp.eq.s32.totalorder %s4007_s17, 1 }
  0x23   : > { %s4057_s18 = scalar_select %p32_p9, %s3908_s15, %s34_s26  }
  0x24   : > { %p43_p13 = por %p42_p10, %p41_p12  ;;  %p4061_p3 = por %p4757_p0, %p41_p12 }
  0x25   : > { %4756 = sst [smem:[#allocation14_spill]] %s4057_s18  ;;  %s323_s28 = sand.u32 1, %s3908_s15  }
  0x26   : > { %3666 = dma.hbm_to_vmem [thread:$0]  (!%p4035_p11), %s4755_s8, 256, %s307_s23, [#allocation6], %s3915_s29, %s3915_s29, %s3916_s30  }
  0x27   : > { %s4758_s22 = scalar_select %p4061_p3, 1, 0 }
  0x28   : > { %s3319_s25 = sshll.u32 %s3912_s16, 7  ;;  %s3318_s20 = sshll.u32 %s323_s28, 3 }
  0x29   : > { %s4070_s11 = scalar_lea.hbm %s4726_s0, %s3319_s25  ;;  %s327_s23 = scalar_lea.vmem [#allocation2], %s3318_s20 }
  0x2a   : > { %s334_s26 = sshll.u32 %s327_s23, 4  ;;  %p4072_p11 = pnand %p3676_p2, %p43_p13  ;;  %s335_s26 = int_to_ptr.vmem [resolvable:$true] %s334_s26 }
  0x2b   : > { %s324_s29 = scalar_lea.sflag [#allocation3], %s323_s28  ;;  %s3816_s30 = scalar_lea.hbm %s4070_s11, 128 }
  0x2c   : > { %p3817_p5 = scmp.ne.s32.totalorder %s4070_s11, %s3816_s30  ;;  %p3818_p7 = pneg %p4072_p11 }
  0x2d   : > { %s3821_s12 = scalar_lea.hbm %s4726_s0, 256  ;;  %p3822_p10 = scmp.lt.s32.totalorder %s4070_s11, %s4726_s0 }
  0x2e   : > { %p3819_p9 = pnand %p3818_p7, %p3817_p5  ;;  %p3823_p2 = scmp.lt.s32.totalorder %s3821_s12, %s3816_s30 }
  0x30   : > { %p3820_p12 = pneg %p3819_p9  ;;  %p3824_p13 = por %p3823_p2, %p3822_p10 }
  0x32   : > { %p3825_p0 = pnand %p3824_p13, %p3820_p12 }
  0x34   : > { %3828 = shalt.err (!%p3825_p0)
}
  0x35   : > { %s3829_s23 = scalar_lea.vmem %s335_s26, 128  ;;  %s3917_s28 = smov [#allocation2]  }
  0x36   : > { %p3830_p1 = scmp.ne.s32.totalorder %s335_s26, %s3829_s23  ;;  %s3834_s8 = sshll.u32 %s3917_s28, 4  ;;  %s3835_s8 = int_to_ptr.vmem [resolvable:$false] %s3834_s8 }
  0x37   : > { %s3836_s18 = scalar_lea.vmem %s3835_s8, 256  ;;  %p3837_p5 = scmp.lt.s32.totalorder %s335_s26, %s3835_s8 }
  0x38   : > { %p3832_p6 = pnand %p3830_p1, %p3818_p7  ;;  %p3838_p9 = scmp.lt.s32.totalorder %s3836_s18, %s3829_s23 }
  0x3a   : > { %p3833_p3 = pneg %p3832_p6  ;;  %p3839_p4 = por %p3838_p9, %p3837_p5 }
  0x3c   : > { %p3840_p8 = pnand %p3839_p4, %p3833_p3 }
  0x3e   : > { %3843 = shalt.err (!%p3840_p8)
}
  0x3f   : > { %3670 = dma.hbm_to_vmem [thread:$0]  (!%p4072_p11), %s4070_s11, 128, %s335_s26, %s324_s29  }
  0x40   : > { %p4760_p12 = scmp.ne.s32.totalorder %s4752_s21, 0 }
  0x41   : > { %s4093_s30 = sand.u32 (!%p4760_p12), 1, %s3904_s14   ;;  %p4761_p1 = scmp.ne.s32.totalorder (!%p4760_p12), %s4749_s19, 0 }
  0x42   : > { %343 = sbr.rel (%p4760_p12) target bundleno = 5677 (0x162d), region = 60  ;;  %s4745_s13 = sshll.u32 (!%p4760_p12), %s4093_s30, 3 }
  0x43   : > { %s346_s8 = scalar_lea.sflag (!%p4760_p12), [#allocation3], %s4093_s30  ;;  %s349_s18 = scalar_lea.vmem (!%p4760_p12), [#allocation2], %s4745_s13 }
  0x47   : > { %3887 = dma.done.wait (%p4761_p1), %s346_s8, 128  }
  0x48   : > { %3889 = vsyncadd (%p4761_p1), %s346_s8, 4294967168  ;;  %p4762_p4 = scmp.eq.s32.totalorder %s4007_s17, 0 }
  0x4a   : > { %3891 = dma.done.wait (%p4762_p4), [#allocation6], 256   ;;  %p4763_p6 = pmov %p4762_p4 }
  0x4b   : > { %vm398_vm0 = vcmask 261120   ;;  %v4107_v0 = vld [vmem:[%s349_s18] sm:$0xff]  ;;  %v3918_v8 = vmov 0.0   ;;  %vm3919_vm1 = vmmov 0   ;;  %v391_v13 = vlaneseq  ;;  %s3920_s25 = smov 104   ;;  %s3921_s12 = smov 120  }
  0x4c   : > { %3893 = vsyncadd (%p4763_p6), [#allocation6], 4294967040  ;;  %v399_v1 = vsel %vm398_vm0, %v4107_v0, 0.0  ;;  %v3726_v7 = vld [vmem:[%s4727_s1 + $0x8] sm:$0xff]   ;;  %3479 = vmatprep.subr.bf16.mxu0 %v3918_v8  ;;  %3483 = vmatprep.mubr.msk.bf16.mxu0 %vm3919_vm1, %v3918_v8  ;;  %v3727_v9 = vld [vmem:[%s4727_s1] sm:$0xff]   ;;  %s3922_s24 = smov 112  }
  0x4d   : > { %400 = vadd.xlane.f32.xlu0 %v399_v1  ;;  %3480 = vmatpush3.bf16.msra.mxu0 %v3726_v7  ;;  %v4128_v14 = vshrl.u32 %v391_v13, 7  ;;  %v4136_v16 = vld [vmem:[%s4732_s6] sm:$0x3f]  ;;  %s3923_s20 = smov 96   ;;  %v3924_v32 = vmov 1983009808  }
  0x4e   : > { %3487 = vmatprep.subr.bf16.mxu1 %v3918_v8  ;;  %3481 = vmatprep.subr.bf16.mxu0 %v3918_v8  ;;  %v496_v33 = vunpack.c.l.s4 %v3924_v32  ;;  %v3925_v36 = vmov 1934713408   ;;  %vm937_vm2 = vcmask 64512   ;;  %s3926_s23 = smov 64   ;;  %vm1191_vm4 = vcmask 1043456   ;;  %s3927_s21 = smov 16  }
  0x4f   : > { %3489 = vmatprep.mubr.msk.bf16.mxu1 %vm3919_vm1, %v3918_v8  ;;  %v4131_v15 = vsub.s32 0, %v4128_v14  ;;  %v4139_v17 = vsub.s32 1, %v4128_v14  ;;  %v528_v37 = vunpack.c.l.s4 %v3925_v36  ;;  %s3928_s11 = smov 8   ;;  %s4746_s26 = smov 24   ;;  %vm1522_vm5 = vcmask 130048  }
  0x50   : > { %v497_v34 = vunpack.c.0.s8 %v496_v33  ;;  %vm1524_vm6 = vcmask 195584   ;;  %vm1719_vm7 = vcmask 523264   ;;  %s3413_s8 = sshll.u32 %s4007_s17, 7  ;;  %s4767_s18 = sshll.u32 %s4093_s30, 3 }
  0x51   : > { %3482 = vmatpush3.bf16.msra.mxu0 %v3727_v9  ;;  %v416_v18 = vrot.slane %v4136_v16, %v4131_v15  ;;  %v421_v21 = vrot.slane %v4136_v16, %v4139_v17  ;;  %v529_v44 = vunpack.c.0.s8 %v528_v37  ;;  %s389_s19 = scalar_lea.vmem [#allocation7], %s4767_s18  ;;  %s4683_s29 = scalar_lea.hbm %s4736_s10, %s3413_s8 }
  0x52   : > { %3493 = vmatprep.subr.bf16.mxu0 %v3918_v8  ;;  %v4175_v40 = vsub.s32 %v497_v34, %v4128_v14  ;;  %s3234_s13 = sshll.u32 %s389_s19, 4  ;;  %p4768_p3 = scmp.ne.s32.totalorder %s4758_s22, 0  ;;  %s4685_s13 = int_to_ptr.vmem [resolvable:$true] %s3234_s13 }
  0x53   : > { %v4186_v50 = vsub.s32 %v529_v44, %v4128_v14  ;;  %s3844_s17 = scalar_lea.vmem %s4685_s13, 128 }
  0x54   : > { %p3845_p8 = scmp.ne.s32.totalorder %s4685_s13, %s3844_s17 }
  0x56   : > { %p3846_p11 = pnand %p3845_p8, %p4768_p3 }
  0x58   : > { %p3847_p7 = pneg %p3846_p11 }
  0xd6   : > { %v401_v2 = vpop.xlane.xlu0 %400 }
  0xd7   : > { %v403_v3 = vmul.f32 0.03125, %v401_v2 }
  0xd9   : > { %v404_v4 = vsub.f32 %v4107_v0, %v403_v3 }
  0xdb   : > { %v405_v5 = vmul.f32 %v404_v4, %v404_v4 }
  0xdd   : > { %v406_v6 = vsel %vm398_vm0, %v405_v5, 0.0 }
  0xde   : > { %407 = vadd.xlane.f32.xlu0 %v406_v6 }
 0x167   : > { %v408_v10 = vpop.xlane.xlu0 %407 }
 0x168   : > { %v409_v11 = vmul.f32 0.03125, %v408_v10 }
 0x16a   : > { %v410_v12 = vadd.f32 1e-05, %v409_v11 }
 0x16c   : > { %3748 = vrsqrt.f32 %v410_v12 }
 0x179   : > { %v3749_v19 = vpop.eup %3748 }
 0x17a   : > { %v412_v20 = vmul.f32 %v3749_v19, %v404_v4 }
 0x17c   : > { %v417_v22 = vmul.f32 %v416_v18, %v412_v20 }
 0x17e   : > { %v422_v23 = vadd.f32 %v421_v21, %v417_v22 }
 0x180   : > { %v423_v24 = vpack.c.bf16 %v422_v23, %v422_v23 }
 0x182   : > { %3484 = vmatmul.mubr.msk.bf16.vlgmr.msra.gmra.mxu0 %vm398_vm0, %v423_v24 }
 0x183   : > { %3495 = vmatprep.mubr.msk.bf16.mxu0 %vm3919_vm1, %v3918_v8 }
 0x242   : > { %v4148_v25 = vpop.f32.mrf.mxu0 }
 0x243   : > { %490 = vrot.lane.b32.xlu0 %v4148_v25, %s3920_s25  ;;  %484 = vrot.lane.b32.xlu1 %v4148_v25, %s3921_s12 }
 0x244   : > { %v3485_v26 = vpop.f32.mrf.mxu0 }
 0x246   : > { %v480_v27 = vpop.f32.mrf.mxu0 }
 0x247   : > { %487 = vrot.lane.b32.xlu1 %v4148_v25, %s3922_s24 }
 0x248   : > { %v3486_v28 = vpop.f32.mrf.mxu0 }
 0x24b   : > { %633 = vrot.lane.b32.xlu1 %v4148_v25, %s3923_s20 }
 0x2b5   : > { %v4158_v29 = vpop.permute.xlu1 %484  ;;  %v4166_v31 = vpop.permute.xlu0 %490 }
 0x2b6   : > { %635 = vrot.lane.b32.xlu1 %v4158_v29, %s3923_s20  ;;  %v509_v41 = vcombine.low %v4158_v29, %v4166_v31  ;;  %v510_v42 = vcombine.high %v4158_v29, %v4166_v31 }
 0x2b8   : > { %v517_v47 = vrot.slane %v509_v41, %v4175_v40  ;;  %v524_v48 = vrot.slane %v510_v42, %v4175_v40 }
 0x2b9   : > { %v4162_v30 = vpop.permute.xlu1 %487 }
 0x2ba   : > { %637 = vrot.lane.b32.xlu1 %v4162_v30, %s3923_s20  ;;  %v493_v38 = vcombine.low %v4148_v25, %v4162_v30  ;;  %v494_v39 = vcombine.high %v4148_v25, %v4162_v30 }
 0x2bc   : > { %v501_v45 = vrot.slane %v493_v38, %v4175_v40  ;;  %v508_v46 = vrot.slane %v494_v39, %v4175_v40 }
 0x2bd   : > { %v634_v35 = vpop.permute.xlu1 %633 }
 0x2be   : > { %639 = vrot.lane.b32.xlu1 %v4166_v31, %s3923_s20  ;;  %v525_v51 = vcombine.low %v501_v45, %v517_v47  ;;  %v526_v52 = vcombine.high %v501_v45, %v517_v47  ;;  %v541_v53 = vcombine.low %v508_v46, %v524_v48  ;;  %v542_v54 = vcombine.high %v508_v46, %v524_v48 }
 0x2c0   : > { %v533_v60 = vrot.slane %v525_v51, %v4186_v50  ;;  %v540_v61 = vrot.slane %v526_v52, %v4186_v50  ;;  %v549_v62 = vrot.slane %v541_v53, %v4186_v50  ;;  %v556_v63 = vrot.slane %v542_v54, %v4186_v50 }
 0x2c2   : > { %v561_v10 = vcombine.low %v533_v60, %v540_v61  ;;  %v3327_v11 = vcombine.high %v533_v60, %v540_v61  ;;  %v577_v12 = vcombine.low %v549_v62, %v556_v63  ;;  %v3328_v18 = vcombine.high %v549_v62, %v556_v63 }
 0x2c4   : > { %v568_v28 = vrot.slane %v561_v10, %v4175_v40  ;;  %v576_v32 = vrot.slane %v3327_v11, %v4175_v40  ;;  %v584_v33 = vrot.slane %v577_v12, %v4175_v40  ;;  %v592_v34 = vrot.slane %v3328_v18, %v4175_v40 }
 0x2c6   : > { %v593_v46 = vcombine.low %v568_v28, %v576_v32  ;;  %v609_v47 = vcombine.low %v584_v33, %v592_v34  ;;  %v594_v61 = vcombine.high %v568_v28, %v576_v32  ;;  %v610_v62 = vcombine.high %v584_v33, %v592_v34 }
 0x328   : > { %v636_v43 = vpop.permute.xlu1 %635 }
 0x32c   : > { %v638_v49 = vpop.permute.xlu1 %637 }
 0x32d   : > { %v645_v55 = vcombine.low %v634_v35, %v638_v49  ;;  %v646_v56 = vcombine.high %v634_v35, %v638_v49 }
 0x32f   : > { %v653_v1 = vrot.slane %v645_v55, %v4175_v40  ;;  %v660_v2 = vrot.slane %v646_v56, %v4175_v40  ;;  %v601_v55 = vrot.slane %v593_v46, %v4186_v50  ;;  %v617_v56 = vrot.slane %v609_v47, %v4186_v50 }
 0x330   : > { %v640_v57 = vpop.permute.xlu1 %639 }
 0x331   : > { %v661_v58 = vcombine.low %v636_v43, %v640_v57  ;;  %v662_v59 = vcombine.high %v636_v43, %v640_v57  ;;  %v625_v63 = vcombine.low %v601_v55, %v617_v56 }
 0x333   : > { %v669_v3 = vrot.slane %v661_v58, %v4175_v40  ;;  %v676_v4 = vrot.slane %v662_v59, %v4175_v40 }
 0x335   : > { %v677_v5 = vcombine.low %v653_v1, %v669_v3  ;;  %v678_v6 = vcombine.high %v653_v1, %v669_v3  ;;  %v693_v7 = vcombine.low %v660_v2, %v676_v4  ;;  %v694_v9 = vcombine.high %v660_v2, %v676_v4 }
 0x336   : > { %v626_v1 = vcombine.high %v601_v55, %v617_v56  ;;  %v629_v4 = vpack.c.bf16 %v625_v63, %v625_v63 }
 0x337   : > { %v685_v19 = vrot.slane %v677_v5, %v4186_v50  ;;  %v692_v20 = vrot.slane %v678_v6, %v4186_v50  ;;  %v701_v21 = vrot.slane %v693_v7, %v4186_v50  ;;  %v708_v22 = vrot.slane %v694_v9, %v4186_v50 }
 0x338   : > { %v630_v5 = vpack.c.bf16 %v626_v1, %v626_v1  ;;  %v608_v6 = vrot.slane %v594_v61, %v4186_v50  ;;  %v624_v7 = vrot.slane %v610_v62, %v4186_v50 }
 0x339   : > { %v713_v23 = vcombine.low %v685_v19, %v692_v20  ;;  %v3329_v24 = vcombine.high %v685_v19, %v692_v20  ;;  %v729_v26 = vcombine.low %v701_v21, %v708_v22  ;;  %v3330_v27 = vcombine.high %v701_v21, %v708_v22 }
 0x33a   : > { %v627_v11 = vcombine.low %v608_v6, %v624_v7  ;;  %v628_v12 = vcombine.high %v608_v6, %v624_v7  ;;  %v394_v20 = vand.u32 127, %v391_v13 }
 0x33b   : > { %v720_v35 = vrot.slane %v713_v23, %v4175_v40  ;;  %v728_v36 = vrot.slane %v3329_v24, %v4175_v40  ;;  %v736_v37 = vrot.slane %v729_v26, %v4175_v40  ;;  %v744_v38 = vrot.slane %v3330_v27, %v4175_v40 }
 0x33c   : > { %v631_v18 = vpack.c.bf16 %v627_v11, %v627_v11  ;;  %v632_v19 = vpack.c.bf16 %v628_v12, %v628_v12  ;;  %vm4238_vm3 = vcmp.ge.s32.totalorder %v4128_v14, %v394_v20 }
 0x33d   : > { %v745_v39 = vcombine.low %v720_v35, %v728_v36  ;;  %v761_v41 = vcombine.low %v736_v37, %v744_v38  ;;  %v746_v42 = vcombine.high %v720_v35, %v728_v36  ;;  %v762_v43 = vcombine.high %v736_v37, %v744_v38 }
 0x33f   : > { %v753_v44 = vrot.slane %v745_v39, %v4186_v50  ;;  %v769_v45 = vrot.slane %v761_v41, %v4186_v50  ;;  %v760_v51 = vrot.slane %v746_v42, %v4186_v50  ;;  %v776_v52 = vrot.slane %v762_v43, %v4186_v50 }
 0x341   : > { %v777_v48 = vcombine.low %v753_v44, %v769_v45  ;;  %v778_v49 = vcombine.high %v753_v44, %v769_v45  ;;  %v779_v59 = vcombine.low %v760_v51, %v776_v52  ;;  %v780_v60 = vcombine.high %v760_v51, %v776_v52 }
 0x343   : > { %v781_v53 = vpack.c.bf16 %v777_v48, %v777_v48  ;;  %v782_v54 = vpack.c.bf16 %v778_v49, %v778_v49  ;;  %v783_v2 = vpack.c.bf16 %v779_v59, %v779_v59  ;;  %v784_v3 = vpack.c.bf16 %v780_v60, %v780_v60 }
 0x345   : > { %v942_v57 = vsel %vm937_vm2, %v781_v53, 0  ;;  %v988_v58 = vsel %vm937_vm2, %v782_v54, 0  ;;  %v1034_v9 = vsel %vm937_vm2, %v783_v2, 0  ;;  %v1080_v10 = vsel %vm937_vm2, %v784_v3, 0 }
 0x346   : > { %3488 = vmatpush3.bf16.xpose.msra.mxu1 %v942_v57  ;;  %3494 = vmatpush3.bf16.xpose.msra.mxu0 %v988_v58 }
 0x347   : > { %3499 = vmatprep.subr.bf16.mxu1 %v3918_v8  ;;  %3505 = vmatprep.subr.bf16.mxu0 %v3918_v8 }
 0x34d   : > { %3490 = vmatmul.mubr.msk.bf16.vlgmr.msra.gmra.mxu1 %vm937_vm2, %v629_v4  ;;  %3496 = vmatmul.mubr.msk.bf16.vlgmr.msra.gmra.mxu0 %vm937_vm2, %v630_v5 }
 0x34e   : > { %3500 = vmatpush3.bf16.xpose.msra.mxu1 %v1034_v9  ;;  %3506 = vmatpush3.bf16.xpose.msra.mxu0 %v1080_v10 }
 0x34f   : > { %3501 = vmatprep.mubr.msk.bf16.mxu1 %vm3919_vm1, %v3918_v8  ;;  %3507 = vmatprep.mubr.msk.bf16.mxu0 %vm3919_vm1, %v3918_v8 }
 0x350   : > { %3511 = vmatprep.subr.bf16.mxu1 %v3918_v8  ;;  %3517 = vmatprep.subr.bf16.mxu0 %v3918_v8 }
 0x355   : > { %3502 = vmatmul.mubr.msk.bf16.vlgmr.msra.gmra.mxu1 %vm937_vm2, %v631_v18  ;;  %3508 = vmatmul.mubr.msk.bf16.vlgmr.msra.gmra.mxu0 %vm937_vm2, %v632_v19 }
 0x356   : > { %3513 = vmatprep.mubr.msk.bf16.mxu1 %vm3919_vm1, %v3918_v8  ;;  %3519 = vmatprep.mubr.msk.bf16.mxu0 %vm3919_vm1, %v3918_v8 }
 0x40d   : > { %v978_v22 = vpop.f32.mrf.mxu1  ;;  %v1024_v23 = vpop.f32.mrf.mxu0 }
 0x40e   : > { %v1124_v24 = vsel %vm4238_vm3, %v978_v22, -1e+30  ;;  %v1125_v26 = vsel %vm4238_vm3, %v1024_v23, -1e+30 }
 0x40f   : > { %v3491_v27 = vpop.f32.mrf.mxu1  ;;  %v3497_v28 = vpop.f32.mrf.mxu0  ;;  %v1128_v32 = vsel %vm937_vm2, %v1124_v24, -inf  ;;  %v1131_v33 = vsel %vm937_vm2, %v1125_v26, -inf }
 0x410   : > { %1129 = vmax.xlane.f32.xlu1 %v1128_v32  ;;  %1132 = vmax.xlane.f32.xlu0 %v1131_v33 }
 0x411   : > { %v981_v13 = vpop.f32.mrf.mxu1  ;;  %v1027_v34 = vpop.f32.mrf.mxu0 }
 0x413   : > { %v3492_v35 = vpop.f32.mrf.mxu1  ;;  %v3498_v36 = vpop.f32.mrf.mxu0 }
 0x415   : > { %v1070_v37 = vpop.f32.mrf.mxu1  ;;  %v1116_v38 = vpop.f32.mrf.mxu0 }
 0x416   : > { %v1126_v39 = vsel %vm4238_vm3, %v1070_v37, -1e+30  ;;  %v1127_v41 = vsel %vm4238_vm3, %v1116_v38, -1e+30 }
 0x417   : > { %v3503_v42 = vpop.f32.mrf.mxu1  ;;  %v3509_v43 = vpop.f32.mrf.mxu0  ;;  %v1134_v44 = vsel %vm937_vm2, %v1126_v39, -inf  ;;  %v1137_v45 = vsel %vm937_vm2, %v1127_v41, -inf }
 0x418   : > { %1135 = vmax.xlane.f32.xlu1 %v1134_v44  ;;  %1138 = vmax.xlane.f32.xlu0 %v1137_v45 }
 0x419   : > { %v1073_v46 = vpop.f32.mrf.mxu1  ;;  %v1119_v47 = vpop.f32.mrf.mxu0 }
 0x41b   : > { %v3504_v48 = vpop.f32.mrf.mxu1  ;;  %v3510_v49 = vpop.f32.mrf.mxu0 }
 0x429   : > { %785 = vrot.lane.b32.xlu1 %v4148_v25, %s3926_s23 }
 0x499   : > { %v1130_v51 = vpop.xlane.xlu1 %1129  ;;  %v1133_v52 = vpop.xlane.xlu0 %1132 }
 0x49a   : > { %v1140_v53 = vsub.f32 %v1124_v24, %v1130_v51  ;;  %v1141_v54 = vsub.f32 %v1125_v26, %v1133_v52 }
 0x49c   : > { %v1144_v55 = vmul.f32 1.442695, %v1140_v53  ;;  %v1146_v56 = vmul.f32 1.442695, %v1141_v54 }
 0x49e   : > { %3750 = vpow2.f32 %v1144_v55 }
 0x49f   : > { %3752 = vpow2.f32 %v1146_v56 }
 0x4a1   : > { %v1136_v57 = vpop.xlane.xlu1 %1135  ;;  %v1139_v58 = vpop.xlane.xlu0 %1138 }
 0x4a2   : > { %v1142_v59 = vsub.f32 %v1126_v39, %v1136_v57  ;;  %v1143_v60 = vsub.f32 %v1127_v41, %v1139_v58 }
 0x4a4   : > { %v1148_v61 = vmul.f32 1.442695, %v1142_v59  ;;  %v1150_v62 = vmul.f32 1.442695, %v1143_v60 }
 0x4a5   : > { %v786_v7 = vpop.permute.xlu1 %785 }
 0x4a6   : > { %3754 = vpow2.f32 %v1148_v61 }
 0x4a7   : > { %3756 = vpow2.f32 %v1150_v62 }
 0x4ab   : > { %v4256_v63 = vpop.eup %3750 }
 0x4ac   : > { %v4258_v1 = vpop.eup %3752  ;;  %v1152_v25 = vsel %vm937_vm2, %v4256_v63, 0.0 }
 0x4ad   : > { %1153 = vadd.xlane.f32.xlu1 %v1152_v25  ;;  %v1155_v2 = vsel %vm937_vm2, %v4258_v1, 0.0 }
 0x4ae   : > { %1156 = vadd.xlane.f32.xlu0 %v1155_v2 }
 0x4b3   : > { %v4264_v3 = vpop.eup %3754 }
 0x4b4   : > { %v4266_v4 = vpop.eup %3756  ;;  %v1158_v5 = vsel %vm937_vm2, %v4264_v3, 0.0 }
 0x4b5   : > { %1159 = vadd.xlane.f32.xlu1 %v1158_v5  ;;  %v1161_v6 = vsel %vm937_vm2, %v4266_v4, 0.0 }
 0x4b6   : > { %1162 = vadd.xlane.f32.xlu0 %v1161_v6 }
 0x4c6   : > { %789 = vrot.lane.b32.xlu1 %v4162_v30, %s3926_s23 }
 0x4ca   : > { %791 = vrot.lane.b32.xlu1 %v4166_v31, %s3926_s23 }
 0x4cc   : > { %787 = vrot.lane.b32.xlu0 %v4158_v29, %s3926_s23 }
 0x536   : > { %v1154_v9 = vpop.xlane.xlu1 %1153 }
 0x537   : > { %v1157_v10 = vpop.xlane.xlu0 %1156  ;;  %3758 = vrcp.f32 %v1154_v9 }
 0x538   : > { %3760 = vrcp.f32 %v1157_v10 }
 0x53e   : > { %v1160_v11 = vpop.xlane.xlu1 %1159 }
 0x53f   : > { %v1163_v12 = vpop.xlane.xlu0 %1162  ;;  %3762 = vrcp.f32 %v1160_v11 }
 0x540   : > { %3764 = vrcp.f32 %v1163_v12 }
 0x542   : > { %v790_v18 = vpop.permute.xlu1 %789 }
 0x543   : > { %v797_v19 = vcombine.low %v786_v7, %v790_v18  ;;  %v798_v20 = vcombine.high %v786_v7, %v790_v18  ;;  %v788_v22 = vpop.permute.xlu0 %787 }
 0x544   : > { %v3759_v31 = vpop.eup %3758 }
 0x545   : > { %v805_v26 = vrot.slane %v797_v19, %v4175_v40  ;;  %v812_v29 = vrot.slane %v798_v20, %v4175_v40  ;;  %v3761_v32 = vpop.eup %3760  ;;  %v1168_v36 = vmul.f32 %v3759_v31, %v1154_v9 }
 0x546   : > { %v792_v30 = vpop.permute.xlu1 %791  ;;  %v1169_v37 = vmul.f32 %v3761_v32, %v1157_v10 }
 0x547   : > { %v813_v23 = vcombine.low %v788_v22, %v792_v30  ;;  %v814_v24 = vcombine.high %v788_v22, %v792_v30  ;;  %v1172_v47 = vsub.f32 2.0, %v1168_v36 }
 0x548   : > { %v1173_v48 = vsub.f32 2.0, %v1169_v37 }
 0x549   : > { %v821_v27 = vrot.slane %v813_v23, %v4175_v40  ;;  %v828_v28 = vrot.slane %v814_v24, %v4175_v40  ;;  %v1176_v60 = vmul.f32 %v3759_v31, %v1172_v47 }
 0x54a   : > { %v1177_v61 = vmul.f32 %v3761_v32, %v1173_v48 }
 0x54b   : > { %v829_v33 = vcombine.low %v805_v26, %v821_v27  ;;  %v830_v13 = vcombine.high %v805_v26, %v821_v27  ;;  %v845_v34 = vcombine.low %v812_v29, %v828_v28  ;;  %v846_v35 = vcombine.high %v812_v29, %v828_v28 }
 0x54c   : > { %v3763_v52 = vpop.eup %3762  ;;  %v1180_v20 = vmul.f32 %v4256_v63, %v1176_v60  ;;  %v1181_v22 = vmul.f32 %v4258_v1, %v1177_v61 }
 0x54d   : > { %v837_v38 = vrot.slane %v829_v33, %v4186_v50  ;;  %v844_v39 = vrot.slane %v830_v13, %v4186_v50  ;;  %v853_v41 = vrot.slane %v845_v34, %v4186_v50  ;;  %v860_v42 = vrot.slane %v846_v35, %v4186_v50  ;;  %v3765_v55 = vpop.eup %3764 }
 0x54e   : > { %v1170_v2 = vmul.f32 %v3763_v52, %v1160_v11  ;;  %v1171_v5 = vmul.f32 %v3765_v55, %v1163_v12  ;;  %v1184_v27 = vpack.c.bf16 %v1180_v20, %v1180_v20  ;;  %v1185_v28 = vpack.c.bf16 %v1181_v22, %v1181_v22 }
 0x54f   : > { %v865_v43 = vcombine.low %v837_v38, %v844_v39  ;;  %v3331_v44 = vcombine.high %v837_v38, %v844_v39  ;;  %v881_v45 = vcombine.low %v853_v41, %v860_v42  ;;  %v3332_v46 = vcombine.high %v853_v41, %v860_v42 }
 0x550   : > { %v1174_v30 = vsub.f32 2.0, %v1170_v2  ;;  %v1175_v23 = vsub.f32 2.0, %v1171_v5 }
 0x551   : > { %v872_v49 = vrot.slane %v865_v43, %v4175_v40  ;;  %v880_v51 = vrot.slane %v3331_v44, %v4175_v40  ;;  %v888_v53 = vrot.slane %v881_v45, %v4175_v40  ;;  %v896_v54 = vrot.slane %v3332_v46, %v4175_v40 }
 0x552   : > { %v1178_v32 = vmul.f32 %v3763_v52, %v1174_v30  ;;  %v1179_v33 = vmul.f32 %v3765_v55, %v1175_v23 }
 0x553   : > { %v897_v56 = vcombine.low %v872_v49, %v880_v51  ;;  %v898_v57 = vcombine.high %v872_v49, %v880_v51  ;;  %v913_v58 = vcombine.low %v888_v53, %v896_v54  ;;  %v914_v59 = vcombine.high %v888_v53, %v896_v54 }
 0x554   : > { %v1182_v13 = vmul.f32 %v4264_v3, %v1178_v32  ;;  %v1183_v34 = vmul.f32 %v4266_v4, %v1179_v33 }
 0x555   : > { %v905_v62 = vrot.slane %v897_v56, %v4186_v50  ;;  %v912_v25 = vrot.slane %v898_v57, %v4186_v50  ;;  %v921_v6 = vrot.slane %v913_v58, %v4186_v50  ;;  %v928_v7 = vrot.slane %v914_v59, %v4186_v50  ;;  %v3728_v59 = vld [vmem:[%s4728_s2 + $0x8] sm:$0xff]  }
 0x556   : > { %v1186_v35 = vpack.c.bf16 %v1182_v13, %v1182_v13  ;;  %v1187_v36 = vpack.c.bf16 %v1183_v34, %v1183_v34 }
 0x557   : > { %v929_v9 = vcombine.low %v905_v62, %v921_v6  ;;  %v930_v10 = vcombine.high %v905_v62, %v921_v6  ;;  %v931_v18 = vcombine.low %v912_v25, %v928_v7  ;;  %v932_v19 = vcombine.high %v912_v25, %v928_v7 }
 0x559   : > { %v933_v24 = vpack.c.bf16 %v929_v9, %v929_v9  ;;  %v934_v31 = vpack.c.bf16 %v930_v10, %v930_v10  ;;  %v935_v26 = vpack.c.bf16 %v931_v18, %v931_v18  ;;  %v936_v29 = vpack.c.bf16 %v932_v19, %v932_v19  ;;  %v3729_v18 = vld [vmem:[%s4728_s2] sm:$0xff]  }
 0x55b   : > { %v1193_v11 = vsel %vm1191_vm4, %v933_v24, 0  ;;  %v1239_v12 = vsel %vm1191_vm4, %v934_v31, 0  ;;  %v1285_v63 = vsel %vm1191_vm4, %v935_v26, 0  ;;  %v1331_v1 = vsel %vm1191_vm4, %v936_v29, 0 }
 0x55c   : > { %3512 = vmatpush3.bf16.msra.mxu1 %v1193_v11  ;;  %3518 = vmatpush3.bf16.msra.mxu0 %v1239_v12 }
 0x55d   : > { %3523 = vmatprep.subr.bf16.mxu1 %v3918_v8  ;;  %3529 = vmatprep.subr.bf16.mxu0 %v3918_v8 }
 0x55f   : > { %3514 = vmatmul.mubr.msk.bf16.vlgmr.msra.gmra.mxu1 %vm937_vm2, %v1184_v27  ;;  %3520 = vmatmul.mubr.msk.bf16.vlgmr.msra.gmra.mxu0 %vm937_vm2, %v1185_v28 }
 0x560   : > { %3524 = vmatpush3.bf16.msra.mxu1 %v1285_v63  ;;  %3530 = vmatpush3.bf16.msra.mxu0 %v1331_v1 }
 0x561   : > { %3525 = vmatprep.mubr.msk.bf16.mxu1 %vm3919_vm1, %v3918_v8  ;;  %3531 = vmatprep.mubr.msk.bf16.mxu0 %vm3919_vm1, %v3918_v8 }
 0x562   : > { %3535 = vmatprep.subr.bf16.mxu1 %v3918_v8  ;;  %3543 = vmatprep.subr.bf16.mxu0 %v3918_v8 }
 0x567   : > { %3526 = vmatmul.mubr.msk.bf16.vlgmr.msra.gmra.mxu1 %vm937_vm2, %v1186_v35  ;;  %3532 = vmatmul.mubr.msk.bf16.vlgmr.msra.gmra.mxu0 %vm937_vm2, %v1187_v36 }
 0x568   : > { %3539 = vmatprep.mubr.msk.bf16.mxu1 %vm3919_vm1, %v3918_v8  ;;  %3547 = vmatprep.mubr.msk.bf16.mxu0 %vm3919_vm1, %v3918_v8 }
 0x569   : > { %3536 = vmatpush3.bf16.msra.mxu1 %v3728_v59  ;;  %v3733_v59 = vld [vmem:[%s4731_s5 + $0x10] sm:$0xff]  }
 0x56a   : > { %3537 = vmatprep.subr.bf16.mxu1 %v3918_v8 }
 0x56d   : > { %3538 = vmatpush3.bf16.msra.mxu1 %v3729_v18 }
 0x56e   : > { %3551 = vmatprep.subr.bf16.mxu1 %v3918_v8 }
 0x61f   : > { %v1229_v3 = vpop.f32.mrf.mxu1  ;;  %v1275_v4 = vpop.f32.mrf.mxu0 }
 0x621   : > { %v3515_v37 = vpop.f32.mrf.mxu1  ;;  %v3521_v38 = vpop.f32.mrf.mxu0 }
 0x623   : > { %v1232_v39 = vpop.f32.mrf.mxu1  ;;  %v1278_v41 = vpop.f32.mrf.mxu0 }
 0x625   : > { %v3516_v42 = vpop.f32.mrf.mxu1  ;;  %v3522_v43 = vpop.f32.mrf.mxu0 }
 0x626   : > { %v1533_v42 = vsub.s32 2, %v4128_v14 }
 0x627   : > { %v1321_v44 = vpop.f32.mrf.mxu1  ;;  %v1367_v45 = vpop.f32.mrf.mxu0 }
 0x628   : > { %v1373_v46 = vcombine.low %v1229_v3, %v1321_v44  ;;  %v1374_v47 = vcombine.high %v1229_v3, %v1321_v44  ;;  %v1389_v48 = vcombine.low %v1275_v4, %v1367_v45  ;;  %v1390_v49 = vcombine.high %v1275_v4, %v1367_v45 }
 0x629   : > { %v3527_v51 = vpop.f32.mrf.mxu1  ;;  %v3533_v52 = vpop.f32.mrf.mxu0  ;;  %v1534_v43 = vrot.slane %v4136_v16, %v1533_v42 }
 0x62a   : > { %v1381_v53 = vrot.slane %v1373_v46, %v4175_v40  ;;  %v1388_v54 = vrot.slane %v1374_v47, %v4175_v40  ;;  %v1397_v55 = vrot.slane %v1389_v48, %v4175_v40  ;;  %v1404_v56 = vrot.slane %v1390_v49, %v4175_v40 }
 0x62b   : > { %v1324_v57 = vpop.f32.mrf.mxu1  ;;  %v1370_v58 = vpop.f32.mrf.mxu0 }
 0x62c   : > { %v1405_v60 = vcombine.low %v1381_v53, %v1397_v55  ;;  %v1406_v61 = vcombine.high %v1381_v53, %v1397_v55  ;;  %v1421_v62 = vcombine.low %v1388_v54, %v1404_v56  ;;  %v1422_v25 = vcombine.high %v1388_v54, %v1404_v56  ;;  %v3730_v57 = vld [vmem:[%s4729_s3 + $0x8] sm:$0xff]   ;;  %v3732_v58 = vld [vmem:[%s4731_s5 + $0x18] sm:$0xff]  }
 0x62d   : > { %v3528_v2 = vpop.f32.mrf.mxu1  ;;  %v3534_v5 = vpop.f32.mrf.mxu0  ;;  %3544 = vmatpush3.bf16.msra.mxu0 %v3730_v57 }
 0x62e   : > { %v1413_v6 = vrot.slane %v1405_v60, %v4186_v50  ;;  %v1420_v7 = vrot.slane %v1406_v61, %v4186_v50  ;;  %v1429_v9 = vrot.slane %v1421_v62, %v4186_v50  ;;  %v1436_v10 = vrot.slane %v1422_v25, %v4186_v50  ;;  %3545 = vmatprep.subr.bf16.mxu0 %v3918_v8 }
 0x62f   : > { %v1606_v25 = vsub.s32 3, %v4128_v14  ;;  %v1611_v2 = vsub.s32 4, %v4128_v14 }
 0x630   : > { %v1441_v19 = vcombine.low %v1413_v6, %v1420_v7  ;;  %v3341_v20 = vcombine.high %v1413_v6, %v1420_v7  ;;  %v1457_v22 = vcombine.low %v1429_v9, %v1436_v10  ;;  %v3342_v30 = vcombine.high %v1429_v9, %v1436_v10 }
 0x631   : > { %v1607_v5 = vrot.slane %v4136_v16, %v1606_v25  ;;  %v1612_v9 = vrot.slane %v4136_v16, %v1611_v2 }
 0x632   : > { %v1448_v23 = vrot.slane %v1441_v19, %v4175_v40  ;;  %v1456_v24 = vrot.slane %v3341_v20, %v4175_v40  ;;  %v1464_v31 = vrot.slane %v1457_v22, %v4175_v40  ;;  %v1472_v11 = vrot.slane %v3342_v30, %v4175_v40  ;;  %v3734_v20 = vld [vmem:[%s4731_s5 + $0x8] sm:$0xff]   ;;  %v3735_v22 = vld [vmem:[%s4731_s5] sm:$0xff]  }
 0x633   : > { %v3346_v30 = vld [vmem:[%s4730_s4] ss:$0 sm:$0xff] }
 0x634   : > { %v1474_v12 = vcombine.high %v1448_v23, %v1456_v24  ;;  %v1490_v26 = vcombine.high %v1464_v31, %v1472_v11  ;;  %v1473_v29 = vcombine.low %v1448_v23, %v1456_v24  ;;  %v1489_v27 = vcombine.low %v1464_v31, %v1472_v11 }
 0x636   : > { %v1488_v28 = vrot.slane %v1474_v12, %v4186_v50  ;;  %v1504_v32 = vrot.slane %v1490_v26, %v4186_v50  ;;  %v1481_v33 = vrot.slane %v1473_v29, %v4186_v50  ;;  %v1497_v63 = vrot.slane %v1489_v27, %v4186_v50 }
 0x637   : > { %v1693_v27 = vsub.s32 5, %v4128_v14  ;;  %v3747_v14 = vld [vmem:[#allocation5] sm:$0xff]  }
 0x638   : > { %v1507_v1 = vcombine.low %v1488_v28, %v1504_v32  ;;  %v1506_v13 = vcombine.high %v1481_v33, %v1497_v63  ;;  %v1505_v34 = vcombine.low %v1481_v33, %v1497_v63  ;;  %v1508_v35 = vcombine.high %v1488_v28, %v1504_v32 }
 0x639   : > { %v1694_v28 = vrot.slane %v4136_v16, %v1693_v27  ;;  %v3736_v16 = vld [vmem:[%s4727_s1 + $0x18] sm:$0xff]  }
 0x63a   : > { %1514 = vrot.lane.b32.xlu1 %v1507_v1, %s3927_s21  ;;  %1510 = vrot.lane.b32.xlu0 %v1506_v13, %s3928_s11 }
 0x63e   : > { %1518 = vrot.lane.b32.xlu0 %v1508_v35, %s4746_s26 }
 0x6ac   : > { %v1511_v36 = vpop.permute.xlu0 %1510  ;;  %v1515_v3 = vpop.permute.xlu1 %1514 }
 0x6ad   : > { %v1521_v4 = vsel %vm937_vm2, %v1505_v34, %v1511_v36 }
 0x6ae   : > { %v1523_v38 = vsel %vm1522_vm5, %v1521_v4, %v1515_v3 }
 0x6b0   : > { %v1519_v37 = vpop.permute.xlu0 %1518 }
 0x6b1   : > { %v1525_v39 = vsel %vm1524_vm6, %v1523_v38, %v1519_v37 }
 0x6b2   : > { %v1526_v41 = vpack.c.bf16 %v1525_v39, %v1525_v39  ;;  %v3737_v39 = vld [vmem:[%s4727_s1 + $0x10] sm:$0xff]  }
 0x6b4   : > { %3540 = vmatmul.mubr.msk.bf16.vlgmr.msra.gmra.mxu1 %vm398_vm0, %v1526_v41 }
 0x6b5   : > { %3559 = vmatprep.mubr.msk.bf16.mxu1 %vm3919_vm1, %v3918_v8  ;;  %3552 = vmatpush3.bf16.msra.mxu1 %v3732_v58 }
 0x6b6   : > { %3553 = vmatprep.subr.bf16.mxu1 %v3918_v8 }
 0x6b9   : > { %3554 = vmatpush3.bf16.msra.mxu1 %v3733_v59 }
 0x6ba   : > { %3555 = vmatprep.subr.bf16.mxu1 %v3918_v8 }
 0x6bd   : > { %3556 = vmatpush3.bf16.msra.mxu1 %v3734_v20 }
 0x6be   : > { %3557 = vmatprep.subr.bf16.mxu1 %v3918_v8 }
 0x6c1   : > { %3558 = vmatpush3.bf16.msra.mxu1 %v3735_v22 }
 0x6c2   : > { %3577 = vmatprep.subr.bf16.mxu1 %v3918_v8 }
 0x774   : > { %v1584_v44 = vpop.f32.mrf.mxu1 }
 0x775   : > { %v1585_v45 = vadd.f32 %v1584_v44, %v1534_v43 }
 0x776   : > { %v3541_v46 = vpop.f32.mrf.mxu1 }
 0x777   : > { %v1590_v47 = vadd.f32 %v1585_v45, %v4107_v0  ;;  %v3731_v0 = vld [vmem:[%s4729_s3] sm:$0xff]   ;;  %v4420_v45 = vld [vmem:[%s4732_s6 + $0x8] sm:$0x3f] }
 0x778   : > { %v1587_v48 = vpop.f32.mrf.mxu1  ;;  %3546 = vmatpush3.bf16.msra.mxu0 %v3731_v0  ;;  %v1782_v46 = vrot.slane %v4420_v45, %v4131_v15 }
 0x779   : > { %v1591_v49 = vsel %vm398_vm0, %v1590_v47, 0.0  ;;  %3563 = vmatprep.subr.bf16.mxu0 %v3918_v8 }
 0x77a   : > { %1592 = vadd.xlane.f32.xlu1 %v1591_v49  ;;  %v3542_v51 = vpop.f32.mrf.mxu1  ;;  %v1787_v49 = vrot.slane %v4420_v45, %v4139_v17 }
 0x803   : > { %v1593_v52 = vpop.xlane.xlu1 %1592 }
 0x804   : > { %v1594_v53 = vmul.f32 0.03125, %v1593_v52 }
 0x806   : > { %v1595_v54 = vsub.f32 %v1590_v47, %v1594_v53 }
 0x808   : > { %v1596_v55 = vmul.f32 %v1595_v54, %v1595_v54 }
 0x80a   : > { %v1597_v56 = vsel %vm398_vm0, %v1596_v55, 0.0 }
 0x80b   : > { %1598 = vadd.xlane.f32.xlu0 %v1597_v56 }
 0x894   : > { %v1599_v60 = vpop.xlane.xlu0 %1598 }
 0x895   : > { %v1600_v61 = vmul.f32 0.03125, %v1599_v60 }
 0x897   : > { %v1601_v62 = vadd.f32 1e-05, %v1600_v61 }
 0x899   : > { %3766 = vrsqrt.f32 %v1601_v62 }
 0x8a6   : > { %v3767_v6 = vpop.eup %3766 }
 0x8a7   : > { %v1603_v7 = vmul.f32 %v3767_v6, %v1595_v54 }
 0x8a9   : > { %v1608_v10 = vmul.f32 %v1607_v5, %v1603_v7 }
 0x8ab   : > { %v1613_v18 = vadd.f32 %v1612_v9, %v1608_v10 }
 0x8ad   : > { %v1614_v19 = vpack.c.bf16 %v1613_v18, %v1613_v18 }
 0x8af   : > { %3548 = vmatmul.mubr.msk.bf16.vlgmr.msra.gmra.mxu0 %vm398_vm0, %v1614_v19 }
 0x8b0   : > { %3567 = vmatprep.mubr.msk.bf16.mxu0 %vm3919_vm1, %v3918_v8  ;;  %3564 = vmatpush3.bf16.msra.mxu0 %v3736_v16 }
 0x8b1   : > { %3565 = vmatprep.subr.bf16.mxu0 %v3918_v8 }
 0x8b4   : > { %3566 = vmatpush3.bf16.msra.mxu0 %v3737_v39 }
 0x8b5   : > { %3571 = vmatprep.subr.bf16.mxu0 %v3918_v8 }
 0x96f   : > { %v1675_v23 = vpop.f32.mrf.mxu0 }
 0x970   : > { %v1676_v24 = vadd.f32 %v3346_v30, %v1675_v23 }
 0x971   : > { %v3549_v31 = vpop.f32.mrf.mxu0 }
 0x972   : > { %v1681_v11 = vmax.f32 %v1676_v24, 0.0 }
 0x973   : > { %v1678_v12 = vpop.f32.mrf.mxu0 }
 0x974   : > { %v1682_v26 = vpack.c.bf16 %v1681_v11, %v1681_v11 }
 0x975   : > { %v3550_v29 = vpop.f32.mrf.mxu0 }
 0x976   : > { %3560 = vmatmul.mubr.msk.bf16.vlgmr.msra.gmra.mxu1 %vm1719_vm7, %v1682_v26 }
 0x977   : > { %3579 = vmatprep.mubr.msk.bf16.mxu1 %vm3919_vm1, %v3918_v8 }
 0xa36   : > { %v1757_v32 = vpop.f32.mrf.mxu1 }
 0xa37   : > { %v1758_v33 = vadd.f32 %v1757_v32, %v1694_v28 }
 0xa38   : > { %v3561_v63 = vpop.f32.mrf.mxu1 }
 0xa39   : > { %v4403_v1 = vadd.f32 %v1758_v33, %v1590_v47 }
 0xa3a   : > { %v1760_v13 = vpop.f32.mrf.mxu1 }
 0xa3b   : > { %v1766_v34 = vsel %vm398_vm0, %v4403_v1, 0.0 }
 0xa3c   : > { %1767 = vadd.xlane.f32.xlu0 %v1766_v34  ;;  %v3562_v35 = vpop.f32.mrf.mxu1 }
 0xac5   : > { %v1768_v36 = vpop.xlane.xlu0 %1767 }
 0xac6   : > { %v1769_v3 = vmul.f32 0.03125, %v1768_v36 }
 0xac8   : > { %v1770_v4 = vsub.f32 %v4403_v1, %v1769_v3 }
 0xaca   : > { %v1771_v37 = vmul.f32 %v1770_v4, %v1770_v4 }
 0xacc   : > { %v1772_v38 = vsel %vm398_vm0, %v1771_v37, 0.0 }
 0xacd   : > { %1773 = vadd.xlane.f32.xlu1 %v1772_v38 }
 0xb56   : > { %v1774_v41 = vpop.xlane.xlu1 %1773 }
 0xb57   : > { %v1775_v43 = vmul.f32 0.03125, %v1774_v41 }
 0xb59   : > { %v1776_v44 = vadd.f32 1e-05, %v1775_v43 }
 0xb5b   : > { %3768 = vrsqrt.f32 %v1776_v44 }
 0xb68   : > { %v3769_v47 = vpop.eup %3768 }
 0xb69   : > { %v1778_v48 = vmul.f32 %v3769_v47, %v1770_v4 }
 0xb6b   : > { %v1783_v51 = vmul.f32 %v1782_v46, %v1778_v48 }
 0xb6d   : > { %v1788_v52 = vadd.f32 %v1787_v49, %v1783_v51 }
 0xb6f   : > { %v1789_v53 = vpack.c.bf16 %v1788_v52, %v1788_v52 }
 0xb71   : > { %3568 = vmatmul.mubr.msk.bf16.vlgmr.msra.gmra.mxu0 %vm398_vm0, %v1789_v53 }
 0xb72   : > { %3573 = vmatprep.mubr.msk.bf16.mxu0 %vm3919_vm1, %v3918_v8 }
 0xc31   : > { %v4429_v54 = vpop.f32.mrf.mxu0 }
 0xc32   : > { %1854 = vrot.lane.b32.xlu1 %v4429_v54, %s3922_s24  ;;  %1851 = vrot.lane.b32.xlu0 %v4429_v54, %s3921_s12  ;;  %s3930_s12 = smov [#allocation7]  }
 0xc33   : > { %v3569_v55 = vpop.f32.mrf.mxu0  ;;  %s3848_s24 = sshll.u32 %s3930_s12, 4  ;;  %s3849_s24 = int_to_ptr.vmem [resolvable:$false] %s3848_s24 }
 0xc34   : > { %p3851_p10 = scmp.lt.s32.totalorder %s4685_s13, %s3849_s24 }
 0xc35   : > { %v1847_v56 = vpop.f32.mrf.mxu0 }
 0xc36   : > { %1857 = vrot.lane.b32.xlu1 %v4429_v54, %s3920_s25  ;;  %2000 = vrot.lane.b32.xlu0 %v4429_v54, %s3923_s20  ;;  %s3221_s25 = scalar_lea.sflag [#allocation4], %s4093_s30 }
 0xc37   : > { %v3570_v57 = vpop.f32.mrf.mxu0 }
 0xca4   : > { %v4439_v0 = vpop.permute.xlu1 %1854  ;;  %v4441_v58 = vpop.permute.xlu0 %1851 }
 0xca5   : > { %2004 = vrot.lane.b32.xlu0 %v4439_v0, %s3923_s20  ;;  %2002 = vrot.lane.b32.xlu1 %v4441_v58, %s3923_s20  ;;  %v1860_v62 = vcombine.low %v4429_v54, %v4439_v0  ;;  %v1861_v5 = vcombine.high %v4429_v54, %v4439_v0 }
 0xca7   : > { %v1868_v10 = vrot.slane %v1860_v62, %v4175_v40  ;;  %v1875_v18 = vrot.slane %v1861_v5, %v4175_v40 }
 0xca8   : > { %v4447_v59 = vpop.permute.xlu1 %1857  ;;  %v2001_v6 = vpop.permute.xlu0 %2000 }
 0xca9   : > { %2006 = vrot.lane.b32.xlu1 %v4447_v59, %s3923_s20  ;;  %v1876_v60 = vcombine.low %v4441_v58, %v4447_v59  ;;  %v1877_v61 = vcombine.high %v4441_v58, %v4447_v59  ;;  %s3850_s20 = scalar_lea.vmem %s3849_s24, 256 }
 0xcaa   : > { %p3852_p2 = scmp.lt.s32.totalorder %s3850_s20, %s3844_s17 }
 0xcab   : > { %v1884_v7 = vrot.slane %v1876_v60, %v4175_v40  ;;  %v1891_v9 = vrot.slane %v1877_v61, %v4175_v40 }
 0xcac   : > { %p3853_p13 = por %p3852_p2, %p3851_p10 }
 0xcad   : > { %v1892_v22 = vcombine.low %v1868_v10, %v1884_v7  ;;  %v1893_v30 = vcombine.high %v1868_v10, %v1884_v7  ;;  %v1908_v23 = vcombine.low %v1875_v18, %v1891_v9  ;;  %v1909_v24 = vcombine.high %v1875_v18, %v1891_v9 }
 0xcae   : > { %p3854_p0 = pnand %p3853_p13, %p3847_p7 }
 0xcaf   : > { %v1900_v28 = vrot.slane %v1892_v22, %v4186_v50  ;;  %v1907_v32 = vrot.slane %v1893_v30, %v4186_v50  ;;  %v1916_v33 = vrot.slane %v1908_v23, %v4186_v50  ;;  %v1923_v63 = vrot.slane %v1909_v24, %v4186_v50 }
 0xcb1   : > { %v1928_v16 = vcombine.low %v1900_v28, %v1907_v32  ;;  %v3363_v39 = vcombine.high %v1900_v28, %v1907_v32  ;;  %v1944_v41 = vcombine.low %v1916_v33, %v1923_v63  ;;  %v3364_v43 = vcombine.high %v1916_v33, %v1923_v63 }
 0xcb3   : > { %v1935_v55 = vrot.slane %v1928_v16, %v4175_v40  ;;  %v1943_v56 = vrot.slane %v3363_v39, %v4175_v40  ;;  %v1951_v57 = vrot.slane %v1944_v41, %v4175_v40  ;;  %v1959_v60 = vrot.slane %v3364_v43, %v4175_v40 }
 0xcb5   : > { %v1960_v22 = vcombine.low %v1935_v55, %v1943_v56  ;;  %v1976_v30 = vcombine.low %v1951_v57, %v1959_v60 }
 0xcb7   : > { %v1984_v28 = vrot.slane %v1976_v30, %v4186_v50 }
 0xd17   : > { %v2003_v19 = vpop.permute.xlu1 %2002  ;;  %v2005_v20 = vpop.permute.xlu0 %2004 }
 0xd18   : > { %v2012_v31 = vcombine.low %v2001_v6, %v2005_v20  ;;  %v2013_v11 = vcombine.high %v2001_v6, %v2005_v20 }
 0xd1a   : > { %v2020_v13 = vrot.slane %v2012_v31, %v4175_v40  ;;  %v2027_v34 = vrot.slane %v2013_v11, %v4175_v40 }
 0xd1b   : > { %v2007_v12 = vpop.permute.xlu1 %2006 }
 0xd1c   : > { %v2028_v26 = vcombine.low %v2003_v19, %v2007_v12  ;;  %v2029_v29 = vcombine.high %v2003_v19, %v2007_v12 }
 0xd1e   : > { %v2036_v35 = vrot.slane %v2028_v26, %v4175_v40  ;;  %v2043_v36 = vrot.slane %v2029_v29, %v4175_v40  ;;  %v1968_v29 = vrot.slane %v1960_v22, %v4186_v50 }
 0xd20   : > { %v2044_v3 = vcombine.low %v2020_v13, %v2036_v35  ;;  %v2045_v4 = vcombine.high %v2020_v13, %v2036_v35  ;;  %v2060_v37 = vcombine.low %v2027_v34, %v2043_v36  ;;  %v2061_v38 = vcombine.high %v2027_v34, %v2043_v36 }
 0xd21   : > { %v1961_v34 = vcombine.high %v1935_v55, %v1943_v56  ;;  %v1992_v35 = vcombine.low %v1968_v29, %v1984_v28  ;;  %v1993_v36 = vcombine.high %v1968_v29, %v1984_v28 }
 0xd22   : > { %v2052_v44 = vrot.slane %v2044_v3, %v4186_v50  ;;  %v2059_v46 = vrot.slane %v2045_v4, %v4186_v50  ;;  %v2068_v47 = vrot.slane %v2060_v37, %v4186_v50  ;;  %v2075_v48 = vrot.slane %v2061_v38, %v4186_v50 }
 0xd23   : > { %v1977_v3 = vcombine.high %v1951_v57, %v1959_v60  ;;  %v1996_v38 = vpack.c.bf16 %v1992_v35, %v1992_v35  ;;  %v1997_v16 = vpack.c.bf16 %v1993_v36, %v1993_v36  ;;  %v1975_v39 = vrot.slane %v1961_v34, %v4186_v50 }
 0xd24   : > { %v2080_v49 = vcombine.low %v2052_v44, %v2059_v46  ;;  %v3365_v51 = vcombine.high %v2052_v44, %v2059_v46  ;;  %v2096_v52 = vcombine.low %v2068_v47, %v2075_v48  ;;  %v3366_v53 = vcombine.high %v2068_v47, %v2075_v48 }
 0xd25   : > { %v1991_v41 = vrot.slane %v1977_v3, %v4186_v50 }
 0xd26   : > { %v2087_v61 = vrot.slane %v2080_v49, %v4175_v40  ;;  %v2095_v62 = vrot.slane %v3365_v51, %v4175_v40  ;;  %v2103_v5 = vrot.slane %v2096_v52, %v4175_v40  ;;  %v2111_v6 = vrot.slane %v3366_v53, %v4175_v40 }
 0xd27   : > { %v1994_v46 = vcombine.low %v1975_v39, %v1991_v41  ;;  %v1995_v47 = vcombine.high %v1975_v39, %v1991_v41 }
 0xd28   : > { %v2112_v7 = vcombine.low %v2087_v61, %v2095_v62  ;;  %v2128_v9 = vcombine.low %v2103_v5, %v2111_v6  ;;  %v2113_v10 = vcombine.high %v2087_v61, %v2095_v62  ;;  %v2129_v18 = vcombine.high %v2103_v5, %v2111_v6 }
 0xd29   : > { %v1998_v48 = vpack.c.bf16 %v1994_v46, %v1994_v46  ;;  %v1999_v49 = vpack.c.bf16 %v1995_v47, %v1995_v47 }
 0xd2a   : > { %v2120_v19 = vrot.slane %v2112_v7, %v4186_v50  ;;  %v2136_v20 = vrot.slane %v2128_v9, %v4186_v50  ;;  %v2127_v31 = vrot.slane %v2113_v10, %v4186_v50  ;;  %v2143_v11 = vrot.slane %v2129_v18, %v4186_v50 }
 0xd2c   : > { %v2144_v23 = vcombine.low %v2120_v19, %v2136_v20  ;;  %v2145_v24 = vcombine.high %v2120_v19, %v2136_v20  ;;  %v2146_v63 = vcombine.low %v2127_v31, %v2143_v11  ;;  %v2147_v13 = vcombine.high %v2127_v31, %v2143_v11 }
 0xd2e   : > { %v2148_v12 = vpack.c.bf16 %v2144_v23, %v2144_v23  ;;  %v2149_v26 = vpack.c.bf16 %v2145_v24, %v2145_v24  ;;  %v2150_v4 = vpack.c.bf16 %v2146_v63, %v2146_v63  ;;  %v2151_v37 = vpack.c.bf16 %v2147_v13, %v2147_v13 }
 0xd30   : > { %v2308_v32 = vsel %vm937_vm2, %v2148_v12, 0  ;;  %v2354_v33 = vsel %vm937_vm2, %v2149_v26, 0  ;;  %v2400_v43 = vsel %vm937_vm2, %v2150_v4, 0  ;;  %v2446_v44 = vsel %vm937_vm2, %v2151_v37, 0 }
 0xd31   : > { %3572 = vmatpush3.bf16.xpose.msra.mxu0 %v2308_v32  ;;  %3578 = vmatpush3.bf16.xpose.msra.mxu1 %v2354_v33 }
 0xd32   : > { %3583 = vmatprep.subr.bf16.mxu0 %v3918_v8  ;;  %3589 = vmatprep.subr.bf16.mxu1 %v3918_v8 }
 0xd38   : > { %3574 = vmatmul.mubr.msk.bf16.vlgmr.msra.gmra.mxu0 %vm937_vm2, %v1996_v38  ;;  %3580 = vmatmul.mubr.msk.bf16.vlgmr.msra.gmra.mxu1 %vm937_vm2, %v1997_v16 }
 0xd39   : > { %3584 = vmatpush3.bf16.xpose.msra.mxu0 %v2400_v43  ;;  %3590 = vmatpush3.bf16.xpose.msra.mxu1 %v2446_v44 }
 0xd3a   : > { %3585 = vmatprep.mubr.msk.bf16.mxu0 %vm3919_vm1, %v3918_v8  ;;  %3591 = vmatprep.mubr.msk.bf16.mxu1 %vm3919_vm1, %v3918_v8 }
 0xd3b   : > { %3595 = vmatprep.subr.bf16.mxu0 %v3918_v8  ;;  %3601 = vmatprep.subr.bf16.mxu1 %v3918_v8 }
 0xd40   : > { %3586 = vmatmul.mubr.msk.bf16.vlgmr.msra.gmra.mxu0 %vm937_vm2, %v1998_v48  ;;  %3592 = vmatmul.mubr.msk.bf16.vlgmr.msra.gmra.mxu1 %vm937_vm2, %v1999_v49 }
 0xd41   : > { %3597 = vmatprep.mubr.msk.bf16.mxu0 %vm3919_vm1, %v3918_v8  ;;  %3603 = vmatprep.mubr.msk.bf16.mxu1 %vm3919_vm1, %v3918_v8 }
 0xdf8   : > { %v2344_v51 = vpop.f32.mrf.mxu0  ;;  %v2390_v52 = vpop.f32.mrf.mxu1 }
 0xdf9   : > { %v2488_v53 = vsel %vm4238_vm3, %v2344_v51, -1e+30  ;;  %v2489_v55 = vsel %vm4238_vm3, %v2390_v52, -1e+30 }
 0xdfa   : > { %v3575_v56 = vpop.f32.mrf.mxu0  ;;  %v3581_v57 = vpop.f32.mrf.mxu1  ;;  %v2495_v60 = vsel %vm937_vm2, %v2489_v55, -inf  ;;  %v2492_v61 = vsel %vm937_vm2, %v2488_v53, -inf }
 0xdfb   : > { %2496 = vmax.xlane.f32.xlu1 %v2495_v60  ;;  %2493 = vmax.xlane.f32.xlu0 %v2492_v61 }
 0xdfc   : > { %v2347_v62 = vpop.f32.mrf.mxu0  ;;  %v2393_v5 = vpop.f32.mrf.mxu1 }
 0xdfe   : > { %v3576_v6 = vpop.f32.mrf.mxu0  ;;  %v3582_v7 = vpop.f32.mrf.mxu1 }
 0xe00   : > { %v2436_v9 = vpop.f32.mrf.mxu0  ;;  %v2482_v10 = vpop.f32.mrf.mxu1 }
 0xe01   : > { %v2490_v18 = vsel %vm4238_vm3, %v2436_v9, -1e+30  ;;  %v2491_v30 = vsel %vm4238_vm3, %v2482_v10, -1e+30 }
 0xe02   : > { %v3587_v19 = vpop.f32.mrf.mxu0  ;;  %v3593_v20 = vpop.f32.mrf.mxu1  ;;  %v2498_v22 = vsel %vm937_vm2, %v2490_v18, -inf  ;;  %v2501_v12 = vsel %vm937_vm2, %v2491_v30, -inf }
 0xe03   : > { %2499 = vmax.xlane.f32.xlu0 %v2498_v22 }
 0xe04   : > { %v2439_v23 = vpop.f32.mrf.mxu0  ;;  %v2485_v24 = vpop.f32.mrf.mxu1 }
 0xe06   : > { %v3588_v31 = vpop.f32.mrf.mxu0  ;;  %v3594_v11 = vpop.f32.mrf.mxu1 }
 0xe07   : > { %2502 = vmax.xlane.f32.xlu0 %v2501_v12 }
 0xe0c   : > { %2152 = vrot.lane.b32.xlu1 %v4429_v54, %s3926_s23 }
 0xe84   : > { %v2497_v26 = vpop.xlane.xlu1 %2496  ;;  %v2494_v29 = vpop.xlane.xlu0 %2493 }
 0xe85   : > { %v2505_v28 = vsub.f32 %v2489_v55, %v2497_v26  ;;  %v2504_v32 = vsub.f32 %v2488_v53, %v2494_v29 }
 0xe87   : > { %v2510_v33 = vmul.f32 1.442695, %v2505_v28  ;;  %v2508_v63 = vmul.f32 1.442695, %v2504_v32 }
 0xe88   : > { %v2153_v44 = vpop.permute.xlu1 %2152 }
 0xe89   : > { %3770 = vpow2.f32 %v2510_v33 }
 0xe8a   : > { %3772 = vpow2.f32 %v2508_v63 }
 0xe8c   : > { %v2500_v21 = vpop.xlane.xlu0 %2499 }
 0xe8d   : > { %v2506_v13 = vsub.f32 %v2490_v18, %v2500_v21 }
 0xe8f   : > { %v2512_v34 = vmul.f32 1.442695, %v2506_v13 }
 0xe90   : > { %v2503_v35 = vpop.xlane.xlu0 %2502 }
 0xe91   : > { %3774 = vpow2.f32 %v2512_v34  ;;  %v2507_v36 = vsub.f32 %v2491_v30, %v2503_v35 }
 0xe93   : > { %v2514_v3 = vmul.f32 1.442695, %v2507_v36 }
 0xe95   : > { %3776 = vpow2.f32 %v2514_v3 }
 0xe96   : > { %v4525_v4 = vpop.eup %3770 }
 0xe97   : > { %v4527_v37 = vpop.eup %3772  ;;  %v2519_v54 = vsel %vm937_vm2, %v4525_v4, 0.0 }
 0xe98   : > { %v2516_v38 = vsel %vm937_vm2, %v4527_v37, 0.0  ;;  %2520 = vadd.xlane.f32.xlu0 %v2519_v54 }
 0xe99   : > { %2517 = vadd.xlane.f32.xlu1 %v2516_v38 }
 0xe9e   : > { %v4533_v16 = vpop.eup %3774 }
 0xe9f   : > { %v2522_v39 = vsel %vm937_vm2, %v4533_v16, 0.0 }
 0xea0   : > { %2523 = vadd.xlane.f32.xlu1 %v2522_v39 }
 0xea2   : > { %v4537_v41 = vpop.eup %3776 }
 0xea3   : > { %v2525_v43 = vsel %vm937_vm2, %v4537_v41, 0.0 }
 0xea4   : > { %2526 = vadd.xlane.f32.xlu0 %v2525_v43 }
 0xeb1   : > { %2156 = vrot.lane.b32.xlu1 %v4439_v0, %s3926_s23 }
 0xeb5   : > { %2158 = vrot.lane.b32.xlu1 %v4447_v59, %s3926_s23 }
 0xeba   : > { %2154 = vrot.lane.b32.xlu0 %v4441_v58, %s3926_s23  ;;  %s4766_s23 = smov 24  }
 0xf21   : > { %v2521_v46 = vpop.xlane.xlu0 %2520 }
 0xf22   : > { %v2518_v47 = vpop.xlane.xlu1 %2517  ;;  %3778 = vrcp.f32 %v2521_v46 }
 0xf23   : > { %3780 = vrcp.f32 %v2518_v47 }
 0xf29   : > { %v2524_v48 = vpop.xlane.xlu1 %2523 }
 0xf2a   : > { %3782 = vrcp.f32 %v2524_v48 }
 0xf2d   : > { %v2157_v49 = vpop.permute.xlu1 %2156  ;;  %v2527_v51 = vpop.xlane.xlu0 %2526 }
 0xf2e   : > { %v2164_v52 = vcombine.low %v2153_v44, %v2157_v49  ;;  %v2165_v53 = vcombine.high %v2153_v44, %v2157_v49  ;;  %3784 = vrcp.f32 %v2527_v51 }
 0xf2f   : > { %v3779_v59 = vpop.eup %3778 }
 0xf30   : > { %v2172_v60 = vrot.slane %v2164_v52, %v4175_v40  ;;  %v2179_v58 = vrot.slane %v2165_v53, %v4175_v40  ;;  %v3781_v5 = vpop.eup %3780  ;;  %v2533_v19 = vmul.f32 %v3779_v59, %v2521_v46 }
 0xf31   : > { %v2159_v55 = vpop.permute.xlu1 %2158  ;;  %v2155_v0 = vpop.permute.xlu0 %2154  ;;  %v2532_v18 = vmul.f32 %v3781_v5, %v2518_v47 }
 0xf32   : > { %v2180_v56 = vcombine.low %v2155_v0, %v2159_v55  ;;  %v2181_v57 = vcombine.high %v2155_v0, %v2159_v55  ;;  %v2537_v29 = vsub.f32 2.0, %v2533_v19 }
 0xf33   : > { %v2536_v26 = vsub.f32 2.0, %v2532_v18 }
 0xf34   : > { %v2188_v61 = vrot.slane %v2180_v56, %v4175_v40  ;;  %v2195_v62 = vrot.slane %v2181_v57, %v4175_v40  ;;  %v2541_v38 = vmul.f32 %v3779_v59, %v2537_v29 }
 0xf35   : > { %v2540_v54 = vmul.f32 %v3781_v5, %v2536_v26 }
 0xf36   : > { %v2196_v6 = vcombine.low %v2172_v60, %v2188_v61  ;;  %v2197_v7 = vcombine.high %v2172_v60, %v2188_v61  ;;  %v2212_v9 = vcombine.low %v2179_v58, %v2195_v62  ;;  %v2213_v10 = vcombine.high %v2179_v58, %v2195_v62 }
 0xf37   : > { %v3783_v33 = vpop.eup %3782  ;;  %v2544_v56 = vmul.f32 %v4527_v37, %v2540_v54  ;;  %v2545_v57 = vmul.f32 %v4525_v4, %v2541_v38 }
 0xf38   : > { %v2204_v20 = vrot.slane %v2196_v6, %v4186_v50  ;;  %v2211_v22 = vrot.slane %v2197_v7, %v4186_v50  ;;  %v2220_v30 = vrot.slane %v2212_v9, %v4186_v50  ;;  %v2227_v23 = vrot.slane %v2213_v10, %v4186_v50 }
 0xf39   : > { %v2534_v44 = vmul.f32 %v3783_v33, %v2524_v48  ;;  %v2549_v6 = vpack.c.bf16 %v2545_v57, %v2545_v57  ;;  %v2548_v7 = vpack.c.bf16 %v2544_v56, %v2544_v56  ;;  %v3739_v57 = vld [vmem:[%s4728_s2 + $0x10] sm:$0xff]  }
 0xf3a   : > { %v2232_v24 = vcombine.low %v2204_v20, %v2211_v22  ;;  %v3367_v31 = vcombine.high %v2204_v20, %v2211_v22  ;;  %v2248_v11 = vcombine.low %v2220_v30, %v2227_v23  ;;  %v3368_v12 = vcombine.high %v2220_v30, %v2227_v23 }
 0xf3b   : > { %v3785_v13 = vpop.eup %3784  ;;  %v2538_v60 = vsub.f32 2.0, %v2534_v44 }
 0xf3c   : > { %v2239_v28 = vrot.slane %v2232_v24, %v4175_v40  ;;  %v2247_v32 = vrot.slane %v3367_v31, %v4175_v40  ;;  %v2255_v63 = vrot.slane %v2248_v11, %v4175_v40  ;;  %v2263_v21 = vrot.slane %v3368_v12, %v4175_v40 }
 0xf3d   : > { %v2535_v46 = vmul.f32 %v3785_v13, %v2527_v51  ;;  %v2542_v9 = vmul.f32 %v3783_v33, %v2538_v60 }
 0xf3e   : > { %v2264_v34 = vcombine.low %v2239_v28, %v2247_v32  ;;  %v2265_v35 = vcombine.high %v2239_v28, %v2247_v32  ;;  %v2280_v36 = vcombine.low %v2255_v63, %v2263_v21  ;;  %v2281_v3 = vcombine.high %v2255_v63, %v2263_v21 }
 0xf3f   : > { %v2539_v59 = vsub.f32 2.0, %v2535_v46  ;;  %v2546_v18 = vmul.f32 %v4533_v16, %v2542_v9 }
 0xf40   : > { %v2272_v39 = vrot.slane %v2264_v34, %v4186_v50  ;;  %v2279_v43 = vrot.slane %v2265_v35, %v4186_v50  ;;  %v2288_v47 = vrot.slane %v2280_v36, %v4186_v50  ;;  %v2295_v49 = vrot.slane %v2281_v3, %v4186_v50 }
 0xf41   : > { %v2543_v10 = vmul.f32 %v3785_v13, %v2539_v59  ;;  %v2550_v20 = vpack.c.bf16 %v2546_v18, %v2546_v18 }
 0xf42   : > { %v2296_v52 = vcombine.low %v2272_v39, %v2288_v47  ;;  %v2297_v53 = vcombine.high %v2272_v39, %v2288_v47  ;;  %v2298_v55 = vcombine.low %v2279_v43, %v2295_v49  ;;  %v2299_v0 = vcombine.high %v2279_v43, %v2295_v49  ;;  %v3738_v39 = vld [vmem:[%s4728_s2 + $0x18] sm:$0xff]  }
 0xf43   : > { %v2547_v19 = vmul.f32 %v4537_v41, %v2543_v10 }
 0xf44   : > { %v2300_v58 = vpack.c.bf16 %v2296_v52, %v2296_v52  ;;  %v2301_v61 = vpack.c.bf16 %v2297_v53, %v2297_v53  ;;  %v2302_v51 = vpack.c.bf16 %v2298_v55, %v2298_v55  ;;  %v2303_v5 = vpack.c.bf16 %v2299_v0, %v2299_v0 }
 0xf45   : > { %v2551_v22 = vpack.c.bf16 %v2547_v19, %v2547_v19 }
 0xf46   : > { %v2556_v62 = vsel %vm1191_vm4, %v2300_v58, 0  ;;  %v2602_v48 = vsel %vm1191_vm4, %v2301_v61, 0  ;;  %v2648_v4 = vsel %vm1191_vm4, %v2302_v51, 0  ;;  %v2694_v37 = vsel %vm1191_vm4, %v2303_v5, 0 }
 0xf47   : > { %3596 = vmatpush3.bf16.msra.mxu0 %v2556_v62  ;;  %3602 = vmatpush3.bf16.msra.mxu1 %v2602_v48 }
 0xf48   : > { %3607 = vmatprep.subr.bf16.mxu0 %v3918_v8  ;;  %3613 = vmatprep.subr.bf16.mxu1 %v3918_v8 }
 0xf4a   : > { %3598 = vmatmul.mubr.msk.bf16.vlgmr.msra.gmra.mxu0 %vm937_vm2, %v2548_v7  ;;  %3604 = vmatmul.mubr.msk.bf16.vlgmr.msra.gmra.mxu1 %vm937_vm2, %v2549_v6 }
 0xf4b   : > { %3608 = vmatpush3.bf16.msra.mxu0 %v2648_v4  ;;  %3614 = vmatpush3.bf16.msra.mxu1 %v2694_v37 }
 0xf4c   : > { %3609 = vmatprep.mubr.msk.bf16.mxu0 %vm3919_vm1, %v3918_v8  ;;  %3615 = vmatprep.mubr.msk.bf16.mxu1 %vm3919_vm1, %v3918_v8 }
 0xf4d   : > { %3619 = vmatprep.subr.bf16.mxu0 %v3918_v8  ;;  %3627 = vmatprep.subr.bf16.mxu1 %v3918_v8 }
 0xf52   : > { %3610 = vmatmul.mubr.msk.bf16.vlgmr.msra.gmra.mxu0 %vm937_vm2, %v2550_v20  ;;  %3616 = vmatmul.mubr.msk.bf16.vlgmr.msra.gmra.mxu1 %vm937_vm2, %v2551_v22 }
 0xf53   : > { %3623 = vmatprep.mubr.msk.bf16.mxu0 %vm3919_vm1, %v3918_v8  ;;  %3631 = vmatprep.mubr.msk.bf16.mxu1 %vm3919_vm1, %v3918_v8 }
 0xf54   : > { %3620 = vmatpush3.bf16.msra.mxu0 %v3738_v39 }
 0xf55   : > { %3621 = vmatprep.subr.bf16.mxu0 %v3918_v8 }
 0xf58   : > { %3622 = vmatpush3.bf16.msra.mxu0 %v3739_v57 }
 0xf59   : > { %3635 = vmatprep.subr.bf16.mxu0 %v3918_v8 }
0x100a   : > { %v2592_v16 = vpop.f32.mrf.mxu0  ;;  %v2638_v41 = vpop.f32.mrf.mxu1 }
0x100c   : > { %v3599_v30 = vpop.f32.mrf.mxu0  ;;  %v3605_v23 = vpop.f32.mrf.mxu1 }
0x100e   : > { %v2595_v24 = vpop.f32.mrf.mxu0  ;;  %v2641_v31 = vpop.f32.mrf.mxu1 }
0x1010   : > { %v3600_v11 = vpop.f32.mrf.mxu0  ;;  %v3606_v12 = vpop.f32.mrf.mxu1 }
0x1011   : > { %v2896_v12 = vrot.slane %v4420_v45, %v1533_v42  ;;  %v3740_v42 = vld [vmem:[%s4729_s3 + $0x18] sm:$0xff]  }
0x1012   : > { %v2684_v26 = vpop.f32.mrf.mxu0  ;;  %v2730_v29 = vpop.f32.mrf.mxu1  ;;  %3628 = vmatpush3.bf16.msra.mxu1 %v3740_v42 }
0x1013   : > { %v2736_v28 = vcombine.low %v2592_v16, %v2684_v26  ;;  %v2737_v32 = vcombine.high %v2592_v16, %v2684_v26  ;;  %v2752_v33 = vcombine.low %v2638_v41, %v2730_v29  ;;  %v2753_v63 = vcombine.high %v2638_v41, %v2730_v29  ;;  %3629 = vmatprep.subr.bf16.mxu1 %v3918_v8 }
0x1014   : > { %v3611_v21 = vpop.f32.mrf.mxu0  ;;  %v3617_v13 = vpop.f32.mrf.mxu1 }
0x1015   : > { %v2744_v34 = vrot.slane %v2736_v28, %v4175_v40  ;;  %v2751_v35 = vrot.slane %v2737_v32, %v4175_v40  ;;  %v2760_v36 = vrot.slane %v2752_v33, %v4175_v40  ;;  %v2767_v3 = vrot.slane %v2753_v63, %v4175_v40 }
0x1016   : > { %v2687_v54 = vpop.f32.mrf.mxu0  ;;  %v2733_v38 = vpop.f32.mrf.mxu1 }
0x1017   : > { %v2768_v43 = vcombine.low %v2744_v34, %v2760_v36  ;;  %v2769_v44 = vcombine.high %v2744_v34, %v2760_v36  ;;  %v2784_v46 = vcombine.low %v2751_v35, %v2767_v3  ;;  %v2785_v47 = vcombine.high %v2751_v35, %v2767_v3  ;;  %v3742_v54 = vld [vmem:[%s4731_s5 + $0x38] sm:$0xff]   ;;  %v3743_v38 = vld [vmem:[%s4731_s5 + $0x30] sm:$0xff]  }
0x1018   : > { %v3612_v49 = vpop.f32.mrf.mxu0  ;;  %v3618_v52 = vpop.f32.mrf.mxu1 }
0x1019   : > { %v2776_v53 = vrot.slane %v2768_v43, %v4186_v50  ;;  %v2783_v55 = vrot.slane %v2769_v44, %v4186_v50  ;;  %v2792_v0 = vrot.slane %v2784_v46, %v4186_v50  ;;  %v2799_v56 = vrot.slane %v2785_v47, %v4186_v50 }
0x101a   : > { %v2969_v46 = vrot.slane %v4420_v45, %v1606_v25  ;;  %v2974_v52 = vrot.slane %v4420_v45, %v1611_v2  ;;  %v3745_v25 = vld [vmem:[%s4731_s5 + $0x20] sm:$0xff]  }
0x101b   : > { %v2804_v60 = vcombine.low %v2776_v53, %v2783_v55  ;;  %v3377_v59 = vcombine.high %v2776_v53, %v2783_v55  ;;  %v2820_v58 = vcombine.low %v2792_v0, %v2799_v56  ;;  %v3378_v61 = vcombine.high %v2792_v0, %v2799_v56  ;;  %v3744_v56 = vld [vmem:[%s4731_s5 + $0x28] sm:$0xff]   ;;  %v3391_v2 = vld [vmem:[%s4730_s4 + $0x1] ss:$0 sm:$0xff] }
0x101d   : > { %v2811_v62 = vrot.slane %v2804_v60, %v4175_v40  ;;  %v2819_v48 = vrot.slane %v3377_v59, %v4175_v40  ;;  %v2827_v51 = vrot.slane %v2820_v58, %v4175_v40  ;;  %v2835_v5 = vrot.slane %v3378_v61, %v4175_v40 }
0x101f   : > { %v2837_v6 = vcombine.high %v2811_v62, %v2819_v48  ;;  %v2853_v7 = vcombine.high %v2827_v51, %v2835_v5  ;;  %v2836_v9 = vcombine.low %v2811_v62, %v2819_v48  ;;  %v2852_v10 = vcombine.low %v2827_v51, %v2835_v5 }
0x1020   : > { %v3059_v51 = vrot.slane %v4420_v45, %v1693_v27 }
0x1021   : > { %v2851_v4 = vrot.slane %v2837_v6, %v4186_v50  ;;  %v2867_v37 = vrot.slane %v2853_v7, %v4186_v50  ;;  %v2844_v18 = vrot.slane %v2836_v9, %v4186_v50  ;;  %v2860_v19 = vrot.slane %v2852_v10, %v4186_v50 }
0x1023   : > { %v2870_v20 = vcombine.low %v2851_v4, %v2867_v37  ;;  %v2869_v22 = vcombine.high %v2844_v18, %v2860_v19  ;;  %v2868_v16 = vcombine.low %v2844_v18, %v2860_v19  ;;  %v2871_v40 = vcombine.high %v2851_v4, %v2867_v37 }
0x1025   : > { %2877 = vrot.lane.b32.xlu1 %v2870_v20, %s3927_s21  ;;  %2873 = vrot.lane.b32.xlu0 %v2869_v22, %s3928_s11 }
0x1029   : > { %2881 = vrot.lane.b32.xlu0 %v2871_v40, %s4766_s23  ;;  %v3746_v40 = vld [vmem:[#allocation5 + $0x8] sm:$0xff]  }
0x1097   : > { %v2874_v41 = vpop.permute.xlu0 %2873  ;;  %v2878_v30 = vpop.permute.xlu1 %2877 }
0x1098   : > { %v2884_v23 = vsel %vm937_vm2, %v2868_v16, %v2874_v41 }
0x1099   : > { %v2885_v31 = vsel %vm1522_vm5, %v2884_v23, %v2878_v30  ;;  %v3128_v30 = vld [vmem:[%s4733_s7] sm:$0x3] }
0x109a   : > { %v3145_v23 = vrot.slane %v3128_v30, %v4131_v15 }
0x109b   : > { %v2882_v24 = vpop.permute.xlu0 %2881 }
0x109c   : > { %v2886_v11 = vsel %vm1524_vm6, %v2885_v31, %v2882_v24 }
0x109d   : > { %v2887_v50 = vpack.c.bf16 %v2886_v11, %v2886_v11  ;;  %v3150_v11 = vrot.slane %v3128_v30, %v4139_v17 }
0x109f   : > { %3624 = vmatmul.mubr.msk.bf16.vlgmr.msra.gmra.mxu0 %vm398_vm0, %v2887_v50 }
0x10a0   : > { %3643 = vmatprep.mubr.msk.bf16.mxu0 %vm3919_vm1, %v3918_v8  ;;  %3636 = vmatpush3.bf16.msra.mxu0 %v3742_v54 }
0x10a1   : > { %3637 = vmatprep.subr.bf16.mxu0 %v3918_v8 }
0x10a4   : > { %3638 = vmatpush3.bf16.msra.mxu0 %v3743_v38 }
0x10a5   : > { %3639 = vmatprep.subr.bf16.mxu0 %v3918_v8 }
0x10a8   : > { %3640 = vmatpush3.bf16.msra.mxu0 %v3744_v56 }
0x10a9   : > { %3641 = vmatprep.subr.bf16.mxu0 %v3918_v8 }
0x10ac   : > { %3642 = vmatpush3.bf16.msra.mxu0 %v3745_v25 }
0x115f   : > { %v2946_v26 = vpop.f32.mrf.mxu0 }
0x1160   : > { %v2947_v29 = vadd.f32 %v2946_v26, %v2896_v12  ;;  %v3408_v26 = vld [vmem:[%s4735_s9] ss:$0 sm:$0xff] }
0x1161   : > { %v3625_v28 = vpop.f32.mrf.mxu0 }
0x1162   : > { %v2952_v32 = vadd.f32 %v2947_v29, %v4403_v1  ;;  %v3741_v1 = vld [vmem:[%s4729_s3 + $0x10] sm:$0xff]  }
0x1163   : > { %v2949_v33 = vpop.f32.mrf.mxu0  ;;  %3630 = vmatpush3.bf16.msra.mxu1 %v3741_v1 }
0x1164   : > { %v2953_v63 = vsel %vm398_vm0, %v2952_v32, 0.0  ;;  %3647 = vmatprep.subr.bf16.mxu1 %v3918_v8 }
0x1165   : > { %2954 = vadd.xlane.f32.xlu1 %v2953_v63  ;;  %v3626_v21 = vpop.f32.mrf.mxu0 }
0x11ee   : > { %v2955_v13 = vpop.xlane.xlu1 %2954 }
0x11ef   : > { %v2956_v34 = vmul.f32 0.03125, %v2955_v13 }
0x11f1   : > { %v2957_v35 = vsub.f32 %v2952_v32, %v2956_v34 }
0x11f3   : > { %v2958_v36 = vmul.f32 %v2957_v35, %v2957_v35 }
0x11f5   : > { %v2959_v3 = vsel %vm398_vm0, %v2958_v36, 0.0 }
0x11f6   : > { %2960 = vadd.xlane.f32.xlu0 %v2959_v3 }
0x127f   : > { %v2961_v39 = vpop.xlane.xlu0 %2960 }
0x1280   : > { %v2962_v43 = vmul.f32 0.03125, %v2961_v39 }
0x1282   : > { %v2963_v44 = vadd.f32 1e-05, %v2962_v43 }
0x1284   : > { %3786 = vrsqrt.f32 %v2963_v44 }
0x1291   : > { %v3787_v47 = vpop.eup %3786 }
0x1292   : > { %v2965_v49 = vmul.f32 %v3787_v47, %v2957_v35 }
0x1294   : > { %v2970_v53 = vmul.f32 %v2969_v46, %v2965_v49 }
0x1296   : > { %v2975_v55 = vadd.f32 %v2974_v52, %v2970_v53 }
0x1298   : > { %v2976_v0 = vpack.c.bf16 %v2975_v55, %v2975_v55 }
0x129a   : > { %3632 = vmatmul.mubr.msk.bf16.vlgmr.msra.gmra.mxu1 %vm398_vm0, %v2976_v0 }
0x129b   : > { %3651 = vmatprep.mubr.msk.bf16.mxu1 %vm3919_vm1, %v3918_v8  ;;  %3648 = vmatpush3.bf16.msra.mxu1 %v3746_v40 }
0x129c   : > { %3649 = vmatprep.subr.bf16.mxu1 %v3918_v8 }
0x129f   : > { %3650 = vmatpush3.bf16.msra.mxu1 %v3747_v14 }
0x135a   : > { %v3039_v57 = vpop.f32.mrf.mxu1 }
0x135b   : > { %v3040_v60 = vadd.f32 %v3391_v2, %v3039_v57 }
0x135c   : > { %v3633_v59 = vpop.f32.mrf.mxu1 }
0x135d   : > { %v3045_v58 = vmax.f32 %v3040_v60, 0.0 }
0x135e   : > { %v3042_v61 = vpop.f32.mrf.mxu1 }
0x135f   : > { %v3046_v62 = vpack.c.bf16 %v3045_v58, %v3045_v58 }
0x1360   : > { %v3634_v48 = vpop.f32.mrf.mxu1 }
0x1361   : > { %3644 = vmatmul.mubr.msk.bf16.vlgmr.msra.gmra.mxu0 %vm1719_vm7, %v3046_v62 }
0x1421   : > { %v3121_v5 = vpop.f32.mrf.mxu0 }
0x1422   : > { %v3122_v6 = vadd.f32 %v3121_v5, %v3059_v51 }
0x1423   : > { %v3645_v7 = vpop.f32.mrf.mxu0 }
0x1424   : > { %v3127_v9 = vadd.f32 %v3122_v6, %v2952_v32 }
0x1425   : > { %v3124_v10 = vpop.f32.mrf.mxu0 }
0x1426   : > { %v3129_v4 = vsel %vm398_vm0, %v3127_v9, 0.0 }
0x1427   : > { %3130 = vadd.xlane.f32.xlu0 %v3129_v4  ;;  %v3646_v37 = vpop.f32.mrf.mxu0 }
0x14b0   : > { %v3131_v18 = vpop.xlane.xlu0 %3130 }
0x14b1   : > { %v3132_v19 = vmul.f32 0.03125, %v3131_v18 }
0x14b3   : > { %v3133_v20 = vsub.f32 %v3127_v9, %v3132_v19 }
0x14b5   : > { %v3134_v22 = vmul.f32 %v3133_v20, %v3133_v20 }
0x14b7   : > { %v3135_v16 = vsel %vm398_vm0, %v3134_v22, 0.0 }
0x14b8   : > { %3136 = vadd.xlane.f32.xlu1 %v3135_v16 }
0x1541   : > { %v3137_v27 = vpop.xlane.xlu1 %3136 }
0x1542   : > { %v3138_v45 = vmul.f32 0.03125, %v3137_v27 }
0x1544   : > { %v3139_v41 = vadd.f32 1e-05, %v3138_v45 }
0x1546   : > { %3788 = vrsqrt.f32 %v3139_v41 }
0x1553   : > { %v3789_v24 = vpop.eup %3788 }
0x1554   : > { %v3141_v31 = vmul.f32 %v3789_v24, %v3133_v20 }
0x1556   : > { %v3146_v50 = vmul.f32 %v3145_v23, %v3141_v31 }
0x1558   : > { %v3151_v8 = vadd.f32 %v3150_v11, %v3146_v50 }
0x155a   : > { %v3152_v12 = vpack.c.bf16 %v3151_v8, %v3151_v8 }
0x155c   : > { %3652 = vmatmul.mubr.msk.bf16.vlgmr.msra.gmra.mxu1 %vm398_vm0, %v3152_v12 }
0x161c   : > { %v3213_v15 = vpop.f32.mrf.mxu1 }
0x161d   : > { %v3214_v29 = vadd.f32 %v3408_v26, %v3213_v15 }
0x161e   : > { %v3653_v17 = vpop.f32.mrf.mxu1 }
0x161f   : > { %3219 = vst [vmem:[%s389_s19] sm:$0xff] %v3214_v29 }
0x1620   : > { %v3216_v28 = vpop.f32.mrf.mxu1 }
0x1621   : > { %3857 = shalt.err (!%p3854_p0)
}
0x1622   : > { %s3858_s23 = scalar_lea.hbm %s4683_s29, 128  ;;  %s3862_s11 = scalar_lea.hbm %s4736_s10, 256 }
0x1623   : > { %p3859_p5 = scmp.ne.s32.totalorder %s4683_s29, %s3858_s23  ;;  %p3863_p1 = scmp.lt.s32.totalorder %s4683_s29, %s4736_s10 }
0x1624   : > { %p3864_p4 = scmp.lt.s32.totalorder %s3862_s11, %s3858_s23 }
0x1625   : > { %p3860_p9 = pnand %p3859_p5, %p4768_p3 }
0x1626   : > { %p3865_p6 = por %p3864_p4, %p3863_p1 }
0x1627   : > { %p3861_p12 = pneg %p3860_p9 }
0x1629   : > { %p3866_p8 = pnand %p3865_p6, %p3861_p12 }
0x162b   : > { %3869 = shalt.err (!%p3866_p8)
}
0x162c   : > { %3661 = dma.vmem_to_hbm [thread:$0]  (%p4768_p3), %s4685_s13, 128, %s4683_s29, %s3221_s25   ;;  %v3654_v32 = vpop.f32.mrf.mxu1 }
0x162d PF: > { %s4769_s18 = sld [smem:[#allocation11_spill]]  ;;  %p4772_p7 = scmp.ge.s32.totalorder %s3912_s16, 2 }
0x162e   : > { %s4770_s19 = sld [smem:[#allocation12_spill]] }
0x1633   : > { %s3246_s26 = sand.u32 1, %s4769_s18  }
0x1634   : > { %p4771_p11 = scmp.ne.s32.totalorder %s4770_s19, 0  ;;  %s3247_s27 = scalar_lea.sflag [#allocation4], %s3246_s26 }
0x1636   : > { %p3672_p10 = pnand %p4772_p7, %p4771_p11 }
0x1638   : > { %p3673_p2 = pneg %p3672_p10 }
0x163a   : > { %3895 = dma.done.wait (%p3673_p2), %s3247_s27, 128  }
0x163b   : > { %3897 = vsyncadd (%p3673_p2), %s3247_s27, 4294967168  ;;  %s4773_s16 = sld [smem:[#allocation13_spill]]  ;;  %s4775_s13 = smov %s3904_s14 }
0x163c   : > { %s4774_s22 = sld [smem:[#allocation14_spill]]  ;;  %s4776_s14 = smov %s3908_s15 }
0x1641   : > { %p24_p13 = scmp.ge.s32.totalorder %s4773_s16, 4  }
0x1642   : > { %s4777_s15 = smov %s4774_s22 }
0x1643   :  { %26 = sbr.rel (!%p24_p13) target bundleno = 8 (0x8), region = 115 }
0x1648   :  { %3252 = vsyncpa [#allocation3], 1 }
0x1649   :  { %3254 = vsyncpa [#allocation3 + $0x1], 1 }
0x164a   :  { %3255 = vsyncpa [#allocation6], 1 }
0x164b   :  { %3256 = vsyncpa [#allocation4], 1 }
0x164c   :  { %3258 = vsyncpa [#allocation4 + $0x1], 1 }

</bundles_post_ra>
